<compile_context>
chip_gen: v7x
topology: tpu7x:2x2x1
jax: 0.10.0
libtpu: 0.0.40
codegen_flags: <defaults>
</compile_context>

<pallas_src>
import functools

import numpy as np
import jax
import jax.numpy as jnp
from jax.experimental import pallas as pl
from jax.experimental.pallas import tpu as pltpu

BN_EPS = 1e-5    # nn.BatchNorm2d default
L2_EPS = 1e-12   # guards L2Norm (x / ||x||_2) against zero rows (PyTorch would NaN)

K = 5            # conv kernel size (all three convs)
STRIDE = 2       # conv stride
KPAD = 128       # conv1 im2col K dim (5*5*3 = 75) zero-padded to a lane-dense 128


def _conv_size_out(s, k=K, stride=STRIDE):
    return (s - (k - 1) - 1) // stride + 1


# ----------------------------------------------------------------------------
# In-kernel helper: training-mode BatchNorm over rows (= N*H*W) + ReLU
# ----------------------------------------------------------------------------
def _bn_relu(y, gamma, beta):
    mean = jnp.mean(y, axis=0, keepdims=True)
    d = y - mean                                   # centered (two-pass) variance
    var = jnp.mean(d * d, axis=0, keepdims=True)
    scale = gamma * jax.lax.rsqrt(var + BN_EPS)
    return jnp.maximum(d * scale + beta, 0.0)


# ----------------------------------------------------------------------------
# The single fused kernel
# ----------------------------------------------------------------------------
def _dqn_kernel(p_ref, w1_ref, g1_ref, b1_ref,
                w2_ref, g2_ref, b2_ref,
                w3_ref, g3_ref, b3_ref,
                encw_ref, encb_ref,
                hw1_ref, hb1_ref, hw2_ref, hb2_ref, hw3_ref, hb3_ref,
                o_ref, *, batch, n_unique, tap_block, n_tap, n_pos):
    # ---- conv1: one lane-dense patch matmul ---------------------------------
    # p rows = [ n_unique unique conv1 positions (for BN1 statistics)
    #          | n_tap blocks of the conv1 positions each conv2 tap reads,
    #            every block padded to `tap_block` (multiple of 8) rows ]
    y1 = jnp.dot(p_ref[...], w1_ref[...], preferred_element_type=jnp.float32)

    # BN1 stats must count each conv1 output position exactly once -> use the
    # unique block only (the duplicated block over-weights interior positions).
    y1u = y1[:n_unique, :]
    mean1 = jnp.mean(y1u, axis=0, keepdims=True)
    d1 = y1u - mean1
    var1 = jnp.mean(d1 * d1, axis=0, keepdims=True)
    scale1 = g1_ref[...] * jax.lax.rsqrt(var1 + BN_EPS)
    shift1 = b1_ref[...] - mean1 * scale1
    h1d = jnp.maximum(y1[n_unique:, :] * scale1 + shift1, 0.0)   # [n_tap*tap_block, 16]

    # ---- conv2: one [B*25, 400] @ [400, 32] dot -----------------------------
    # Tap block s of h1d holds (rows ordered (oh2, ow2, b)) the conv1 outputs
    # conv2 tap s=(kh,kw) reads; lane-concatenating the 25 blocks yields the
    # conv2 im2col with columns in (kh, kw, ci) order -> a single MXU dot.
    pos_rows = n_pos * batch
    lhs2 = jnp.concatenate(
        [h1d[s * tap_block:s * tap_block + pos_rows, :] for s in range(n_tap)],
        axis=1)                                                  # [50, 400]
    y2 = jnp.dot(lhs2, w2_ref[...], preferred_element_type=jnp.float32)
    h2 = _bn_relu(y2, g2_ref[...], b2_ref[...])                  # [50, 32]

    # ---- conv3 (1x1 output spatial): one [B, 800] @ [800, 32] dot -----------
    lhs3 = jnp.concatenate(
        [h2[s * batch:(s + 1) * batch, :] for s in range(n_pos)], axis=1)  # [B, 800]
    y3 = jnp.dot(lhs3, w3_ref[...], preferred_element_type=jnp.float32)
    h3 = _bn_relu(y3, g3_ref[...], b3_ref[...])                  # [B, 32]

    # ---- encoder output Linear + L2Norm -------------------------------------
    # (epsilon guard deviates from x/||x|| only for near-zero rows)
    feat = jnp.dot(h3, encw_ref[...], preferred_element_type=jnp.float32) + encb_ref[...]
    feat = feat * jax.lax.rsqrt(jnp.sum(feat * feat, axis=1, keepdims=True) + L2_EPS)

    # ---- MLP head: Linear -> ReLU -> Linear -> ReLU -> Linear -> Identity ---
    h = jnp.maximum(
        jnp.dot(feat, hw1_ref[...], preferred_element_type=jnp.float32) + hb1_ref[...], 0.0)
    h = jnp.maximum(
        jnp.dot(h, hw2_ref[...], preferred_element_type=jnp.float32) + hb2_ref[...], 0.0)
    o_ref[...] = jnp.dot(h, hw3_ref[...], preferred_element_type=jnp.float32) + hb3_ref[...]


# ----------------------------------------------------------------------------
# XLA-side glue: one im2col on the input + one constant-index row gather
# ----------------------------------------------------------------------------
def _conv1_patches(x_nhwc, oh1, ow1):
    """conv1 im2col: [B*OH1*OW1, 75]; rows (b, oh1, ow1), cols (kh, kw, ci)."""
    B, _, _, C = x_nhwc.shape
    cols = [x_nhwc[:, kh:kh + STRIDE * oh1:STRIDE, kw:kw + STRIDE * ow1:STRIDE, :]
            for kh in range(K) for kw in range(K)]
    p = jnp.stack(cols, axis=3)                       # [B, OH1, OW1, 25, C]
    return p.reshape(B * oh1 * ow1, K * K * C)


def _dup_row_indices(batch, oh1, ow1, oh2, ow2):
    """Constant row indices gathering, per conv2 tap, the conv1 rows it reads.

    Block s = tap (kh, kw); rows inside a block are ordered (oh2, ow2, b); each
    block is padded to a multiple of 8 rows so in-kernel slices stay
    sublane-aligned (pad rows point at row 0 and are never consumed).
    """
    pos_rows = oh2 * ow2 * batch
    tap_block = ((pos_rows + 7) // 8) * 8
    idx = np.zeros((K * K, tap_block), np.int32)
    for kh in range(K):
        for kw in range(K):
            s = kh * K + kw
            for oh in range(oh2):
                for ow in range(ow2):
                    h1 = STRIDE * oh + kh
                    w1 = STRIDE * ow + kw
                    for b in range(batch):
                        idx[s, (oh * ow2 + ow) * batch + b] = (b * oh1 + h1) * ow1 + w1
    return idx.reshape(-1), tap_block


# ----------------------------------------------------------------------------
# Parameter init (deterministic, matches module shapes)
# ----------------------------------------------------------------------------
def init_params(key, h, w, outputs, feature_size, hiddens):
    convw = _conv_size_out(_conv_size_out(_conv_size_out(w)))
    convh = _conv_size_out(_conv_size_out(_conv_size_out(h)))
    lin_in = convw * convh * 32

    keys = jax.random.split(key, 11)

    def uni(k_, shape, fan_in):
        lim = 1.0 / float(fan_in) ** 0.5
        return jax.random.uniform(k_, shape, jnp.float32, -lim, lim)

    ones = lambda c: jnp.ones((1, c), jnp.float32)
    zeros = lambda c: jnp.zeros((1, c), jnp.float32)

    p = {}
    # Conv weights stored as [KH*KW*Cin, Cout] with (kh, kw, ci) row order.
    # Conv biases are omitted: train-mode BatchNorm cancels them exactly.
    p["conv1_w"] = uni(keys[0], (K * K * 3, 16), K * K * 3)
    p["bn1_g"], p["bn1_b"] = ones(16), zeros(16)
    p["conv2_w"] = uni(keys[1], (K * K * 16, 32), K * K * 16)
    p["bn2_g"], p["bn2_b"] = ones(32), zeros(32)
    p["conv3_w"] = uni(keys[2], (K * K * 32, 32), K * K * 32)
    p["bn3_g"], p["bn3_b"] = ones(32), zeros(32)

    p["enc_w"] = uni(keys[3], (lin_in, feature_size), lin_in)
    p["enc_b"] = uni(keys[4], (1, feature_size), lin_in)

    p["head_w1"] = uni(keys[5], (feature_size, hiddens), feature_size)
    p["head_b1"] = uni(keys[6], (1, hiddens), feature_size)
    p["head_w2"] = uni(keys[7], (hiddens, hiddens), hiddens)
    p["head_b2"] = uni(keys[8], (1, hiddens), hiddens)
    p["head_w3"] = uni(keys[9], (hiddens, outputs), hiddens)
    p["head_b3"] = uni(keys[10], (1, outputs), hiddens)
    return p


# ----------------------------------------------------------------------------
# DQN forward: one fused pallas_call, gridless, whole-array VMEM blocks
# ----------------------------------------------------------------------------
def dqn_forward(params, x_nchw):
    x = jnp.transpose(x_nchw, (0, 2, 3, 1)).astype(jnp.float32)   # NCHW -> NHWC
    B, H, W, _ = x.shape
    oh1, ow1 = _conv_size_out(H), _conv_size_out(W)
    oh2, ow2 = _conv_size_out(oh1), _conv_size_out(ow1)
    oh3, ow3 = _conv_size_out(oh2), _conv_size_out(ow2)
    # Fused conv3 needs a 1x1 output spatial map (true for 32x32 inputs).
    assert (oh3, ow3) == (1, 1) and (oh2, ow2) == (K, K), \
        "fused DQN kernel requires 32x32 inputs (1x1 conv3 output)"

    # conv1 im2col (unique positions, for BN1 stats) plus a constant-index
    # gather of the conv1 patches each conv2 tap needs (so conv2/conv3 are
    # computed fully inside the kernel, no intermediate HBM round trip).
    p_u = _conv1_patches(x, oh1, ow1)                             # [392, 75]
    dup_idx, tap_block = _dup_row_indices(B, oh1, ow1, oh2, ow2)
    p_d = jnp.take(p_u, jnp.asarray(dup_idx), axis=0)             # [1400, 75]
    p_all = jnp.concatenate([p_u, p_d], axis=0)
    p_all = jnp.pad(p_all, ((0, 0), (0, KPAD - p_all.shape[1])))  # lane-dense K=128
    w1 = jnp.pad(params["conv1_w"],
                 ((0, KPAD - params["conv1_w"].shape[0]), (0, 0)))

    c1 = params["conv1_w"].shape[1]
    c2 = params["conv2_w"].shape[1]
    c3 = params["conv3_w"].shape[1]
    feat = params["enc_w"].shape[1]
    hid = params["head_w1"].shape[1]
    outputs = params["head_w3"].shape[1]

    args = (p_all, w1, params["bn1_g"], params["bn1_b"],
            params["conv2_w"], params["bn2_g"], params["bn2_b"],
            params["conv3_w"], params["bn3_g"], params["bn3_b"],
            params["enc_w"], params["enc_b"],
            params["head_w1"], params["head_b1"],
            params["head_w2"], params["head_b2"],
            params["head_w3"], params["head_b3"])

    kernel = functools.partial(
        _dqn_kernel, batch=B, n_unique=B * oh1 * ow1,
        tap_block=tap_block, n_tap=K * K, n_pos=oh2 * ow2)

    flops = 2 * (p_all.shape[0] * KPAD * c1
                 + (oh2 * ow2 * B) * params["conv2_w"].shape[0] * c2
                 + B * params["conv3_w"].shape[0] * c3
                 + B * c3 * feat + B * feat * hid + B * hid * hid + B * hid * outputs)
    bytes_accessed = sum(int(a.size) * 4 for a in args) + B * outputs * 4
    cost = pl.CostEstimate(flops=int(flops),
                           transcendentals=int(c1 + c2 + c3 + B),
                           bytes_accessed=int(bytes_accessed))

    return pl.pallas_call(
        kernel,
        in_specs=[pl.BlockSpec(memory_space=pltpu.MemorySpace.VMEM) for _ in args],
        out_specs=pl.BlockSpec(memory_space=pltpu.MemorySpace.VMEM),
        out_shape=jax.ShapeDtypeStruct((B, outputs), jnp.float32),
        cost_estimate=cost,
    )(*args)


if __name__ == "__main__":
    # Three stride-2 5x5 convs need h = w = 32 to leave a 1x1 spatial map
    # (linear_input_size = 32), matching the module's geometry.
    B, H, W = 2, 32, 32
    OUTPUTS, FEATURE_SIZE, HIDDENS = 4, 32, 64

    key = jax.random.PRNGKey(0)
    k_x, k_p = jax.random.split(key)
    x = jax.random.normal(k_x, (B, 3, H, W), dtype=jnp.float32)
    params = init_params(k_p, H, W, OUTPUTS, FEATURE_SIZE, HIDDENS)

    q_values = jax.jit(dqn_forward)(params, x)
    jax.block_until_ready(q_values)
    assert q_values.shape == (B, OUTPUTS)
    assert bool(jnp.all(jnp.isfinite(q_values)))
    print("KERNEL_OK")
</pallas_src>

<mosaic_0001>
module attributes {stable_mosaic.version = 11 : i64} {
  func.func @_dqn_kernel(%arg0: memref<1792x128xf32, #tpu.memory_space<vmem>>, %arg1: memref<128x16xf32, #tpu.memory_space<vmem>>, %arg2: memref<1x16xf32, #tpu.memory_space<vmem>>, %arg3: memref<1x16xf32, #tpu.memory_space<vmem>>, %arg4: memref<400x32xf32, #tpu.memory_space<vmem>>, %arg5: memref<1x32xf32, #tpu.memory_space<vmem>>, %arg6: memref<1x32xf32, #tpu.memory_space<vmem>>, %arg7: memref<800x32xf32, #tpu.memory_space<vmem>>, %arg8: memref<1x32xf32, #tpu.memory_space<vmem>>, %arg9: memref<1x32xf32, #tpu.memory_space<vmem>>, %arg10: memref<32x32xf32, #tpu.memory_space<vmem>>, %arg11: memref<1x32xf32, #tpu.memory_space<vmem>>, %arg12: memref<32x64xf32, #tpu.memory_space<vmem>>, %arg13: memref<1x64xf32, #tpu.memory_space<vmem>>, %arg14: memref<64x64xf32, #tpu.memory_space<vmem>>, %arg15: memref<1x64xf32, #tpu.memory_space<vmem>>, %arg16: memref<64x4xf32, #tpu.memory_space<vmem>>, %arg17: memref<1x4xf32, #tpu.memory_space<vmem>>, %arg18: memref<2x4xf32, #tpu.memory_space<vmem>>) attributes {dimension_semantics = [], scalar_prefetch = 0 : i64, scratch_operands = 0 : i64, tpu.core_type = #tpu.core_type<tc>} {
    %c0 = arith.constant 0 : index
    %c0_0 = arith.constant 0 : index
    %0 = vector.load %arg0[%c0, %c0_0] : memref<1792x128xf32, #tpu.memory_space<vmem>>, vector<1792x128xf32>
    %c0_1 = arith.constant 0 : index
    %c0_2 = arith.constant 0 : index
    %1 = vector.load %arg1[%c0_1, %c0_2] : memref<128x16xf32, #tpu.memory_space<vmem>>, vector<128x16xf32>
    %cst = arith.constant dense<0.000000e+00> : vector<1792x16xf32>
    %2 = tpu.matmul %0, %1, %cst {dimension_numbers = #tpu.dot_dimension_numbers<[1], [0], [0], [1], [0, 0, 1, 1], [], []>} : vector<1792x128xf32>, vector<128x16xf32>, vector<1792x16xf32> -> vector<1792x16xf32>
    %3 = vector.extract_strided_slice %2 {offsets = [0, 0], sizes = [392, 16], strides = [1, 1]} : vector<1792x16xf32> to vector<392x16xf32>
    %cst_3 = arith.constant dense<0.000000e+00> : vector<16xf32>
    %4 = vector.multi_reduction <add>, %3, %cst_3 [0] : vector<392x16xf32> to vector<16xf32>
    %5 = vector.shape_cast %4 : vector<16xf32> to vector<1x16xf32>
    %cst_4 = arith.constant 3.920000e+02 : f32
    %6 = vector.broadcast %cst_4 : f32 to vector<1x16xf32>
    %7 = arith.divf %5, %6 : vector<1x16xf32>
    %8 = vector.broadcast %7 : vector<1x16xf32> to vector<392x16xf32>
    %9 = arith.subf %3, %8 : vector<392x16xf32>
    %10 = arith.mulf %9, %9 : vector<392x16xf32>
    %cst_5 = arith.constant dense<0.000000e+00> : vector<16xf32>
    %11 = vector.multi_reduction <add>, %10, %cst_5 [0] : vector<392x16xf32> to vector<16xf32>
    %12 = vector.shape_cast %11 : vector<16xf32> to vector<1x16xf32>
    %cst_6 = arith.constant 3.920000e+02 : f32
    %13 = vector.broadcast %cst_6 : f32 to vector<1x16xf32>
    %14 = arith.divf %12, %13 : vector<1x16xf32>
    %c0_7 = arith.constant 0 : index
    %c0_8 = arith.constant 0 : index
    %15 = vector.load %arg2[%c0_7, %c0_8] : memref<1x16xf32, #tpu.memory_space<vmem>>, vector<1x16xf32>
    %cst_9 = arith.constant 9.99999974E-6 : f32
    %16 = vector.broadcast %cst_9 : f32 to vector<1x16xf32>
    %17 = arith.addf %14, %16 : vector<1x16xf32>
    %18 = math.rsqrt %17 : vector<1x16xf32>
    %19 = arith.mulf %15, %18 : vector<1x16xf32>
    %c0_10 = arith.constant 0 : index
    %c0_11 = arith.constant 0 : index
    %20 = vector.load %arg3[%c0_10, %c0_11] : memref<1x16xf32, #tpu.memory_space<vmem>>, vector<1x16xf32>
    %21 = arith.mulf %7, %19 : vector<1x16xf32>
    %22 = arith.subf %20, %21 : vector<1x16xf32>
    %23 = vector.extract_strided_slice %2 {offsets = [392, 0], sizes = [1400, 16], strides = [1, 1]} : vector<1792x16xf32> to vector<1400x16xf32>
    %24 = vector.broadcast %19 : vector<1x16xf32> to vector<1400x16xf32>
    %25 = arith.mulf %23, %24 : vector<1400x16xf32>
    %26 = vector.broadcast %22 : vector<1x16xf32> to vector<1400x16xf32>
    %27 = arith.addf %25, %26 : vector<1400x16xf32>
    %cst_12 = arith.constant 0.000000e+00 : f32
    %28 = vector.broadcast %cst_12 : f32 to vector<1400x16xf32>
    %29 = arith.maximumf %27, %28 : vector<1400x16xf32>
    %30 = vector.extract_strided_slice %29 {offsets = [0, 0], sizes = [50, 16], strides = [1, 1]} : vector<1400x16xf32> to vector<50x16xf32>
    %31 = vector.extract_strided_slice %29 {offsets = [56, 0], sizes = [50, 16], strides = [1, 1]} : vector<1400x16xf32> to vector<50x16xf32>
    %32 = vector.extract_strided_slice %29 {offsets = [112, 0], sizes = [50, 16], strides = [1, 1]} : vector<1400x16xf32> to vector<50x16xf32>
    %33 = vector.extract_strided_slice %29 {offsets = [168, 0], sizes = [50, 16], strides = [1, 1]} : vector<1400x16xf32> to vector<50x16xf32>
    %34 = vector.extract_strided_slice %29 {offsets = [224, 0], sizes = [50, 16], strides = [1, 1]} : vector<1400x16xf32> to vector<50x16xf32>
    %35 = vector.extract_strided_slice %29 {offsets = [280, 0], sizes = [50, 16], strides = [1, 1]} : vector<1400x16xf32> to vector<50x16xf32>
    %36 = vector.extract_strided_slice %29 {offsets = [336, 0], sizes = [50, 16], strides = [1, 1]} : vector<1400x16xf32> to vector<50x16xf32>
    %37 = vector.extract_strided_slice %29 {offsets = [392, 0], sizes = [50, 16], strides = [1, 1]} : vector<1400x16xf32> to vector<50x16xf32>
    %38 = vector.extract_strided_slice %29 {offsets = [448, 0], sizes = [50, 16], strides = [1, 1]} : vector<1400x16xf32> to vector<50x16xf32>
    %39 = vector.extract_strided_slice %29 {offsets = [504, 0], sizes = [50, 16], strides = [1, 1]} : vector<1400x16xf32> to vector<50x16xf32>
    %40 = vector.extract_strided_slice %29 {offsets = [560, 0], sizes = [50, 16], strides = [1, 1]} : vector<1400x16xf32> to vector<50x16xf32>
    %41 = vector.extract_strided_slice %29 {offsets = [616, 0], sizes = [50, 16], strides = [1, 1]} : vector<1400x16xf32> to vector<50x16xf32>
    %42 = vector.extract_strided_slice %29 {offsets = [672, 0], sizes = [50, 16], strides = [1, 1]} : vector<1400x16xf32> to vector<50x16xf32>
    %43 = vector.extract_strided_slice %29 {offsets = [728, 0], sizes = [50, 16], strides = [1, 1]} : vector<1400x16xf32> to vector<50x16xf32>
    %44 = vector.extract_strided_slice %29 {offsets = [784, 0], sizes = [50, 16], strides = [1, 1]} : vector<1400x16xf32> to vector<50x16xf32>
    %45 = vector.extract_strided_slice %29 {offsets = [840, 0], sizes = [50, 16], strides = [1, 1]} : vector<1400x16xf32> to vector<50x16xf32>
    %46 = vector.extract_strided_slice %29 {offsets = [896, 0], sizes = [50, 16], strides = [1, 1]} : vector<1400x16xf32> to vector<50x16xf32>
    %47 = vector.extract_strided_slice %29 {offsets = [952, 0], sizes = [50, 16], strides = [1, 1]} : vector<1400x16xf32> to vector<50x16xf32>
    %48 = vector.extract_strided_slice %29 {offsets = [1008, 0], sizes = [50, 16], strides = [1, 1]} : vector<1400x16xf32> to vector<50x16xf32>
    %49 = vector.extract_strided_slice %29 {offsets = [1064, 0], sizes = [50, 16], strides = [1, 1]} : vector<1400x16xf32> to vector<50x16xf32>
    %50 = vector.extract_strided_slice %29 {offsets = [1120, 0], sizes = [50, 16], strides = [1, 1]} : vector<1400x16xf32> to vector<50x16xf32>
    %51 = vector.extract_strided_slice %29 {offsets = [1176, 0], sizes = [50, 16], strides = [1, 1]} : vector<1400x16xf32> to vector<50x16xf32>
    %52 = vector.extract_strided_slice %29 {offsets = [1232, 0], sizes = [50, 16], strides = [1, 1]} : vector<1400x16xf32> to vector<50x16xf32>
    %53 = vector.extract_strided_slice %29 {offsets = [1288, 0], sizes = [50, 16], strides = [1, 1]} : vector<1400x16xf32> to vector<50x16xf32>
    %54 = vector.extract_strided_slice %29 {offsets = [1344, 0], sizes = [50, 16], strides = [1, 1]} : vector<1400x16xf32> to vector<50x16xf32>
    %55 = tpu.concatenate %30, %31, %32, %33, %34, %35, %36, %37, %38, %39, %40, %41, %42, %43, %44, %45 in 1 : vector<50x16xf32>, vector<50x16xf32>, vector<50x16xf32>, vector<50x16xf32>, vector<50x16xf32>, vector<50x16xf32>, vector<50x16xf32>, vector<50x16xf32>, vector<50x16xf32>, vector<50x16xf32>, vector<50x16xf32>, vector<50x16xf32>, vector<50x16xf32>, vector<50x16xf32>, vector<50x16xf32>, vector<50x16xf32> -> vector<50x256xf32>
    %56 = tpu.concatenate %46, %47, %48, %49, %50, %51, %52, %53, %54 in 1 : vector<50x16xf32>, vector<50x16xf32>, vector<50x16xf32>, vector<50x16xf32>, vector<50x16xf32>, vector<50x16xf32>, vector<50x16xf32>, vector<50x16xf32>, vector<50x16xf32> -> vector<50x144xf32>
    %57 = tpu.concatenate %55, %56 in 1 : vector<50x256xf32>, vector<50x144xf32> -> vector<50x400xf32>
    %c0_13 = arith.constant 0 : index
    %c0_14 = arith.constant 0 : index
    %58 = vector.load %arg4[%c0_13, %c0_14] : memref<400x32xf32, #tpu.memory_space<vmem>>, vector<400x32xf32>
    %cst_15 = arith.constant dense<0.000000e+00> : vector<50x32xf32>
    %59 = tpu.matmul %57, %58, %cst_15 {dimension_numbers = #tpu.dot_dimension_numbers<[1], [0], [0], [1], [0, 0, 1, 1], [], []>} : vector<50x400xf32>, vector<400x32xf32>, vector<50x32xf32> -> vector<50x32xf32>
    %c0_16 = arith.constant 0 : index
    %c0_17 = arith.constant 0 : index
    %60 = vector.load %arg5[%c0_16, %c0_17] : memref<1x32xf32, #tpu.memory_space<vmem>>, vector<1x32xf32>
    %c0_18 = arith.constant 0 : index
    %c0_19 = arith.constant 0 : index
    %61 = vector.load %arg6[%c0_18, %c0_19] : memref<1x32xf32, #tpu.memory_space<vmem>>, vector<1x32xf32>
    %cst_20 = arith.constant dense<0.000000e+00> : vector<32xf32>
    %62 = vector.multi_reduction <add>, %59, %cst_20 [0] : vector<50x32xf32> to vector<32xf32>
    %63 = vector.shape_cast %62 : vector<32xf32> to vector<1x32xf32>
    %cst_21 = arith.constant 5.000000e+01 : f32
    %64 = vector.broadcast %cst_21 : f32 to vector<1x32xf32>
    %65 = arith.divf %63, %64 : vector<1x32xf32>
    %66 = vector.broadcast %65 : vector<1x32xf32> to vector<50x32xf32>
    %67 = arith.subf %59, %66 : vector<50x32xf32>
    %68 = arith.mulf %67, %67 : vector<50x32xf32>
    %cst_22 = arith.constant dense<0.000000e+00> : vector<32xf32>
    %69 = vector.multi_reduction <add>, %68, %cst_22 [0] : vector<50x32xf32> to vector<32xf32>
    %70 = vector.shape_cast %69 : vector<32xf32> to vector<1x32xf32>
    %cst_23 = arith.constant 5.000000e+01 : f32
    %71 = vector.broadcast %cst_23 : f32 to vector<1x32xf32>
    %72 = arith.divf %70, %71 : vector<1x32xf32>
    %cst_24 = arith.constant 9.99999974E-6 : f32
    %73 = vector.broadcast %cst_24 : f32 to vector<1x32xf32>
    %74 = arith.addf %72, %73 : vector<1x32xf32>
    %75 = math.rsqrt %74 : vector<1x32xf32>
    %76 = arith.mulf %60, %75 : vector<1x32xf32>
    %77 = vector.broadcast %76 : vector<1x32xf32> to vector<50x32xf32>
    %78 = arith.mulf %67, %77 : vector<50x32xf32>
    %79 = vector.broadcast %61 : vector<1x32xf32> to vector<50x32xf32>
    %80 = arith.addf %78, %79 : vector<50x32xf32>
    %cst_25 = arith.constant 0.000000e+00 : f32
    %81 = vector.broadcast %cst_25 : f32 to vector<50x32xf32>
    %82 = arith.maximumf %80, %81 : vector<50x32xf32>
    %83 = vector.extract_strided_slice %82 {offsets = [0, 0], sizes = [2, 32], strides = [1, 1]} : vector<50x32xf32> to vector<2x32xf32>
    %84 = vector.extract_strided_slice %82 {offsets = [2, 0], sizes = [2, 32], strides = [1, 1]} : vector<50x32xf32> to vector<2x32xf32>
    %85 = vector.extract_strided_slice %82 {offsets = [4, 0], sizes = [2, 32], strides = [1, 1]} : vector<50x32xf32> to vector<2x32xf32>
    %86 = vector.extract_strided_slice %82 {offsets = [6, 0], sizes = [2, 32], strides = [1, 1]} : vector<50x32xf32> to vector<2x32xf32>
    %87 = vector.extract_strided_slice %82 {offsets = [8, 0], sizes = [2, 32], strides = [1, 1]} : vector<50x32xf32> to vector<2x32xf32>
    %88 = vector.extract_strided_slice %82 {offsets = [10, 0], sizes = [2, 32], strides = [1, 1]} : vector<50x32xf32> to vector<2x32xf32>
    %89 = vector.extract_strided_slice %82 {offsets = [12, 0], sizes = [2, 32], strides = [1, 1]} : vector<50x32xf32> to vector<2x32xf32>
    %90 = vector.extract_strided_slice %82 {offsets = [14, 0], sizes = [2, 32], strides = [1, 1]} : vector<50x32xf32> to vector<2x32xf32>
    %91 = vector.extract_strided_slice %82 {offsets = [16, 0], sizes = [2, 32], strides = [1, 1]} : vector<50x32xf32> to vector<2x32xf32>
    %92 = vector.extract_strided_slice %82 {offsets = [18, 0], sizes = [2, 32], strides = [1, 1]} : vector<50x32xf32> to vector<2x32xf32>
    %93 = vector.extract_strided_slice %82 {offsets = [20, 0], sizes = [2, 32], strides = [1, 1]} : vector<50x32xf32> to vector<2x32xf32>
    %94 = vector.extract_strided_slice %82 {offsets = [22, 0], sizes = [2, 32], strides = [1, 1]} : vector<50x32xf32> to vector<2x32xf32>
    %95 = vector.extract_strided_slice %82 {offsets = [24, 0], sizes = [2, 32], strides = [1, 1]} : vector<50x32xf32> to vector<2x32xf32>
    %96 = vector.extract_strided_slice %82 {offsets = [26, 0], sizes = [2, 32], strides = [1, 1]} : vector<50x32xf32> to vector<2x32xf32>
    %97 = vector.extract_strided_slice %82 {offsets = [28, 0], sizes = [2, 32], strides = [1, 1]} : vector<50x32xf32> to vector<2x32xf32>
    %98 = vector.extract_strided_slice %82 {offsets = [30, 0], sizes = [2, 32], strides = [1, 1]} : vector<50x32xf32> to vector<2x32xf32>
    %99 = vector.extract_strided_slice %82 {offsets = [32, 0], sizes = [2, 32], strides = [1, 1]} : vector<50x32xf32> to vector<2x32xf32>
    %100 = vector.extract_strided_slice %82 {offsets = [34, 0], sizes = [2, 32], strides = [1, 1]} : vector<50x32xf32> to vector<2x32xf32>
    %101 = vector.extract_strided_slice %82 {offsets = [36, 0], sizes = [2, 32], strides = [1, 1]} : vector<50x32xf32> to vector<2x32xf32>
    %102 = vector.extract_strided_slice %82 {offsets = [38, 0], sizes = [2, 32], strides = [1, 1]} : vector<50x32xf32> to vector<2x32xf32>
    %103 = vector.extract_strided_slice %82 {offsets = [40, 0], sizes = [2, 32], strides = [1, 1]} : vector<50x32xf32> to vector<2x32xf32>
    %104 = vector.extract_strided_slice %82 {offsets = [42, 0], sizes = [2, 32], strides = [1, 1]} : vector<50x32xf32> to vector<2x32xf32>
    %105 = vector.extract_strided_slice %82 {offsets = [44, 0], sizes = [2, 32], strides = [1, 1]} : vector<50x32xf32> to vector<2x32xf32>
    %106 = vector.extract_strided_slice %82 {offsets = [46, 0], sizes = [2, 32], strides = [1, 1]} : vector<50x32xf32> to vector<2x32xf32>
    %107 = vector.extract_strided_slice %82 {offsets = [48, 0], sizes = [2, 32], strides = [1, 1]} : vector<50x32xf32> to vector<2x32xf32>
    %108 = tpu.concatenate %83, %84, %85, %86, %87, %88, %89, %90, %91, %92, %93, %94, %95, %96, %97, %98 in 1 : vector<2x32xf32>, vector<2x32xf32>, vector<2x32xf32>, vector<2x32xf32>, vector<2x32xf32>, vector<2x32xf32>, vector<2x32xf32>, vector<2x32xf32>, vector<2x32xf32>, vector<2x32xf32>, vector<2x32xf32>, vector<2x32xf32>, vector<2x32xf32>, vector<2x32xf32>, vector<2x32xf32>, vector<2x32xf32> -> vector<2x512xf32>
    %109 = tpu.concatenate %99, %100, %101, %102, %103, %104, %105, %106, %107 in 1 : vector<2x32xf32>, vector<2x32xf32>, vector<2x32xf32>, vector<2x32xf32>, vector<2x32xf32>, vector<2x32xf32>, vector<2x32xf32>, vector<2x32xf32>, vector<2x32xf32> -> vector<2x288xf32>
    %110 = tpu.concatenate %108, %109 in 1 : vector<2x512xf32>, vector<2x288xf32> -> vector<2x800xf32>
    %c0_26 = arith.constant 0 : index
    %c0_27 = arith.constant 0 : index
    %111 = vector.load %arg7[%c0_26, %c0_27] : memref<800x32xf32, #tpu.memory_space<vmem>>, vector<800x32xf32>
    %cst_28 = arith.constant dense<0.000000e+00> : vector<2x32xf32>
    %112 = tpu.matmul %110, %111, %cst_28 {dimension_numbers = #tpu.dot_dimension_numbers<[1], [0], [0], [1], [0, 0, 1, 1], [], []>} : vector<2x800xf32>, vector<800x32xf32>, vector<2x32xf32> -> vector<2x32xf32>
    %c0_29 = arith.constant 0 : index
    %c0_30 = arith.constant 0 : index
    %113 = vector.load %arg8[%c0_29, %c0_30] : memref<1x32xf32, #tpu.memory_space<vmem>>, vector<1x32xf32>
    %c0_31 = arith.constant 0 : index
    %c0_32 = arith.constant 0 : index
    %114 = vector.load %arg9[%c0_31, %c0_32] : memref<1x32xf32, #tpu.memory_space<vmem>>, vector<1x32xf32>
    %cst_33 = arith.constant dense<0.000000e+00> : vector<32xf32>
    %115 = vector.multi_reduction <add>, %112, %cst_33 [0] : vector<2x32xf32> to vector<32xf32>
    %116 = vector.shape_cast %115 : vector<32xf32> to vector<1x32xf32>
    %cst_34 = arith.constant 2.000000e+00 : f32
    %117 = vector.broadcast %cst_34 : f32 to vector<1x32xf32>
    %118 = arith.divf %116, %117 : vector<1x32xf32>
    %119 = vector.broadcast %118 : vector<1x32xf32> to vector<2x32xf32>
    %120 = arith.subf %112, %119 : vector<2x32xf32>
    %121 = arith.mulf %120, %120 : vector<2x32xf32>
    %cst_35 = arith.constant dense<0.000000e+00> : vector<32xf32>
    %122 = vector.multi_reduction <add>, %121, %cst_35 [0] : vector<2x32xf32> to vector<32xf32>
    %123 = vector.shape_cast %122 : vector<32xf32> to vector<1x32xf32>
    %cst_36 = arith.constant 2.000000e+00 : f32
    %124 = vector.broadcast %cst_36 : f32 to vector<1x32xf32>
    %125 = arith.divf %123, %124 : vector<1x32xf32>
    %cst_37 = arith.constant 9.99999974E-6 : f32
    %126 = vector.broadcast %cst_37 : f32 to vector<1x32xf32>
    %127 = arith.addf %125, %126 : vector<1x32xf32>
    %128 = math.rsqrt %127 : vector<1x32xf32>
    %129 = arith.mulf %113, %128 : vector<1x32xf32>
    %130 = vector.broadcast %129 : vector<1x32xf32> to vector<2x32xf32>
    %131 = arith.mulf %120, %130 : vector<2x32xf32>
    %132 = vector.broadcast %114 : vector<1x32xf32> to vector<2x32xf32>
    %133 = arith.addf %131, %132 : vector<2x32xf32>
    %cst_38 = arith.constant 0.000000e+00 : f32
    %134 = vector.broadcast %cst_38 : f32 to vector<2x32xf32>
    %135 = arith.maximumf %133, %134 : vector<2x32xf32>
    %c0_39 = arith.constant 0 : index
    %c0_40 = arith.constant 0 : index
    %136 = vector.load %arg10[%c0_39, %c0_40] : memref<32x32xf32, #tpu.memory_space<vmem>>, vector<32x32xf32>
    %cst_41 = arith.constant dense<0.000000e+00> : vector<2x32xf32>
    %137 = tpu.matmul %135, %136, %cst_41 {dimension_numbers = #tpu.dot_dimension_numbers<[1], [0], [0], [1], [0, 0, 1, 1], [], []>} : vector<2x32xf32>, vector<32x32xf32>, vector<2x32xf32> -> vector<2x32xf32>
    %c0_42 = arith.constant 0 : index
    %c0_43 = arith.constant 0 : index
    %138 = vector.load %arg11[%c0_42, %c0_43] : memref<1x32xf32, #tpu.memory_space<vmem>>, vector<1x32xf32>
    %139 = vector.broadcast %138 : vector<1x32xf32> to vector<2x32xf32>
    %140 = arith.addf %137, %139 : vector<2x32xf32>
    %141 = arith.mulf %140, %140 : vector<2x32xf32>
    %cst_44 = arith.constant dense<0.000000e+00> : vector<2xf32>
    %142 = vector.multi_reduction <add>, %141, %cst_44 [1] : vector<2x32xf32> to vector<2xf32>
    %143 = vector.shape_cast %142 : vector<2xf32> to vector<2x1xf32>
    %cst_45 = arith.constant 9.99999996E-13 : f32
    %144 = vector.broadcast %cst_45 : f32 to vector<2x1xf32>
    %145 = arith.addf %143, %144 : vector<2x1xf32>
    %146 = math.rsqrt %145 : vector<2x1xf32>
    %147 = vector.broadcast %146 : vector<2x1xf32> to vector<2x32xf32>
    %148 = arith.mulf %140, %147 : vector<2x32xf32>
    %c0_46 = arith.constant 0 : index
    %c0_47 = arith.constant 0 : index
    %149 = vector.load %arg12[%c0_46, %c0_47] : memref<32x64xf32, #tpu.memory_space<vmem>>, vector<32x64xf32>
    %cst_48 = arith.constant dense<0.000000e+00> : vector<2x64xf32>
    %150 = tpu.matmul %148, %149, %cst_48 {dimension_numbers = #tpu.dot_dimension_numbers<[1], [0], [0], [1], [0, 0, 1, 1], [], []>} : vector<2x32xf32>, vector<32x64xf32>, vector<2x64xf32> -> vector<2x64xf32>
    %c0_49 = arith.constant 0 : index
    %c0_50 = arith.constant 0 : index
    %151 = vector.load %arg13[%c0_49, %c0_50] : memref<1x64xf32, #tpu.memory_space<vmem>>, vector<1x64xf32>
    %152 = vector.broadcast %151 : vector<1x64xf32> to vector<2x64xf32>
    %153 = arith.addf %150, %152 : vector<2x64xf32>
    %cst_51 = arith.constant 0.000000e+00 : f32
    %154 = vector.broadcast %cst_51 : f32 to vector<2x64xf32>
    %155 = arith.maximumf %153, %154 : vector<2x64xf32>
    %c0_52 = arith.constant 0 : index
    %c0_53 = arith.constant 0 : index
    %156 = vector.load %arg14[%c0_52, %c0_53] : memref<64x64xf32, #tpu.memory_space<vmem>>, vector<64x64xf32>
    %cst_54 = arith.constant dense<0.000000e+00> : vector<2x64xf32>
    %157 = tpu.matmul %155, %156, %cst_54 {dimension_numbers = #tpu.dot_dimension_numbers<[1], [0], [0], [1], [0, 0, 1, 1], [], []>} : vector<2x64xf32>, vector<64x64xf32>, vector<2x64xf32> -> vector<2x64xf32>
    %c0_55 = arith.constant 0 : index
    %c0_56 = arith.constant 0 : index
    %158 = vector.load %arg15[%c0_55, %c0_56] : memref<1x64xf32, #tpu.memory_space<vmem>>, vector<1x64xf32>
    %159 = vector.broadcast %158 : vector<1x64xf32> to vector<2x64xf32>
    %160 = arith.addf %157, %159 : vector<2x64xf32>
    %cst_57 = arith.constant 0.000000e+00 : f32
    %161 = vector.broadcast %cst_57 : f32 to vector<2x64xf32>
    %162 = arith.maximumf %160, %161 : vector<2x64xf32>
    %c0_58 = arith.constant 0 : index
    %c0_59 = arith.constant 0 : index
    %163 = vector.load %arg16[%c0_58, %c0_59] : memref<64x4xf32, #tpu.memory_space<vmem>>, vector<64x4xf32>
    %cst_60 = arith.constant dense<0.000000e+00> : vector<2x4xf32>
    %164 = tpu.matmul %162, %163, %cst_60 {dimension_numbers = #tpu.dot_dimension_numbers<[1], [0], [0], [1], [0, 0, 1, 1], [], []>} : vector<2x64xf32>, vector<64x4xf32>, vector<2x4xf32> -> vector<2x4xf32>
    %c0_61 = arith.constant 0 : index
    %c0_62 = arith.constant 0 : index
    %165 = vector.load %arg17[%c0_61, %c0_62] : memref<1x4xf32, #tpu.memory_space<vmem>>, vector<1x4xf32>
    %166 = vector.broadcast %165 : vector<1x4xf32> to vector<2x4xf32>
    %167 = arith.addf %164, %166 : vector<2x4xf32>
    %c0_63 = arith.constant 0 : index
    %c0_64 = arith.constant 0 : index
    %168 = vector.load %arg18[%c0_63, %c0_64] : memref<2x4xf32, #tpu.memory_space<vmem>>, vector<2x4xf32>
    tpu.vector_store %arg18[%c0_63, %c0_64], %167 {strides = array<i32>} : memref<2x4xf32, #tpu.memory_space<vmem>>, vector<2x4xf32>,
    return
  }
}

</mosaic_0001>

<bundles_post_ra>
// kernel: dqn_forward.1
= control target key start
LH: loop header
LB: loop body
LE: loop exit
PB: predicated region body
PF: predicated region fallthrough
CT: control target
= control target key end

     0   :  { %s9937_s0 = inlined_call_operand.vmem [shape: f32[1792,128], index: 0, kind: input, shape index: {}]   ;;  %s9938_s1 = inlined_call_operand.vmem [shape: f32[128,16], index: 1, kind: input, shape index: {}]   ;;  %s9939_s2 = inlined_call_operand.vmem [shape: f32[1,16], index: 2, kind: input, shape index: {}]   ;;  %s9940_s3 = inlined_call_operand.vmem [shape: f32[1,16], index: 3, kind: input, shape index: {}]   ;;  %s9941_s4 = inlined_call_operand.vmem [shape: f32[400,32], index: 4, kind: input, shape index: {}]   ;;  %s9942_s5 = inlined_call_operand.vmem [shape: f32[1,32], index: 5, kind: input, shape index: {}]   ;;  %s9943_s6 = inlined_call_operand.vmem [shape: f32[1,32], index: 6, kind: input, shape index: {}]   ;;  %s9944_s7 = inlined_call_operand.vmem [shape: f32[800,32], index: 7, kind: input, shape index: {}]   ;;  %s9945_s8 = inlined_call_operand.vmem [shape: f32[1,32], index: 8, kind: input, shape index: {}]   ;;  %s9946_s9 = inlined_call_operand.vmem [shape: f32[1,32], index: 9, kind: input, shape index: {}]   ;;  %s9947_s10 = inlined_call_operand.vmem [shape: f32[32,32], index: 10, kind: input, shape index: {}]   ;;  %s9948_s11 = inlined_call_operand.vmem [shape: f32[1,32], index: 11, kind: input, shape index: {}]   ;;  %s9949_s12 = inlined_call_operand.vmem [shape: f32[32,64], index: 12, kind: input, shape index: {}]   ;;  %s9950_s13 = inlined_call_operand.vmem [shape: f32[1,64], index: 13, kind: input, shape index: {}]   ;;  %s9951_s14 = inlined_call_operand.vmem [shape: f32[64,64], index: 14, kind: input, shape index: {}]   ;;  %s9952_s15 = inlined_call_operand.vmem [shape: f32[1,64], index: 15, kind: input, shape index: {}]   ;;  %s9953_s16 = inlined_call_operand.vmem [shape: f32[64,4], index: 16, kind: input, shape index: {}]   ;;  %s9954_s17 = inlined_call_operand.vmem [shape: f32[1,4], index: 17, kind: input, shape index: {}]   ;;  %s9955_s18 = inlined_call_operand.hbm [shape: f32[2,4], index: 18, kind: output, shape index: {}]  }
   0x1   :  { %10023 = sst [smem:[#allocation147_spill]] %s9937_s0 }
   0x2   :  { %10024 = sst [smem:[#allocation148_spill]] %s9938_s1 }
   0x3   :  { %10025 = sst [smem:[#allocation149_spill]] %s9939_s2 }
   0x4   :  { %s10026_s29 = sld [smem:[#allocation148_spill]]  ;;  %s10027_s27 = sld [smem:[#allocation147_spill]] }
   0xa   :  { %v284_v0 = vld [vmem:[%s10026_s29] sm:$0xff]  ;;  %v285_v1 = vld [vmem:[%s10026_s29 + $0x8] sm:$0xff]  ;;  %v286_v2 = vld [vmem:[%s10026_s29 + $0x10] sm:$0xff] }
   0xb   :  { %v5218_v3 = vpack.c.bf16 %v285_v1, %v284_v0  ;;  %v287_v4 = vld [vmem:[%s10026_s29 + $0x18] sm:$0xff]  ;;  %v288_v6 = vld [vmem:[%s10026_s29 + $0x20] sm:$0xff]  ;;  %v289_v7 = vld [vmem:[%s10026_s29 + $0x28] sm:$0xff] }
   0xc   :  { %v5222_v5 = vpack.c.bf16 %v287_v4, %v286_v2  ;;  %v5226_v8 = vpack.c.bf16 %v289_v7, %v288_v6  ;;  %v60_v9 = vld [vmem:[%s10027_s27] sm:$0xff]  ;;  %v290_v10 = vld [vmem:[%s10026_s29 + $0x30] sm:$0xff]  ;;  %v291_v11 = vld [vmem:[%s10026_s29 + $0x38] sm:$0xff] }
   0xd   :  { %5219 = vmatprep.subr.bf16.mxu0 %v5218_v3  ;;  %5447 = vmatprep.subr.bf16.mxu1 %v5218_v3  ;;  %v5230_v12 = vpack.c.bf16 %v291_v11, %v290_v10  ;;  %v292_v13 = vld [vmem:[%s10026_s29 + $0x40] sm:$0xff]  ;;  %v293_v14 = vld [vmem:[%s10026_s29 + $0x48] sm:$0xff]  ;;  %v294_v16 = vld [vmem:[%s10026_s29 + $0x50] sm:$0xff] }
   0xe   :  { %5221 = vmatpush3.bf16.msra.mxu0 %v5218_v3  ;;  %5455 = vmatpush3.bf16.msra.mxu1 %v5218_v3  ;;  %v5234_v15 = vpack.c.bf16 %v293_v14, %v292_v13  ;;  %v295_v17 = vld [vmem:[%s10026_s29 + $0x58] sm:$0xff]  ;;  %v296_v19 = vld [vmem:[%s10026_s29 + $0x60] sm:$0xff]  ;;  %v297_v20 = vld [vmem:[%s10026_s29 + $0x68] sm:$0xff] }
   0xf   :  { %5223 = vmatprep.subr.bf16.mxu0 %v5222_v5  ;;  %5448 = vmatprep.subr.bf16.mxu1 %v5222_v5  ;;  %v5238_v18 = vpack.c.bf16 %v295_v17, %v294_v16  ;;  %v5242_v21 = vpack.c.bf16 %v297_v20, %v296_v19  ;;  %v298_v22 = vld [vmem:[%s10026_s29 + $0x70] sm:$0xff]  ;;  %v299_v23 = vld [vmem:[%s10026_s29 + $0x78] sm:$0xff]  ;;  %v220_v25 = vld [vmem:[%s10027_s27 + $0x500] sm:$0xff] }
  0x10   :  { %4811 = vmatprep.mubr.f32.mxu0 %v60_v9  ;;  %v5246_v24 = vpack.c.bf16 %v299_v23, %v298_v22 }
  0x12   :  { %5225 = vmatpush3.bf16.msra.mxu0 %v5222_v5  ;;  %5456 = vmatpush3.bf16.msra.mxu1 %v5222_v5 }
  0x13   :  { %5227 = vmatprep.subr.bf16.mxu0 %v5226_v8  ;;  %5449 = vmatprep.subr.bf16.mxu1 %v5226_v8 }
  0x16   :  { %5229 = vmatpush3.bf16.msra.mxu0 %v5226_v8  ;;  %5457 = vmatpush3.bf16.msra.mxu1 %v5226_v8 }
  0x17   :  { %5231 = vmatprep.subr.bf16.mxu0 %v5230_v12  ;;  %5450 = vmatprep.subr.bf16.mxu1 %v5230_v12 }
  0x1a   :  { %5233 = vmatpush3.bf16.msra.mxu0 %v5230_v12  ;;  %5458 = vmatpush3.bf16.msra.mxu1 %v5230_v12 }
  0x1b   :  { %5235 = vmatprep.subr.bf16.mxu0 %v5234_v15  ;;  %5451 = vmatprep.subr.bf16.mxu1 %v5234_v15 }
  0x1e   :  { %5237 = vmatpush3.bf16.msra.mxu0 %v5234_v15  ;;  %5459 = vmatpush3.bf16.msra.mxu1 %v5234_v15 }
  0x1f   :  { %5239 = vmatprep.subr.bf16.mxu0 %v5238_v18  ;;  %5452 = vmatprep.subr.bf16.mxu1 %v5238_v18 }
  0x22   :  { %5241 = vmatpush3.bf16.msra.mxu0 %v5238_v18  ;;  %5460 = vmatpush3.bf16.msra.mxu1 %v5238_v18 }
  0x23   :  { %5243 = vmatprep.subr.bf16.mxu0 %v5242_v21  ;;  %5453 = vmatprep.subr.bf16.mxu1 %v5242_v21 }
  0x24   :  { %23 = vsyncpa [#allocation3], 0  ;;  %5051 = vmatprep.mubr.f32.mxu1 %v220_v25  ;;  %v61_v26 = vld [vmem:[%s10027_s27 + $0x8] sm:$0xff]  ;;  %v62_v28 = vld [vmem:[%s10027_s27 + $0x10] sm:$0xff]  ;;  %vm1485_vm0 = vcmask 130048   ;;  %s10136_s21 = sld [smem:[#allocation149_spill]] }
  0x25   :  { %v221_v27 = vld [vmem:[%s10027_s27 + $0x508] sm:$0xff]  ;;  %v222_v29 = vld [vmem:[%s10027_s27 + $0x510] sm:$0xff]  ;;  %v63_v30 = vld [vmem:[%s10027_s27 + $0x18] sm:$0xff]  ;;  %s5902_s23 = smov 32   ;;  %s5903_s24 = smov 112   ;;  %vm2736_vm1 = vcmask 261120  }
  0x26   :  { %5245 = vmatpush3.bf16.msra.mxu0 %v5242_v21  ;;  %5461 = vmatpush3.bf16.msra.mxu1 %v5242_v21  ;;  %v223_v31 = vld [vmem:[%s10027_s27 + $0x518] sm:$0xff]  ;;  %v64_v32 = vld [vmem:[%s10027_s27 + $0x20] sm:$0xff]  ;;  %v65_v34 = vld [vmem:[%s10027_s27 + $0x28] sm:$0xff]  ;;  %s5904_s2 = smov 48   ;;  %s5905_s29 = smov 64   ;;  %vm2744_vm2 = vcmask 392192  }
  0x27   :  { %5247 = vmatprep.subr.bf16.mxu0 %v5246_v24  ;;  %5454 = vmatprep.subr.bf16.mxu1 %v5246_v24  ;;  %v224_v33 = vld [vmem:[%s10027_s27 + $0x520] sm:$0xff]  ;;  %v225_v35 = vld [vmem:[%s10027_s27 + $0x528] sm:$0xff]  ;;  %v66_v36 = vld [vmem:[%s10027_s27 + $0x30] sm:$0xff]  ;;  %vm2752_vm3 = vcmask 523264   ;;  %vm2760_vm4 = vcmask 654336   ;;  %vm2768_vm5 = vcmask 785408  }
  0x28   :  { %v226_v37 = vld [vmem:[%s10027_s27 + $0x530] sm:$0xff]  ;;  %v67_v38 = vld [vmem:[%s10027_s27 + $0x38] sm:$0xff]  ;;  %v68_v40 = vld [vmem:[%s10027_s27 + $0x40] sm:$0xff]  ;;  %vm2776_vm6 = vcmask 916480   ;;  %vm3362_vm7 = vcmask 254976   ;;  %vm5909_vm8 = vmmov 0  }
  0x29   :  { %v227_v39 = vld [vmem:[%s10027_s27 + $0x538] sm:$0xff]  ;;  %v228_v41 = vld [vmem:[%s10027_s27 + $0x540] sm:$0xff]  ;;  %v69_v42 = vld [vmem:[%s10027_s27 + $0x48] sm:$0xff]  ;;  %vm4314_vm9 = vcmask 25600  }
  0x2a   :  { %5249 = vmatpush3.bf16.msra.mxu0 %v5246_v24  ;;  %5462 = vmatpush3.bf16.msra.mxu1 %v5246_v24  ;;  %v229_v43 = vld [vmem:[%s10027_s27 + $0x548] sm:$0xff]  ;;  %v70_v44 = vld [vmem:[%s10027_s27 + $0x50] sm:$0xff]  ;;  %v71_v46 = vld [vmem:[%s10027_s27 + $0x58] sm:$0xff] }
  0x2b   :  { %v230_v45 = vld [vmem:[%s10027_s27 + $0x550] sm:$0xff]  ;;  %v231_v47 = vld [vmem:[%s10027_s27 + $0x558] sm:$0xff]  ;;  %v72_v48 = vld [vmem:[%s10027_s27 + $0x60] sm:$0xff] }
  0x2c   :  { %v232_v49 = vld [vmem:[%s10027_s27 + $0x560] sm:$0xff]  ;;  %v73_v50 = vld [vmem:[%s10027_s27 + $0x68] sm:$0xff]  ;;  %v74_v52 = vld [vmem:[%s10027_s27 + $0x70] sm:$0xff] }
  0x2d   :  { %4812 = vmatmul.mubr.f32.vlgmr.msra.gmra.mrb[0].mxu0 %v61_v26  ;;  %5052 = vmatmul.mubr.f32.vlgmr.msra.gmra.mrb[0].mxu1 %v221_v27  ;;  %v233_v51 = vld [vmem:[%s10027_s27 + $0x568] sm:$0xff]  ;;  %v234_v53 = vld [vmem:[%s10027_s27 + $0x570] sm:$0xff]  ;;  %v75_v54 = vld [vmem:[%s10027_s27 + $0x78] sm:$0xff] }
  0x2e   :  { %4814 = vmatprep.mubr.f32.mxu0 %v62_v28  ;;  %5054 = vmatprep.mubr.f32.mxu1 %v222_v29  ;;  %v235_v55 = vld [vmem:[%s10027_s27 + $0x578] sm:$0xff]  ;;  %v76_v56 = vld [vmem:[%s10027_s27 + $0x80] sm:$0xff]  ;;  %v77_v58 = vld [vmem:[%s10027_s27 + $0x88] sm:$0xff] }
  0x2f   :  { %v236_v57 = vld [vmem:[%s10027_s27 + $0x580] sm:$0xff]  ;;  %v237_v59 = vld [vmem:[%s10027_s27 + $0x588] sm:$0xff]  ;;  %v78_v60 = vld [vmem:[%s10027_s27 + $0x90] sm:$0xff] }
  0x30   :  { %v238_v61 = vld [vmem:[%s10027_s27 + $0x590] sm:$0xff]  ;;  %v79_v62 = vld [vmem:[%s10027_s27 + $0x98] sm:$0xff]  ;;  %v80_v0 = vld [vmem:[%s10027_s27 + $0xa0] sm:$0xff] }
  0x31   :  { %4815 = vmatmul.mubr.f32.gmra.mrb[2].mxu0 %v63_v30  ;;  %5055 = vmatmul.mubr.f32.gmra.mrb[2].mxu1 %v223_v31  ;;  %v239_v63 = vld [vmem:[%s10027_s27 + $0x598] sm:$0xff]  ;;  %v240_v1 = vld [vmem:[%s10027_s27 + $0x5a0] sm:$0xff]  ;;  %v81_v2 = vld [vmem:[%s10027_s27 + $0xa8] sm:$0xff] }
  0x32   :  { %4817 = vmatprep.mubr.f32.mxu0 %v64_v32  ;;  %5057 = vmatprep.mubr.f32.mxu1 %v224_v33  ;;  %v241_v3 = vld [vmem:[%s10027_s27 + $0x5a8] sm:$0xff]  ;;  %v82_v4 = vld [vmem:[%s10027_s27 + $0xb0] sm:$0xff]  ;;  %v83_v6 = vld [vmem:[%s10027_s27 + $0xb8] sm:$0xff] }
  0x33   :  { %v242_v5 = vld [vmem:[%s10027_s27 + $0x5b0] sm:$0xff]  ;;  %v243_v7 = vld [vmem:[%s10027_s27 + $0x5b8] sm:$0xff]  ;;  %v84_v8 = vld [vmem:[%s10027_s27 + $0xc0] sm:$0xff] }
  0x34   :  { %v244_v9 = vld [vmem:[%s10027_s27 + $0x5c0] sm:$0xff]  ;;  %v85_v10 = vld [vmem:[%s10027_s27 + $0xc8] sm:$0xff]  ;;  %v86_v12 = vld [vmem:[%s10027_s27 + $0xd0] sm:$0xff] }
  0x35   :  { %4818 = vmatmul.mubr.f32.gmra.mrb[4].mxu0 %v65_v34  ;;  %5058 = vmatmul.mubr.f32.gmra.mrb[4].mxu1 %v225_v35  ;;  %v245_v11 = vld [vmem:[%s10027_s27 + $0x5c8] sm:$0xff]  ;;  %v246_v13 = vld [vmem:[%s10027_s27 + $0x5d0] sm:$0xff]  ;;  %v87_v14 = vld [vmem:[%s10027_s27 + $0xd8] sm:$0xff] }
  0x36   :  { %4820 = vmatprep.mubr.f32.mxu0 %v66_v36  ;;  %5060 = vmatprep.mubr.f32.mxu1 %v226_v37  ;;  %v247_v15 = vld [vmem:[%s10027_s27 + $0x5d8] sm:$0xff]  ;;  %v88_v16 = vld [vmem:[%s10027_s27 + $0xe0] sm:$0xff]  ;;  %v89_v18 = vld [vmem:[%s10027_s27 + $0xe8] sm:$0xff] }
  0x37   :  { %v248_v17 = vld [vmem:[%s10027_s27 + $0x5e0] sm:$0xff]  ;;  %v249_v19 = vld [vmem:[%s10027_s27 + $0x5e8] sm:$0xff]  ;;  %v90_v20 = vld [vmem:[%s10027_s27 + $0xf0] sm:$0xff] }
  0x38   :  { %v250_v21 = vld [vmem:[%s10027_s27 + $0x5f0] sm:$0xff]  ;;  %v91_v22 = vld [vmem:[%s10027_s27 + $0xf8] sm:$0xff]  ;;  %v92_v24 = vld [vmem:[%s10027_s27 + $0x100] sm:$0xff] }
  0x39   :  { %4821 = vmatmul.mubr.f32.gmra.mrb[6].mxu0 %v67_v38  ;;  %5061 = vmatmul.mubr.f32.gmra.mrb[6].mxu1 %v227_v39  ;;  %v251_v23 = vld [vmem:[%s10027_s27 + $0x5f8] sm:$0xff]  ;;  %v252_v25 = vld [vmem:[%s10027_s27 + $0x600] sm:$0xff]  ;;  %v93_v26 = vld [vmem:[%s10027_s27 + $0x108] sm:$0xff] }
  0x3a   :  { %4823 = vmatprep.mubr.f32.mxu0 %v68_v40  ;;  %5063 = vmatprep.mubr.f32.mxu1 %v228_v41  ;;  %v253_v27 = vld [vmem:[%s10027_s27 + $0x608] sm:$0xff]  ;;  %v94_v28 = vld [vmem:[%s10027_s27 + $0x110] sm:$0xff]  ;;  %v95_v30 = vld [vmem:[%s10027_s27 + $0x118] sm:$0xff] }
  0x3b   :  { %v254_v29 = vld [vmem:[%s10027_s27 + $0x610] sm:$0xff]  ;;  %v255_v31 = vld [vmem:[%s10027_s27 + $0x618] sm:$0xff]  ;;  %v96_v32 = vld [vmem:[%s10027_s27 + $0x120] sm:$0xff] }
  0x3c   :  { %v256_v33 = vld [vmem:[%s10027_s27 + $0x620] sm:$0xff]  ;;  %v97_v34 = vld [vmem:[%s10027_s27 + $0x128] sm:$0xff]  ;;  %v98_v36 = vld [vmem:[%s10027_s27 + $0x130] sm:$0xff] }
  0x3d   :  { %4824 = vmatmul.mubr.f32.gmra.mrb[8].mxu0 %v69_v42  ;;  %5064 = vmatmul.mubr.f32.gmra.mrb[8].mxu1 %v229_v43  ;;  %v257_v35 = vld [vmem:[%s10027_s27 + $0x628] sm:$0xff]  ;;  %v258_v37 = vld [vmem:[%s10027_s27 + $0x630] sm:$0xff]  ;;  %v99_v38 = vld [vmem:[%s10027_s27 + $0x138] sm:$0xff] }
  0x3e   :  { %4826 = vmatprep.mubr.f32.mxu0 %v70_v44  ;;  %5066 = vmatprep.mubr.f32.mxu1 %v230_v45  ;;  %v259_v39 = vld [vmem:[%s10027_s27 + $0x638] sm:$0xff]  ;;  %v100_v40 = vld [vmem:[%s10027_s27 + $0x140] sm:$0xff]  ;;  %v101_v42 = vld [vmem:[%s10027_s27 + $0x148] sm:$0xff] }
  0x3f   :  { %v260_v41 = vld [vmem:[%s10027_s27 + $0x640] sm:$0xff]  ;;  %v261_v43 = vld [vmem:[%s10027_s27 + $0x648] sm:$0xff]  ;;  %v102_v44 = vld [vmem:[%s10027_s27 + $0x150] sm:$0xff] }
  0x40   :  { %v262_v45 = vld [vmem:[%s10027_s27 + $0x650] sm:$0xff] }
  0x41   :  { %4827 = vmatmul.mubr.f32.gmra.mrb[10].mxu0 %v71_v46  ;;  %5067 = vmatmul.mubr.f32.gmra.mrb[10].mxu1 %v231_v47  ;;  %v103_v46 = vld [vmem:[%s10027_s27 + $0x158] sm:$0xff] }
  0x42   :  { %4829 = vmatprep.mubr.f32.mxu0 %v72_v48  ;;  %5069 = vmatprep.mubr.f32.mxu1 %v232_v49  ;;  %v263_v47 = vld [vmem:[%s10027_s27 + $0x658] sm:$0xff]  ;;  %v104_v48 = vld [vmem:[%s10027_s27 + $0x160] sm:$0xff] }
  0x43   :  { %v264_v49 = vld [vmem:[%s10027_s27 + $0x660] sm:$0xff] }
  0x45   :  { %4830 = vmatmul.mubr.f32.gmra.mrb[12].mxu0 %v73_v50  ;;  %5070 = vmatmul.mubr.f32.gmra.mrb[12].mxu1 %v233_v51  ;;  %v105_v50 = vld [vmem:[%s10027_s27 + $0x168] sm:$0xff] }
  0x46   :  { %4832 = vmatprep.mubr.f32.mxu0 %v74_v52  ;;  %5072 = vmatprep.mubr.f32.mxu1 %v234_v53  ;;  %v265_v51 = vld [vmem:[%s10027_s27 + $0x668] sm:$0xff]  ;;  %v106_v52 = vld [vmem:[%s10027_s27 + $0x170] sm:$0xff] }
  0x47   :  { %v266_v53 = vld [vmem:[%s10027_s27 + $0x670] sm:$0xff] }
  0x49   :  { %4833 = vmatmul.mubr.f32.gmra.mrb[14].mxu0 %v75_v54  ;;  %5073 = vmatmul.mubr.f32.gmra.mrb[14].mxu1 %v235_v55  ;;  %v107_v54 = vld [vmem:[%s10027_s27 + $0x178] sm:$0xff] }
  0x4a   :  { %4835 = vmatprep.mubr.f32.mxu0 %v76_v56  ;;  %5075 = vmatprep.mubr.f32.mxu1 %v236_v57  ;;  %v267_v55 = vld [vmem:[%s10027_s27 + $0x678] sm:$0xff]  ;;  %v108_v56 = vld [vmem:[%s10027_s27 + $0x180] sm:$0xff] }
  0x4b   :  { %v268_v57 = vld [vmem:[%s10027_s27 + $0x680] sm:$0xff] }
  0x4d   :  { %4836 = vmatmul.mubr.f32.gmra.mrb[16].mxu0 %v77_v58  ;;  %5076 = vmatmul.mubr.f32.gmra.mrb[16].mxu1 %v237_v59  ;;  %v109_v58 = vld [vmem:[%s10027_s27 + $0x188] sm:$0xff] }
  0x4e   :  { %4838 = vmatprep.mubr.f32.mxu0 %v78_v60  ;;  %5078 = vmatprep.mubr.f32.mxu1 %v238_v61  ;;  %v269_v59 = vld [vmem:[%s10027_s27 + $0x688] sm:$0xff]  ;;  %v110_v60 = vld [vmem:[%s10027_s27 + $0x190] sm:$0xff] }
  0x4f   :  { %v270_v61 = vld [vmem:[%s10027_s27 + $0x690] sm:$0xff] }
  0x51   :  { %4839 = vmatmul.mubr.f32.gmra.mrb[18].mxu0 %v79_v62  ;;  %5079 = vmatmul.mubr.f32.gmra.mrb[18].mxu1 %v239_v63  ;;  %v111_v62 = vld [vmem:[%s10027_s27 + $0x198] sm:$0xff] }
  0x52   :  { %4841 = vmatprep.mubr.f32.mxu0 %v80_v0  ;;  %5081 = vmatprep.mubr.f32.mxu1 %v240_v1  ;;  %v271_v63 = vld [vmem:[%s10027_s27 + $0x698] sm:$0xff]  ;;  %v112_v0 = vld [vmem:[%s10027_s27 + $0x1a0] sm:$0xff] }
  0x53   :  { %v272_v1 = vld [vmem:[%s10027_s27 + $0x6a0] sm:$0xff] }
  0x55   :  { %4842 = vmatmul.mubr.f32.gmra.mrb[20].mxu0 %v81_v2  ;;  %5082 = vmatmul.mubr.f32.gmra.mrb[20].mxu1 %v241_v3  ;;  %v113_v2 = vld [vmem:[%s10027_s27 + $0x1a8] sm:$0xff] }
  0x56   :  { %4844 = vmatprep.mubr.f32.mxu0 %v82_v4  ;;  %5084 = vmatprep.mubr.f32.mxu1 %v242_v5  ;;  %v273_v3 = vld [vmem:[%s10027_s27 + $0x6a8] sm:$0xff]  ;;  %v114_v4 = vld [vmem:[%s10027_s27 + $0x1b0] sm:$0xff] }
  0x57   :  { %v274_v5 = vld [vmem:[%s10027_s27 + $0x6b0] sm:$0xff] }
  0x59   :  { %4845 = vmatmul.mubr.f32.gmra.mrb[22].mxu0 %v83_v6  ;;  %5085 = vmatmul.mubr.f32.gmra.mrb[22].mxu1 %v243_v7  ;;  %v115_v6 = vld [vmem:[%s10027_s27 + $0x1b8] sm:$0xff] }
  0x5a   :  { %4847 = vmatprep.mubr.f32.mxu0 %v84_v8  ;;  %5087 = vmatprep.mubr.f32.mxu1 %v244_v9  ;;  %v275_v7 = vld [vmem:[%s10027_s27 + $0x6b8] sm:$0xff]  ;;  %v116_v8 = vld [vmem:[%s10027_s27 + $0x1c0] sm:$0xff] }
  0x5b   :  { %v276_v9 = vld [vmem:[%s10027_s27 + $0x6c0] sm:$0xff] }
  0x5d   :  { %4848 = vmatmul.mubr.f32.gmra.mrb[24].mxu0 %v85_v10  ;;  %5088 = vmatmul.mubr.f32.gmra.mrb[24].mxu1 %v245_v11  ;;  %v117_v10 = vld [vmem:[%s10027_s27 + $0x1c8] sm:$0xff] }
  0x5e   :  { %4850 = vmatprep.mubr.f32.mxu0 %v86_v12  ;;  %5090 = vmatprep.mubr.f32.mxu1 %v246_v13  ;;  %v277_v11 = vld [vmem:[%s10027_s27 + $0x6c8] sm:$0xff]  ;;  %v118_v12 = vld [vmem:[%s10027_s27 + $0x1d0] sm:$0xff] }
  0x5f   :  { %v278_v13 = vld [vmem:[%s10027_s27 + $0x6d0] sm:$0xff] }
  0x61   :  { %4851 = vmatmul.mubr.f32.gmra.mrb[26].mxu0 %v87_v14  ;;  %5091 = vmatmul.mubr.f32.gmra.mrb[26].mxu1 %v247_v15  ;;  %v119_v14 = vld [vmem:[%s10027_s27 + $0x1d8] sm:$0xff] }
  0x62   :  { %4853 = vmatprep.mubr.f32.mxu0 %v88_v16  ;;  %5093 = vmatprep.mubr.f32.mxu1 %v248_v17  ;;  %v279_v15 = vld [vmem:[%s10027_s27 + $0x6d8] sm:$0xff]  ;;  %v120_v16 = vld [vmem:[%s10027_s27 + $0x1e0] sm:$0xff] }
  0x63   :  { %v280_v17 = vld [vmem:[%s10027_s27 + $0x6e0] sm:$0xff] }
  0x65   :  { %4854 = vmatmul.mubr.f32.gmra.mrb[28].mxu0 %v89_v18  ;;  %5094 = vmatmul.mubr.f32.gmra.mrb[28].mxu1 %v249_v19  ;;  %v121_v18 = vld [vmem:[%s10027_s27 + $0x1e8] sm:$0xff] }
  0x66   :  { %4856 = vmatprep.mubr.f32.mxu0 %v90_v20  ;;  %5096 = vmatprep.mubr.f32.mxu1 %v250_v21  ;;  %v281_v19 = vld [vmem:[%s10027_s27 + $0x6e8] sm:$0xff]  ;;  %v122_v20 = vld [vmem:[%s10027_s27 + $0x1f0] sm:$0xff] }
  0x67   :  { %v282_v21 = vld [vmem:[%s10027_s27 + $0x6f0] sm:$0xff] }
  0x69   :  { %4857 = vmatmul.mubr.f32.gmra.mrb[30].mxu0 %v91_v22  ;;  %5097 = vmatmul.mubr.f32.gmra.mrb[30].mxu1 %v251_v23  ;;  %v123_v22 = vld [vmem:[%s10027_s27 + $0x1f8] sm:$0xff] }
  0x6a   :  { %4859 = vmatprep.mubr.f32.mxu0 %v92_v24  ;;  %5099 = vmatprep.mubr.f32.mxu1 %v252_v25  ;;  %v283_v23 = vld [vmem:[%s10027_s27 + $0x6f8] sm:$0xff]  ;;  %v124_v24 = vld [vmem:[%s10027_s27 + $0x200] sm:$0xff]  ;;  %v125_v25 = vld [vmem:[%s10027_s27 + $0x208] sm:$0xff] }
  0x6d   :  { %4860 = vmatmul.mubr.f32.gmra.mrb[32].mxu0 %v93_v26  ;;  %5100 = vmatmul.mubr.f32.gmra.mrb[32].mxu1 %v253_v27  ;;  %v126_v26 = vld [vmem:[%s10027_s27 + $0x210] sm:$0xff]  ;;  %v127_v27 = vld [vmem:[%s10027_s27 + $0x218] sm:$0xff] }
  0x6e   :  { %4862 = vmatprep.mubr.f32.mxu0 %v94_v28  ;;  %5102 = vmatprep.mubr.f32.mxu1 %v254_v29  ;;  %v128_v28 = vld [vmem:[%s10027_s27 + $0x220] sm:$0xff]  ;;  %v129_v29 = vld [vmem:[%s10027_s27 + $0x228] sm:$0xff] }
  0x71   :  { %4863 = vmatmul.mubr.f32.gmra.mrb[34].mxu0 %v95_v30  ;;  %5103 = vmatmul.mubr.f32.gmra.mrb[34].mxu1 %v255_v31  ;;  %v130_v30 = vld [vmem:[%s10027_s27 + $0x230] sm:$0xff]  ;;  %v131_v31 = vld [vmem:[%s10027_s27 + $0x238] sm:$0xff] }
  0x72   :  { %4865 = vmatprep.mubr.f32.mxu0 %v96_v32  ;;  %5105 = vmatprep.mubr.f32.mxu1 %v256_v33  ;;  %v132_v32 = vld [vmem:[%s10027_s27 + $0x240] sm:$0xff]  ;;  %v133_v33 = vld [vmem:[%s10027_s27 + $0x248] sm:$0xff] }
  0x75   :  { %4866 = vmatmul.mubr.f32.gmra.mrb[36].mxu0 %v97_v34  ;;  %5106 = vmatmul.mubr.f32.gmra.mrb[36].mxu1 %v257_v35  ;;  %v134_v34 = vld [vmem:[%s10027_s27 + $0x250] sm:$0xff]  ;;  %v135_v35 = vld [vmem:[%s10027_s27 + $0x258] sm:$0xff] }
  0x76   :  { %4868 = vmatprep.mubr.f32.mxu0 %v98_v36  ;;  %5108 = vmatprep.mubr.f32.mxu1 %v258_v37  ;;  %v136_v36 = vld [vmem:[%s10027_s27 + $0x260] sm:$0xff]  ;;  %v137_v37 = vld [vmem:[%s10027_s27 + $0x268] sm:$0xff] }
  0x79   :  { %4869 = vmatmul.mubr.f32.gmra.mrb[38].mxu0 %v99_v38  ;;  %5109 = vmatmul.mubr.f32.gmra.mrb[38].mxu1 %v259_v39  ;;  %v138_v38 = vld [vmem:[%s10027_s27 + $0x270] sm:$0xff]  ;;  %v139_v39 = vld [vmem:[%s10027_s27 + $0x278] sm:$0xff] }
  0x7a   :  { %4871 = vmatprep.mubr.f32.mxu0 %v100_v40  ;;  %5111 = vmatprep.mubr.f32.mxu1 %v260_v41  ;;  %v140_v40 = vld [vmem:[%s10027_s27 + $0x280] sm:$0xff]  ;;  %v141_v41 = vld [vmem:[%s10027_s27 + $0x288] sm:$0xff] }
  0x7d   :  { %4872 = vmatmul.mubr.f32.gmra.mrb[40].mxu0 %v101_v42  ;;  %5112 = vmatmul.mubr.f32.gmra.mrb[40].mxu1 %v261_v43  ;;  %v142_v42 = vld [vmem:[%s10027_s27 + $0x290] sm:$0xff]  ;;  %v143_v43 = vld [vmem:[%s10027_s27 + $0x298] sm:$0xff] }
  0x7e   :  { %4874 = vmatprep.mubr.f32.mxu0 %v102_v44  ;;  %5114 = vmatprep.mubr.f32.mxu1 %v262_v45  ;;  %v144_v44 = vld [vmem:[%s10027_s27 + $0x2a0] sm:$0xff]  ;;  %v145_v45 = vld [vmem:[%s10027_s27 + $0x2a8] sm:$0xff] }
  0x81   :  { %4875 = vmatmul.mubr.f32.gmra.mrb[42].mxu0 %v103_v46  ;;  %5115 = vmatmul.mubr.f32.gmra.mrb[42].mxu1 %v263_v47  ;;  %v146_v46 = vld [vmem:[%s10027_s27 + $0x2b0] sm:$0xff]  ;;  %v147_v47 = vld [vmem:[%s10027_s27 + $0x2b8] sm:$0xff] }
  0x82   :  { %4877 = vmatprep.mubr.f32.mxu0 %v104_v48  ;;  %5117 = vmatprep.mubr.f32.mxu1 %v264_v49  ;;  %v148_v48 = vld [vmem:[%s10027_s27 + $0x2c0] sm:$0xff]  ;;  %v149_v49 = vld [vmem:[%s10027_s27 + $0x2c8] sm:$0xff] }
  0x85   :  { %4878 = vmatmul.mubr.f32.gmra.mrb[44].mxu0 %v105_v50  ;;  %5118 = vmatmul.mubr.f32.gmra.mrb[44].mxu1 %v265_v51  ;;  %v150_v50 = vld [vmem:[%s10027_s27 + $0x2d0] sm:$0xff]  ;;  %v151_v51 = vld [vmem:[%s10027_s27 + $0x2d8] sm:$0xff] }
  0x86   :  { %4880 = vmatprep.mubr.f32.mxu0 %v106_v52  ;;  %5120 = vmatprep.mubr.f32.mxu1 %v266_v53  ;;  %v152_v52 = vld [vmem:[%s10027_s27 + $0x2e0] sm:$0xff]  ;;  %v153_v53 = vld [vmem:[%s10027_s27 + $0x2e8] sm:$0xff] }
  0x89   :  { %4881 = vmatmul.mubr.f32.gmra.mrb[46].mxu0 %v107_v54  ;;  %5121 = vmatmul.mubr.f32.gmra.mrb[46].mxu1 %v267_v55  ;;  %v154_v54 = vld [vmem:[%s10027_s27 + $0x2f0] sm:$0xff]  ;;  %v155_v55 = vld [vmem:[%s10027_s27 + $0x2f8] sm:$0xff] }
  0x8a   :  { %4883 = vmatprep.mubr.f32.mxu0 %v108_v56  ;;  %5123 = vmatprep.mubr.f32.mxu1 %v268_v57  ;;  %v156_v56 = vld [vmem:[%s10027_s27 + $0x300] sm:$0xff]  ;;  %v157_v57 = vld [vmem:[%s10027_s27 + $0x308] sm:$0xff] }
  0x8d   :  { %4884 = vmatmul.mubr.f32.gmra.mrb[48].mxu0 %v109_v58  ;;  %5124 = vmatmul.mubr.f32.gmra.mrb[48].mxu1 %v269_v59  ;;  %v158_v58 = vld [vmem:[%s10027_s27 + $0x310] sm:$0xff]  ;;  %v159_v59 = vld [vmem:[%s10027_s27 + $0x318] sm:$0xff] }
  0x8e   :  { %4886 = vmatprep.mubr.f32.mxu0 %v110_v60  ;;  %5126 = vmatprep.mubr.f32.mxu1 %v270_v61  ;;  %v160_v60 = vld [vmem:[%s10027_s27 + $0x320] sm:$0xff]  ;;  %v161_v61 = vld [vmem:[%s10027_s27 + $0x328] sm:$0xff] }
  0x91   :  { %4887 = vmatmul.mubr.f32.gmra.mrb[50].mxu0 %v111_v62  ;;  %5127 = vmatmul.mubr.f32.gmra.mrb[50].mxu1 %v271_v63  ;;  %v162_v62 = vld [vmem:[%s10027_s27 + $0x330] sm:$0xff]  ;;  %v163_v63 = vld [vmem:[%s10027_s27 + $0x338] sm:$0xff] }
  0x92   :  { %4889 = vmatprep.mubr.f32.mxu0 %v112_v0  ;;  %5129 = vmatprep.mubr.f32.mxu1 %v272_v1  ;;  %v164_v0 = vld [vmem:[%s10027_s27 + $0x340] sm:$0xff]  ;;  %v165_v1 = vld [vmem:[%s10027_s27 + $0x348] sm:$0xff] }
  0x95   :  { %4890 = vmatmul.mubr.f32.gmra.mrb[52].mxu0 %v113_v2  ;;  %5130 = vmatmul.mubr.f32.gmra.mrb[52].mxu1 %v273_v3  ;;  %v166_v2 = vld [vmem:[%s10027_s27 + $0x350] sm:$0xff]  ;;  %v167_v3 = vld [vmem:[%s10027_s27 + $0x358] sm:$0xff] }
  0x96   :  { %4892 = vmatprep.mubr.f32.mxu0 %v114_v4  ;;  %5132 = vmatprep.mubr.f32.mxu1 %v274_v5  ;;  %v168_v4 = vld [vmem:[%s10027_s27 + $0x360] sm:$0xff] }
  0x99   :  { %4893 = vmatmul.mubr.f32.gmra.mrb[54].mxu0 %v115_v6  ;;  %5133 = vmatmul.mubr.f32.gmra.mrb[54].mxu1 %v275_v7 }
  0x9a   :  { %4895 = vmatprep.mubr.f32.mxu0 %v116_v8  ;;  %5135 = vmatprep.mubr.f32.mxu1 %v276_v9  ;;  %v169_v9 = vld [vmem:[%s10027_s27 + $0x368] sm:$0xff] }
  0x9d   :  { %4896 = vmatmul.mubr.f32.gmra.mrb[56].mxu0 %v117_v10  ;;  %5136 = vmatmul.mubr.f32.gmra.mrb[56].mxu1 %v277_v11  ;;  %v170_v11 = vld [vmem:[%s10027_s27 + $0x370] sm:$0xff] }
  0x9e   :  { %4898 = vmatprep.mubr.f32.mxu0 %v118_v12  ;;  %5138 = vmatprep.mubr.f32.mxu1 %v278_v13 }
  0xa1   :  { %4899 = vmatmul.mubr.f32.gmra.mrb[58].mxu0 %v119_v14  ;;  %5139 = vmatmul.mubr.f32.gmra.mrb[58].mxu1 %v279_v15  ;;  %v171_v15 = vld [vmem:[%s10027_s27 + $0x378] sm:$0xff] }
  0xa2   :  { %4901 = vmatprep.mubr.f32.mxu0 %v120_v16  ;;  %5141 = vmatprep.mubr.f32.mxu1 %v280_v17  ;;  %v172_v17 = vld [vmem:[%s10027_s27 + $0x380] sm:$0xff] }
  0xa5   :  { %4902 = vmatmul.mubr.f32.gmra.mrb[60].mxu0 %v121_v18  ;;  %5142 = vmatmul.mubr.f32.gmra.mrb[60].mxu1 %v281_v19 }
  0xa6   :  { %4904 = vmatprep.mubr.f32.mxu0 %v122_v20  ;;  %5144 = vmatprep.mubr.f32.mxu1 %v282_v21 }
  0xa9   :  { %4905 = vmatmul.mubr.f32.gmra.mrb[62].mxu0 %v123_v22  ;;  %5145 = vmatmul.mubr.f32.gmra.mrb[62].mxu1 %v283_v23  ;;  %v173_v23 = vld [vmem:[%s10027_s27 + $0x388] sm:$0xff] }
  0xaa   :  { %4907 = vmatprep.mubr.f32.mxu0 %v124_v24 }
  0xad   :  { %4908 = vmatmul.mubr.f32.gmra.mrb[64].mxu0 %v125_v25  ;;  %v174_v25 = vld [vmem:[%s10027_s27 + $0x390] sm:$0xff] }
  0xae   :  { %4910 = vmatprep.mubr.f32.mxu0 %v126_v26 }
  0xb1   :  { %4911 = vmatmul.mubr.f32.gmra.mrb[66].mxu0 %v127_v27 }
  0xb2   :  { %4913 = vmatprep.mubr.f32.mxu0 %v128_v28 }
  0xb5   :  { %4914 = vmatmul.mubr.f32.gmra.mrb[68].mxu0 %v129_v29 }
  0xb6   :  { %4916 = vmatprep.mubr.f32.mxu0 %v130_v30 }
  0xb9   :  { %4917 = vmatmul.mubr.f32.gmra.mrb[70].mxu0 %v131_v31  ;;  %v175_v31 = vld [vmem:[%s10027_s27 + $0x398] sm:$0xff] }
  0xba   :  { %4919 = vmatprep.mubr.f32.mxu0 %v132_v32 }
  0xbd   :  { %4920 = vmatmul.mubr.f32.gmra.mrb[72].mxu0 %v133_v33  ;;  %v176_v33 = vld [vmem:[%s10027_s27 + $0x3a0] sm:$0xff] }
  0xbe   :  { %4922 = vmatprep.mubr.f32.mxu0 %v134_v34 }
  0xc1   :  { %4923 = vmatmul.mubr.f32.gmra.mrb[74].mxu0 %v135_v35 }
  0xc2   :  { %4925 = vmatprep.mubr.f32.mxu0 %v136_v36 }
  0xc5   :  { %4926 = vmatmul.mubr.f32.gmra.mrb[76].mxu0 %v137_v37 }
  0xc6   :  { %4928 = vmatprep.mubr.f32.mxu0 %v138_v38 }
  0xc9   :  { %4929 = vmatmul.mubr.f32.gmra.mrb[78].mxu0 %v139_v39  ;;  %v177_v39 = vld [vmem:[%s10027_s27 + $0x3a8] sm:$0xff] }
  0xca   :  { %4931 = vmatprep.mubr.f32.mxu0 %v140_v40 }
  0xcd   :  { %4932 = vmatmul.mubr.f32.gmra.mrb[80].mxu0 %v141_v41  ;;  %v178_v41 = vld [vmem:[%s10027_s27 + $0x3b0] sm:$0xff] }
  0xce   :  { %4934 = vmatprep.mubr.f32.mxu0 %v142_v42 }
  0xd1   :  { %4935 = vmatmul.mubr.f32.gmra.mrb[82].mxu0 %v143_v43 }
  0xd2   :  { %4937 = vmatprep.mubr.f32.mxu0 %v144_v44 }
  0xd5   :  { %4938 = vmatmul.mubr.f32.gmra.mrb[84].mxu0 %v145_v45 }
  0xd6   :  { %4940 = vmatprep.mubr.f32.mxu0 %v146_v46 }
  0xd9   :  { %4941 = vmatmul.mubr.f32.gmra.mrb[86].mxu0 %v147_v47  ;;  %v179_v47 = vld [vmem:[%s10027_s27 + $0x3b8] sm:$0xff] }
  0xda   :  { %4943 = vmatprep.mubr.f32.mxu0 %v148_v48 }
  0xdd   :  { %4944 = vmatmul.mubr.f32.gmra.mrb[88].mxu0 %v149_v49  ;;  %v180_v49 = vld [vmem:[%s10027_s27 + $0x3c0] sm:$0xff] }
  0xde   :  { %4946 = vmatprep.mubr.f32.mxu0 %v150_v50 }
  0xe1   :  { %4947 = vmatmul.mubr.f32.gmra.mrb[90].mxu0 %v151_v51 }
  0xe2   :  { %4949 = vmatprep.mubr.f32.mxu0 %v152_v52 }
  0xe5   :  { %4950 = vmatmul.mubr.f32.gmra.mrb[92].mxu0 %v153_v53 }
  0xe6   :  { %4952 = vmatprep.mubr.f32.mxu0 %v154_v54 }
  0xe9   :  { %4953 = vmatmul.mubr.f32.gmra.mrb[94].mxu0 %v155_v55  ;;  %v181_v55 = vld [vmem:[%s10027_s27 + $0x3c8] sm:$0xff] }
  0xea   :  { %4955 = vmatprep.mubr.f32.mxu0 %v156_v56 }
  0xed   :  { %4956 = vmatmul.mubr.f32.gmra.mrb[96].mxu0 %v157_v57  ;;  %v182_v57 = vld [vmem:[%s10027_s27 + $0x3d0] sm:$0xff] }
  0xee   :  { %4958 = vmatprep.mubr.f32.mxu0 %v158_v58 }
  0xf1   :  { %4959 = vmatmul.mubr.f32.gmra.mrb[98].mxu0 %v159_v59 }
  0xf2   :  { %4961 = vmatprep.mubr.f32.mxu0 %v160_v60 }
  0xf5   :  { %4962 = vmatmul.mubr.f32.gmra.mrb[100].mxu0 %v161_v61 }
  0xf6   :  { %4964 = vmatprep.mubr.f32.mxu0 %v162_v62 }
  0xf9   :  { %4965 = vmatmul.mubr.f32.gmra.mrb[102].mxu0 %v163_v63  ;;  %v183_v63 = vld [vmem:[%s10027_s27 + $0x3d8] sm:$0xff] }
  0xfa   :  { %4967 = vmatprep.mubr.f32.mxu0 %v164_v0 }
  0xfd   :  { %4968 = vmatmul.mubr.f32.gmra.mrb[104].mxu0 %v165_v1  ;;  %v184_v1 = vld [vmem:[%s10027_s27 + $0x3e0] sm:$0xff] }
  0xfe   :  { %4970 = vmatprep.mubr.f32.mxu0 %v166_v2 }
 0x100   :  { %v6574_v5 = vpop.f32.mrb[0].mxu0 }
 0x101   :  { %v1487_v6 = vsel %vm1485_vm0, %v6574_v5, 0.0  ;;  %v6578_v7 = vpop.f32.mrb[1].mxu0  ;;  %4971 = vmatmul.mubr.f32.gmra.mrb[106].mxu0 %v167_v3 }
 0x102   :  { %v1486_v8 = vsel %vm1485_vm0, %v6578_v7, 0.0  ;;  %4973 = vmatprep.mubr.f32.mxu0 %v168_v4 }
 0x103   :  { %v1488_v10 = vadd.f32 %v1487_v6, %v1486_v8 }
 0x104   :  { %v6588_v12 = vpop.f32.mrb[2].mxu0 }
 0x105   :  { %v6590_v13 = vpop.f32.mrb[3].mxu0  ;;  %4974 = vmatmul.mubr.f32.gmra.mrb[108].mxu0 %v169_v9  ;;  %v1491_v18 = vsel %vm1485_vm0, %v6588_v12, 0.0  ;;  %v185_v9 = vld [vmem:[%s10027_s27 + $0x3e8] sm:$0xff] }
 0x106   :  { %v1489_v14 = vsel %vm1485_vm0, %v6590_v13, 0.0  ;;  %4976 = vmatprep.mubr.f32.mxu0 %v170_v11  ;;  %v186_v11 = vld [vmem:[%s10027_s27 + $0x3f0] sm:$0xff] }
 0x107   :  { %v1490_v16 = vadd.f32 %v1489_v14, %v1488_v10 }
 0x108   :  { %v6602_v19 = vpop.f32.mrb[4].mxu0 }
 0x109   :  { %v6604_v20 = vpop.f32.mrb[5].mxu0  ;;  %v1492_v21 = vadd.f32 %v1491_v18, %v1490_v16  ;;  %4977 = vmatmul.mubr.f32.gmra.mrb[110].mxu0 %v171_v15  ;;  %v1495_v26 = vsel %vm1485_vm0, %v6602_v19, 0.0 }
 0x10a   :  { %v1493_v22 = vsel %vm1485_vm0, %v6604_v20, 0.0  ;;  %4979 = vmatprep.mubr.f32.mxu0 %v172_v17 }
 0x10b   :  { %v1494_v24 = vadd.f32 %v1493_v22, %v1492_v21  ;;  %v187_v21 = vld [vmem:[%s10027_s27 + $0x3f8] sm:$0xff] }
 0x10c   :  { %v6616_v27 = vpop.f32.mrb[6].mxu0 }
 0x10d   :  { %v6618_v28 = vpop.f32.mrb[7].mxu0  ;;  %v1496_v29 = vadd.f32 %v1495_v26, %v1494_v24  ;;  %4980 = vmatmul.mubr.f32.gmra.mrb[112].mxu0 %v173_v23  ;;  %v1499_v34 = vsel %vm1485_vm0, %v6616_v27, 0.0  ;;  %v188_v23 = vld [vmem:[%s10027_s27 + $0x400] sm:$0xff] }
 0x10e   :  { %v1497_v30 = vsel %vm1485_vm0, %v6618_v28, 0.0  ;;  %4982 = vmatprep.mubr.f32.mxu0 %v174_v25 }
 0x10f   :  { %v1498_v32 = vadd.f32 %v1497_v30, %v1496_v29 }
 0x110   :  { %v6630_v35 = vpop.f32.mrb[8].mxu0 }
 0x111   :  { %v6632_v36 = vpop.f32.mrb[9].mxu0  ;;  %v1500_v37 = vadd.f32 %v1499_v34, %v1498_v32  ;;  %4983 = vmatmul.mubr.f32.gmra.mrb[114].mxu0 %v175_v31  ;;  %v1503_v42 = vsel %vm1485_vm0, %v6630_v35, 0.0  ;;  %v189_v31 = vld [vmem:[%s10027_s27 + $0x408] sm:$0xff] }
 0x112   :  { %v1501_v38 = vsel %vm1485_vm0, %v6632_v36, 0.0  ;;  %4985 = vmatprep.mubr.f32.mxu0 %v176_v33  ;;  %v190_v33 = vld [vmem:[%s10027_s27 + $0x410] sm:$0xff] }
 0x113   :  { %v1502_v40 = vadd.f32 %v1501_v38, %v1500_v37 }
 0x114   :  { %v6644_v43 = vpop.f32.mrb[10].mxu0 }
 0x115   :  { %v6646_v44 = vpop.f32.mrb[11].mxu0  ;;  %v1504_v45 = vadd.f32 %v1503_v42, %v1502_v40  ;;  %4986 = vmatmul.mubr.f32.gmra.mrb[116].mxu0 %v177_v39  ;;  %v1507_v50 = vsel %vm1485_vm0, %v6644_v43, 0.0 }
 0x116   :  { %v1505_v46 = vsel %vm1485_vm0, %v6646_v44, 0.0  ;;  %4988 = vmatprep.mubr.f32.mxu0 %v178_v41  ;;  %v191_v41 = vld [vmem:[%s10027_s27 + $0x418] sm:$0xff] }
 0x117   :  { %v1506_v48 = vadd.f32 %v1505_v46, %v1504_v45  ;;  %v192_v45 = vld [vmem:[%s10027_s27 + $0x420] sm:$0xff] }
 0x118   :  { %v6658_v51 = vpop.f32.mrb[12].mxu0 }
 0x119   :  { %v6660_v52 = vpop.f32.mrb[13].mxu0  ;;  %v1508_v53 = vadd.f32 %v1507_v50, %v1506_v48  ;;  %4989 = vmatmul.mubr.f32.gmra.mrb[118].mxu0 %v179_v47  ;;  %v1511_v58 = vsel %vm1485_vm0, %v6658_v51, 0.0 }
 0x11a   :  { %v1509_v54 = vsel %vm1485_vm0, %v6660_v52, 0.0  ;;  %4991 = vmatprep.mubr.f32.mxu0 %v180_v49 }
 0x11b   :  { %v1510_v56 = vadd.f32 %v1509_v54, %v1508_v53  ;;  %v193_v53 = vld [vmem:[%s10027_s27 + $0x428] sm:$0xff] }
 0x11c   :  { %v6672_v59 = vpop.f32.mrb[14].mxu0 }
 0x11d   :  { %v6674_v60 = vpop.f32.mrb[15].mxu0  ;;  %v1512_v61 = vadd.f32 %v1511_v58, %v1510_v56  ;;  %4992 = vmatmul.mubr.f32.gmra.mrb[120].mxu0 %v181_v55  ;;  %v1515_v2 = vsel %vm1485_vm0, %v6672_v59, 0.0  ;;  %v194_v55 = vld [vmem:[%s10027_s27 + $0x430] sm:$0xff] }
 0x11e   :  { %v1513_v62 = vsel %vm1485_vm0, %v6674_v60, 0.0  ;;  %4994 = vmatprep.mubr.f32.mxu0 %v182_v57 }
 0x11f   :  { %v1514_v0 = vadd.f32 %v1513_v62, %v1512_v61 }
 0x120   :  { %v6686_v3 = vpop.f32.mrb[16].mxu0 }
 0x121   :  { %v6688_v4 = vpop.f32.mrb[17].mxu0  ;;  %v1516_v6 = vadd.f32 %v1515_v2, %v1514_v0  ;;  %4995 = vmatmul.mubr.f32.gmra.mrb[122].mxu0 %v183_v63  ;;  %v1519_v14 = vsel %vm1485_vm0, %v6686_v3, 0.0  ;;  %v195_v63 = vld [vmem:[%s10027_s27 + $0x438] sm:$0xff] }
 0x122   :  { %v1517_v8 = vsel %vm1485_vm0, %v6688_v4, 0.0  ;;  %4997 = vmatprep.mubr.f32.mxu0 %v184_v1  ;;  %v196_v1 = vld [vmem:[%s10027_s27 + $0x440] sm:$0xff] }
 0x123   :  { %v1518_v10 = vadd.f32 %v1517_v8, %v1516_v6 }
 0x124   :  { %v6700_v15 = vpop.f32.mrb[18].mxu0 }
 0x125   :  { %v6702_v16 = vpop.f32.mrb[19].mxu0  ;;  %v1520_v17 = vadd.f32 %v1519_v14, %v1518_v10  ;;  %4998 = vmatmul.mubr.f32.gmra.mrb[124].mxu0 %v185_v9  ;;  %v1523_v24 = vsel %vm1485_vm0, %v6700_v15, 0.0 }
 0x126   :  { %v1521_v18 = vsel %vm1485_vm0, %v6702_v16, 0.0  ;;  %5000 = vmatprep.mubr.f32.mxu0 %v186_v11  ;;  %v197_v11 = vld [vmem:[%s10027_s27 + $0x448] sm:$0xff] }
 0x127   :  { %v1522_v22 = vadd.f32 %v1521_v18, %v1520_v17  ;;  %v198_v17 = vld [vmem:[%s10027_s27 + $0x450] sm:$0xff] }
 0x128   :  { %v6714_v25 = vpop.f32.mrb[20].mxu0 }
 0x129   :  { %v6716_v26 = vpop.f32.mrb[21].mxu0  ;;  %v1524_v29 = vadd.f32 %v1523_v24, %v1522_v22  ;;  %5001 = vmatmul.mubr.f32.gmra.mrb[126].mxu0 %v187_v21  ;;  %v1527_v34 = vsel %vm1485_vm0, %v6714_v25, 0.0 }
 0x12a   :  { %v1525_v30 = vsel %vm1485_vm0, %v6716_v26, 0.0  ;;  %5003 = vmatprep.mubr.f32.mxu0 %v188_v23 }
 0x12b   :  { %v1526_v32 = vadd.f32 %v1525_v30, %v1524_v29  ;;  %v199_v29 = vld [vmem:[%s10027_s27 + $0x458] sm:$0xff] }
 0x12c   :  { %v6728_v37 = vpop.f32.mrb[22].mxu0 }
 0x12d   :  { %v6730_v38 = vpop.f32.mrb[23].mxu0  ;;  %v1528_v39 = vadd.f32 %v1527_v34, %v1526_v32  ;;  %5004 = vmatmul.mubr.f32.gmra.mrb[128].mxu0 %v189_v31  ;;  %v1531_v46 = vsel %vm1485_vm0, %v6728_v37, 0.0  ;;  %v200_v31 = vld [vmem:[%s10027_s27 + $0x460] sm:$0xff] }
 0x12e   :  { %v1529_v40 = vsel %vm1485_vm0, %v6730_v38, 0.0  ;;  %5006 = vmatprep.mubr.f32.mxu0 %v190_v33 }
 0x12f   :  { %v1530_v42 = vadd.f32 %v1529_v40, %v1528_v39 }
 0x130   :  { %v6742_v47 = vpop.f32.mrb[24].mxu0 }
 0x131   :  { %v6744_v48 = vpop.f32.mrb[25].mxu0  ;;  %v1532_v49 = vadd.f32 %v1531_v46, %v1530_v42  ;;  %5007 = vmatmul.mubr.f32.gmra.mrb[130].mxu0 %v191_v41  ;;  %v1535_v56 = vsel %vm1485_vm0, %v6742_v47, 0.0  ;;  %v201_v41 = vld [vmem:[%s10027_s27 + $0x468] sm:$0xff] }
 0x132   :  { %v1533_v50 = vsel %vm1485_vm0, %v6744_v48, 0.0  ;;  %5009 = vmatprep.mubr.f32.mxu0 %v192_v45  ;;  %v202_v45 = vld [vmem:[%s10027_s27 + $0x470] sm:$0xff] }
 0x133   :  { %v1534_v54 = vadd.f32 %v1533_v50, %v1532_v49 }
 0x134   :  { %v6756_v57 = vpop.f32.mrb[26].mxu0 }
 0x135   :  { %v6758_v58 = vpop.f32.mrb[27].mxu0  ;;  %v1536_v61 = vadd.f32 %v1535_v56, %v1534_v54  ;;  %5010 = vmatmul.mubr.f32.gmra.mrb[132].mxu0 %v193_v53  ;;  %v1539_v2 = vsel %vm1485_vm0, %v6756_v57, 0.0 }
 0x136   :  { %v1537_v62 = vsel %vm1485_vm0, %v6758_v58, 0.0  ;;  %5012 = vmatprep.mubr.f32.mxu0 %v194_v55  ;;  %v203_v55 = vld [vmem:[%s10027_s27 + $0x478] sm:$0xff] }
 0x137   :  { %v1538_v0 = vadd.f32 %v1537_v62, %v1536_v61  ;;  %v204_v61 = vld [vmem:[%s10027_s27 + $0x480] sm:$0xff] }
 0x138   :  { %v6770_v6 = vpop.f32.mrb[28].mxu0 }
 0x139   :  { %v6772_v8 = vpop.f32.mrb[29].mxu0  ;;  %v1540_v9 = vadd.f32 %v1539_v2, %v1538_v0  ;;  %5013 = vmatmul.mubr.f32.gmra.mrb[134].mxu0 %v195_v63  ;;  %v1543_v18 = vsel %vm1485_vm0, %v6770_v6, 0.0 }
 0x13a   :  { %v1541_v10 = vsel %vm1485_vm0, %v6772_v8, 0.0  ;;  %5015 = vmatprep.mubr.f32.mxu0 %v196_v1 }
 0x13b   :  { %v1542_v14 = vadd.f32 %v1541_v10, %v1540_v9  ;;  %v205_v9 = vld [vmem:[%s10027_s27 + $0x488] sm:$0xff] }
 0x13c   :  { %v6784_v21 = vpop.f32.mrb[30].mxu0 }
 0x13d   :  { %v6786_v22 = vpop.f32.mrb[31].mxu0  ;;  %v1544_v23 = vadd.f32 %v1543_v18, %v1542_v14  ;;  %5016 = vmatmul.mubr.f32.gmra.mrb[136].mxu0 %v197_v11  ;;  %v1547_v32 = vsel %vm1485_vm0, %v6784_v21, 0.0  ;;  %v206_v11 = vld [vmem:[%s10027_s27 + $0x490] sm:$0xff] }
 0x13e   :  { %v1545_v24 = vsel %vm1485_vm0, %v6786_v22, 0.0  ;;  %5018 = vmatprep.mubr.f32.mxu0 %v198_v17 }
 0x13f   :  { %v1546_v30 = vadd.f32 %v1545_v24, %v1544_v23 }
 0x140   :  { %v6798_v33 = vpop.f32.mrb[32].mxu0 }
 0x141   :  { %v6800_v34 = vpop.f32.mrb[33].mxu0  ;;  %v1548_v39 = vadd.f32 %v1547_v32, %v1546_v30  ;;  %5019 = vmatmul.mubr.f32.gmra.mrb[138].mxu0 %v199_v29  ;;  %v1551_v46 = vsel %vm1485_vm0, %v6798_v33, 0.0  ;;  %v207_v29 = vld [vmem:[%s10027_s27 + $0x498] sm:$0xff] }
 0x142   :  { %v1549_v40 = vsel %vm1485_vm0, %v6800_v34, 0.0  ;;  %5021 = vmatprep.mubr.f32.mxu0 %v200_v31  ;;  %v208_v31 = vld [vmem:[%s10027_s27 + $0x4a0] sm:$0xff] }
 0x143   :  { %v1550_v42 = vadd.f32 %v1549_v40, %v1548_v39 }
 0x144   :  { %v6812_v49 = vpop.f32.mrb[34].mxu0 }
 0x145   :  { %v6814_v50 = vpop.f32.mrb[35].mxu0  ;;  %v1552_v53 = vadd.f32 %v1551_v46, %v1550_v42  ;;  %5022 = vmatmul.mubr.f32.gmra.mrb[140].mxu0 %v201_v41  ;;  %v1555_v62 = vsel %vm1485_vm0, %v6812_v49, 0.0 }
 0x146   :  { %v1553_v54 = vsel %vm1485_vm0, %v6814_v50, 0.0  ;;  %5024 = vmatprep.mubr.f32.mxu0 %v202_v45  ;;  %v209_v45 = vld [vmem:[%s10027_s27 + $0x4a8] sm:$0xff] }
 0x147   :  { %v1554_v56 = vadd.f32 %v1553_v54, %v1552_v53  ;;  %v210_v53 = vld [vmem:[%s10027_s27 + $0x4b0] sm:$0xff] }
 0x148   :  { %v6826_v63 = vpop.f32.mrb[36].mxu0 }
 0x149   :  { %v6828_v0 = vpop.f32.mrb[37].mxu0  ;;  %v1556_v1 = vadd.f32 %v1555_v62, %v1554_v56  ;;  %5025 = vmatmul.mubr.f32.gmra.mrb[142].mxu0 %v203_v55  ;;  %v1559_v14 = vsel %vm1485_vm0, %v6826_v63, 0.0 }
 0x14a   :  { %v1557_v2 = vsel %vm1485_vm0, %v6828_v0, 0.0  ;;  %5027 = vmatprep.mubr.f32.mxu0 %v204_v61 }
 0x14b   :  { %v1558_v10 = vadd.f32 %v1557_v2, %v1556_v1  ;;  %v211_v1 = vld [vmem:[%s10027_s27 + $0x4b8] sm:$0xff] }
 0x14c   :  { %v6840_v17 = vpop.f32.mrb[38].mxu0 }
 0x14d   :  { %v6842_v18 = vpop.f32.mrb[39].mxu0  ;;  %v1560_v23 = vadd.f32 %v1559_v14, %v1558_v10  ;;  %5028 = vmatmul.mubr.f32.gmra.mrb[144].mxu0 %v205_v9  ;;  %v1563_v32 = vsel %vm1485_vm0, %v6840_v17, 0.0  ;;  %v212_v9 = vld [vmem:[%s10027_s27 + $0x4c0] sm:$0xff] }
 0x14e   :  { %v1561_v24 = vsel %vm1485_vm0, %v6842_v18, 0.0  ;;  %5030 = vmatprep.mubr.f32.mxu0 %v206_v11 }
 0x14f   :  { %v1562_v30 = vadd.f32 %v1561_v24, %v1560_v23 }
 0x150   :  { %v6854_v39 = vpop.f32.mrb[40].mxu0 }
 0x151   :  { %v6856_v40 = vpop.f32.mrb[41].mxu0  ;;  %v1564_v41 = vadd.f32 %v1563_v32, %v1562_v30  ;;  %5031 = vmatmul.mubr.f32.gmra.mrb[146].mxu0 %v207_v29  ;;  %v1567_v54 = vsel %vm1485_vm0, %v6854_v39, 0.0  ;;  %v213_v29 = vld [vmem:[%s10027_s27 + $0x4c8] sm:$0xff] }
 0x152   :  { %v1565_v42 = vsel %vm1485_vm0, %v6856_v40, 0.0  ;;  %5033 = vmatprep.mubr.f32.mxu0 %v208_v31  ;;  %v214_v31 = vld [vmem:[%s10027_s27 + $0x4d0] sm:$0xff] }
 0x153   :  { %v1566_v46 = vadd.f32 %v1565_v42, %v1564_v41 }
 0x154   :  { %v6868_v55 = vpop.f32.mrb[42].mxu0 }
 0x155   :  { %v6870_v56 = vpop.f32.mrb[43].mxu0  ;;  %v1568_v61 = vadd.f32 %v1567_v54, %v1566_v46  ;;  %5034 = vmatmul.mubr.f32.gmra.mrb[148].mxu0 %v209_v45  ;;  %v1571_v10 = vsel %vm1485_vm0, %v6868_v55, 0.0 }
 0x156   :  { %v1569_v62 = vsel %vm1485_vm0, %v6870_v56, 0.0  ;;  %5036 = vmatprep.mubr.f32.mxu0 %v210_v53  ;;  %v215_v53 = vld [vmem:[%s10027_s27 + $0x4d8] sm:$0xff] }
 0x157   :  { %v1570_v2 = vadd.f32 %v1569_v62, %v1568_v61  ;;  %v216_v61 = vld [vmem:[%s10027_s27 + $0x4e0] sm:$0xff] }
 0x158   :  { %v6882_v11 = vpop.f32.mrb[44].mxu0 }
 0x159   :  { %v6884_v14 = vpop.f32.mrb[45].mxu0  ;;  %v1572_v23 = vadd.f32 %v1571_v10, %v1570_v2  ;;  %5037 = vmatmul.mubr.f32.gmra.mrb[150].mxu0 %v211_v1  ;;  %v1575_v32 = vsel %vm1485_vm0, %v6882_v11, 0.0 }
 0x15a   :  { %v1573_v24 = vsel %vm1485_vm0, %v6884_v14, 0.0  ;;  %5039 = vmatprep.mubr.f32.mxu0 %v212_v9 }
 0x15b   :  { %v1574_v30 = vadd.f32 %v1573_v24, %v1572_v23  ;;  %v217_v23 = vld [vmem:[%s10027_s27 + $0x4e8] sm:$0xff] }
 0x15c   :  { %v6896_v41 = vpop.f32.mrb[46].mxu0 }
 0x15d   :  { %v6898_v42 = vpop.f32.mrb[47].mxu0  ;;  %v1576_v45 = vadd.f32 %v1575_v32, %v1574_v30  ;;  %5040 = vmatmul.mubr.f32.gmra.mrb[152].mxu0 %v213_v29  ;;  %v1579_v62 = vsel %vm1485_vm0, %v6896_v41, 0.0  ;;  %v218_v29 = vld [vmem:[%s10027_s27 + $0x4f0] sm:$0xff] }
 0x15e   :  { %v1577_v46 = vsel %vm1485_vm0, %v6898_v42, 0.0  ;;  %5042 = vmatprep.mubr.f32.mxu0 %v214_v31  ;;  %v6924_v31 = vpop.f32.mrb[0].mxu1 }
 0x15f   :  { %v1578_v54 = vadd.f32 %v1577_v46, %v1576_v45  ;;  %10030 = vst [vmem:[#allocation7_spill] sm:$0xff] %v6924_v31  ;;  %v6928_v45 = vpop.f32.mrb[1].mxu1  ;;  %v219_v46 = vld [vmem:[%s10027_s27 + $0x4f8] sm:$0xff]  ;;  %s5907_s27 = smov 96  }
 0x160   :  { %v6910_v1 = vpop.f32.mrb[48].mxu0  ;;  %10032 = vst [vmem:[#allocation9_spill] sm:$0xff] %v6928_v45 }
 0x161   :  { %10028 = vst [vmem:[#allocation5_spill] sm:$0xff] %v6910_v1  ;;  %v6912_v2 = vpop.f32.mrb[49].mxu0  ;;  %v1580_v9 = vadd.f32 %v1579_v62, %v1578_v54  ;;  %5043 = vmatmul.mubr.f32.gmra.mrb[154].mxu0 %v215_v53 }
 0x162   :  { %v1581_v10 = vsel %vm1485_vm0, %v6912_v2, 0.0  ;;  %5045 = vmatprep.mubr.f32.mxu0 %v216_v61  ;;  %v6935_v61 = vpop.f32.mrb[2].mxu1 }
 0x163   :  { %v1582_v24 = vadd.f32 %v1581_v10, %v1580_v9  ;;  %10034 = vst [vmem:[#allocation11_spill] sm:$0xff] %v6935_v61 }
 0x164   :  { %v6922_v30 = vpop.f32.mrb[50].mxu0 }
 0x165   :  { %10029 = vst [vmem:[#allocation6_spill] sm:$0xff] %v6922_v30  ;;  %5046 = vmatmul.mubr.f32.gmra.mrb[156].mxu0 %v217_v23  ;;  %v6926_v32 = vpop.f32.mrb[51].mxu0  ;;  %v1583_v53 = vrot.slane %v1582_v24, 4  ;;  %v6941_v23 = vpop.f32.mrb[3].mxu1 }
 0x166   :  { %10031 = vst [vmem:[#allocation8_spill] sm:$0xff] %v6926_v32  ;;  %5048 = vmatprep.mubr.f32.mxu0 %v218_v29  ;;  %10037 = vst [vmem:[#allocation14_spill] sm:$0xff] %v6941_v23  ;;  %v6945_v29 = vpop.f32.mrb[4].mxu1 }
 0x167   :  { %v1584_v9 = vadd.f32 %v1583_v53, %v1582_v24  ;;  %10039 = vst [vmem:[#allocation16_spill] sm:$0xff] %v6945_v29  ;;  %v6947_v30 = vpop.f32.mrb[5].mxu1 }
 0x168   :  { %v6933_v54 = vpop.f32.mrb[52].mxu0  ;;  %10040 = vst [vmem:[#allocation17_spill] sm:$0xff] %v6947_v30 }
 0x169   :  { %10033 = vst [vmem:[#allocation10_spill] sm:$0xff] %v6933_v54  ;;  %5049 = vmatmul.mubr.f32.gmra.mrb[158].mxu0 %v219_v46  ;;  %v6937_v62 = vpop.f32.mrb[53].mxu0  ;;  %v1585_v32 = vrot.slane %v1584_v9, 2  ;;  %v6951_v54 = vpop.f32.mrb[6].mxu1 }
 0x16a   :  { %10035 = vst [vmem:[#allocation12_spill] sm:$0xff] %v6937_v62  ;;  %10041 = vst [vmem:[#allocation18_spill] sm:$0xff] %v6951_v54  ;;  %v6955_v62 = vpop.f32.mrb[7].mxu1 }
 0x16b   :  { %v1586_v46 = vadd.f32 %v1585_v32, %v1584_v9  ;;  %10043 = vst [vmem:[#allocation20_spill] sm:$0xff] %v6955_v62 }
 0x16c   :  { %v6939_v10 = vpop.f32.mrb[54].mxu0 }
 0x16d   :  { %10036 = vst [vmem:[#allocation13_spill] sm:$0xff] %v6939_v10  ;;  %v6943_v31 = vpop.f32.mrb[55].mxu0  ;;  %v1587_v23 = vrot.slane %v1586_v46, 1 }
 0x16e   :  { %10038 = vst [vmem:[#allocation15_spill] sm:$0xff] %v6943_v31  ;;  %v6961_v31 = vpop.f32.mrb[8].mxu1 }
 0x16f   :  { %10045 = vst [vmem:[#allocation22_spill] sm:$0xff] %v6961_v31  ;;  %v6965_v30 = vpop.f32.mrb[9].mxu1  ;;  %v1588_v54 = vadd.f32 %v1587_v23, %v1586_v46 }
 0x170   :  { %v6949_v1 = vpop.f32.mrb[56].mxu0  ;;  %10047 = vst [vmem:[#allocation24_spill] sm:$0xff] %v6965_v30  ;;  %v6969_v45 = vpop.f32.mrb[10].mxu1 }
 0x171   :  { %v6953_v61 = vpop.f32.mrb[57].mxu0  ;;  %10049 = vst [vmem:[#allocation26_spill] sm:$0xff] %v6969_v45 }
 0x172   :  { %10042 = vst [vmem:[#allocation19_spill] sm:$0xff] %v6953_v61  ;;  %v6971_v61 = vpop.f32.mrb[11].mxu1 }
 0x173   :  { %10050 = vst [vmem:[#allocation27_spill] sm:$0xff] %v6971_v61  ;;  %v6977_v62 = vpop.f32.mrb[12].mxu1 }
 0x174   :  { %v6957_v24 = vpop.f32.mrb[58].mxu0  ;;  %10053 = vst [vmem:[#allocation30_spill] sm:$0xff] %v6977_v62  ;;  %v6981_v31 = vpop.f32.mrb[13].mxu1 }
 0x175   :  { %v6959_v53 = vpop.f32.mrb[59].mxu0  ;;  %10054 = vst [vmem:[#allocation31_spill] sm:$0xff] %v6981_v31  ;;  %v6991_v46 = vpop.f32.mrb[14].mxu1 }
 0x176   :  { %10044 = vst [vmem:[#allocation21_spill] sm:$0xff] %v6959_v53  ;;  %v6979_v53 = vmul.f32 0.0025510204, %v1588_v54  ;;  %10057 = vst [vmem:[#allocation34_spill] sm:$0xff] %v6991_v46 }
 0x178   :  { %v6963_v29 = vpop.f32.mrb[60].mxu0  ;;  %v1591_v45 = vsub.f32 %v6578_v7, %v6979_v53  ;;  %v1592_v23 = vsub.f32 %v6574_v5, %v6979_v53  ;;  %v1593_v54 = vsub.f32 %v6590_v13, %v6979_v53  ;;  %v1595_v46 = vsub.f32 %v6604_v20, %v6979_v53 }
 0x179   :  { %10046 = vst [vmem:[#allocation23_spill] sm:$0xff] %v6963_v29  ;;  %v6967_v10 = vpop.f32.mrb[61].mxu0 }
 0x17a   :  { %10048 = vst [vmem:[#allocation25_spill] sm:$0xff] %v6967_v10  ;;  %v1640_v7 = vmul.f32 %v1591_v45, %v1591_v45  ;;  %v1644_v20 = vmul.f32 %v1595_v46, %v1595_v46 }
 0x17c   :  { %v6973_v32 = vpop.f32.mrb[62].mxu0 }
 0x17d   :  { %10051 = vst [vmem:[#allocation28_spill] sm:$0xff] %v6973_v32  ;;  %v6975_v9 = vpop.f32.mrb[63].mxu0 }
 0x17e   :  { %10052 = vst [vmem:[#allocation29_spill] sm:$0xff] %v6975_v9  ;;  %v6995_v9 = vpop.f32.mrb[15].mxu1 }
 0x17f   :  { %10059 = vst [vmem:[#allocation36_spill] sm:$0xff] %v6995_v9  ;;  %v7001_v62 = vpop.f32.mrb[16].mxu1  ;;  %v1642_v9 = vmul.f32 %v1593_v54, %v1593_v54 }
 0x180   :  { %v6983_v29 = vpop.f32.mrb[64].mxu0  ;;  %10061 = vst [vmem:[#allocation38_spill] sm:$0xff] %v7001_v62  ;;  %v7005_v32 = vpop.f32.mrb[17].mxu1  ;;  %v1596_v62 = vsub.f32 %v6602_v19, %v6979_v53  ;;  %v1598_v19 = vsub.f32 %v6616_v27, %v6979_v53 }
 0x181   :  { %10055 = vst [vmem:[#allocation32_spill] sm:$0xff] %v6983_v29  ;;  %v6985_v30 = vpop.f32.mrb[65].mxu0  ;;  %v1641_v29 = vmul.f32 %v1592_v23, %v1592_v23  ;;  %10062 = vst [vmem:[#allocation39_spill] sm:$0xff] %v7005_v32  ;;  %v7013_v13 = vpop.f32.mrb[18].mxu1  ;;  %v1692_v54 = vsel %vm1485_vm0, %v1642_v9, 0.0  ;;  %v1599_v9 = vsub.f32 %v6632_v36, %v6979_v53  ;;  %v1601_v36 = vsub.f32 %v6646_v44, %v6979_v53 }
 0x182   :  { %10056 = vst [vmem:[#allocation33_spill] sm:$0xff] %v6985_v30  ;;  %v1594_v30 = vsub.f32 %v6588_v12, %v6979_v53  ;;  %10065 = vst [vmem:[#allocation42_spill] sm:$0xff] %v7013_v13  ;;  %v1689_v12 = vsel %vm1485_vm0, %v1640_v7, 0.0  ;;  %v7026_v10 = vpop.f32.mrb[19].mxu1  ;;  %v1603_v44 = vsub.f32 %v6660_v52, %v6979_v53 }
 0x183   :  { %v1690_v45 = vsel %vm1485_vm0, %v1641_v29, 0.0  ;;  %10066 = vst [vmem:[#allocation43_spill] sm:$0xff] %v7026_v10  ;;  %v7031_v7 = vpop.f32.mrb[20].mxu1 }
 0x184   :  { %v6993_v61 = vpop.f32.mrb[66].mxu0  ;;  %v1691_v23 = vadd.f32 %v1690_v45, %v1689_v12  ;;  %10067 = vst [vmem:[#allocation44_spill] sm:$0xff] %v7031_v7 }
 0x185   :  { %10058 = vst [vmem:[#allocation35_spill] sm:$0xff] %v6993_v61  ;;  %v6999_v31 = vpop.f32.mrb[67].mxu0 }
 0x186   :  { %10060 = vst [vmem:[#allocation37_spill] sm:$0xff] %v6999_v31  ;;  %v1643_v31 = vmul.f32 %v1594_v30, %v1594_v30  ;;  %v1693_v13 = vadd.f32 %v1692_v54, %v1691_v23  ;;  %v1645_v30 = vmul.f32 %v1596_v62, %v1596_v62  ;;  %v1696_v23 = vsel %vm1485_vm0, %v1644_v20, 0.0 }
 0x187   :  { %v1647_v62 = vmul.f32 %v1598_v19, %v1598_v19 }
 0x188   :  { %v7007_v5 = vpop.f32.mrb[68].mxu0  ;;  %v1694_v29 = vsel %vm1485_vm0, %v1643_v31, 0.0  ;;  %v1600_v31 = vsub.f32 %v6630_v35, %v6979_v53  ;;  %v1602_v35 = vsub.f32 %v6644_v43, %v6979_v53  ;;  %v1604_v43 = vsub.f32 %v6658_v51, %v6979_v53 }
 0x189   :  { %10063 = vst [vmem:[#allocation40_spill] sm:$0xff] %v7007_v5  ;;  %v7011_v61 = vpop.f32.mrb[69].mxu0  ;;  %v1597_v5 = vsub.f32 %v6618_v28, %v6979_v53  ;;  %v1695_v12 = vadd.f32 %v1694_v29, %v1693_v13  ;;  %v7035_v28 = vpop.f32.mrb[21].mxu1  ;;  %v1698_v13 = vsel %vm1485_vm0, %v1645_v30, 0.0  ;;  %v1702_v30 = vsel %vm1485_vm0, %v1647_v62, 0.0 }
 0x18a   :  { %10064 = vst [vmem:[#allocation41_spill] sm:$0xff] %v7011_v61  ;;  %10068 = vst [vmem:[#allocation45_spill] sm:$0xff] %v7035_v28  ;;  %v7042_v27 = vpop.f32.mrb[22].mxu1  ;;  %v1649_v19 = vmul.f32 %v1600_v31, %v1600_v31  ;;  %v1651_v31 = vmul.f32 %v1602_v35, %v1602_v35  ;;  %v1606_v51 = vsub.f32 %v6672_v59, %v6979_v53 }
 0x18b   :  { %v1646_v46 = vmul.f32 %v1597_v5, %v1597_v5  ;;  %v1697_v10 = vadd.f32 %v1696_v23, %v1695_v12  ;;  %10069 = vst [vmem:[#allocation46_spill] sm:$0xff] %v7042_v27  ;;  %v1648_v5 = vmul.f32 %v1599_v9, %v1599_v9  ;;  %v7054_v12 = vpop.f32.mrb[23].mxu1  ;;  %v1650_v9 = vmul.f32 %v1601_v36, %v1601_v36 }
 0x18c   :  { %v7019_v32 = vpop.f32.mrb[70].mxu0  ;;  %10071 = vst [vmem:[#allocation48_spill] sm:$0xff] %v7054_v12  ;;  %v1706_v62 = vsel %vm1485_vm0, %v1649_v19, 0.0  ;;  %v1605_v36 = vsub.f32 %v6674_v60, %v6979_v53  ;;  %v1653_v35 = vmul.f32 %v1604_v43, %v1604_v43  ;;  %v1710_v19 = vsel %vm1485_vm0, %v1651_v31, 0.0 }
 0x18d   :  { %v7024_v61 = vpop.f32.mrb[71].mxu0  ;;  %v1699_v29 = vadd.f32 %v1698_v13, %v1697_v10  ;;  %v1700_v20 = vsel %vm1485_vm0, %v1646_v46, 0.0  ;;  %v1704_v46 = vsel %vm1485_vm0, %v1648_v5, 0.0  ;;  %v1652_v5 = vmul.f32 %v1603_v44, %v1603_v44 }
 0x18e   :  { %v1607_v60 = vsub.f32 %v6688_v4, %v6979_v53  ;;  %v1654_v44 = vmul.f32 %v1605_v36, %v1605_v36  ;;  %v1608_v59 = vsub.f32 %v6686_v3, %v6979_v53  ;;  %v1655_v43 = vmul.f32 %v1606_v51, %v1606_v51 }
 0x18f   :  { %v1701_v23 = vadd.f32 %v1700_v20, %v1699_v29  ;;  %v1609_v4 = vsub.f32 %v6702_v16, %v6979_v53  ;;  %v1610_v3 = vsub.f32 %v6700_v15, %v6979_v53  ;;  %v1612_v15 = vsub.f32 %v6714_v25, %v6979_v53 }
 0x190   :  { %v7033_v45 = vpop.f32.mrb[72].mxu0  ;;  %v1656_v36 = vmul.f32 %v1607_v60, %v1607_v60  ;;  %v1657_v51 = vmul.f32 %v1608_v59, %v1608_v59  ;;  %v1611_v60 = vsub.f32 %v6716_v26, %v6979_v53  ;;  %v1613_v26 = vsub.f32 %v6730_v38, %v6979_v53 }
 0x191   :  { %v7040_v54 = vpop.f32.mrb[73].mxu0  ;;  %v1703_v10 = vadd.f32 %v1702_v30, %v1701_v23  ;;  %v1659_v59 = vmul.f32 %v1610_v3, %v1610_v3  ;;  %v1614_v25 = vsub.f32 %v6728_v37, %v6979_v53  ;;  %v1661_v3 = vmul.f32 %v1612_v15, %v1612_v15 }
 0x192   :  { %v1615_v38 = vsub.f32 %v6744_v48, %v6979_v53  ;;  %v1616_v15 = vsub.f32 %v6742_v47, %v6979_v53  ;;  %v1618_v47 = vsub.f32 %v6756_v57, %v6979_v53  ;;  %v1620_v57 = vsub.f32 %v6770_v6, %v6979_v53 }
 0x193   :  { %v1705_v29 = vadd.f32 %v1704_v46, %v1703_v10 }
 0x194   :  { %v7047_v7 = vpop.f32.mrb[74].mxu0 }
 0x195   :  { %v7052_v28 = vpop.f32.mrb[75].mxu0  ;;  %v1707_v30 = vadd.f32 %v1706_v62, %v1705_v29 }
 0x196   :  { %10070 = vst [vmem:[#allocation47_spill] sm:$0xff] %v7052_v28  ;;  %v7066_v28 = vpop.f32.mrb[24].mxu1 }
 0x197   :  { %10072 = vst [vmem:[#allocation49_spill] sm:$0xff] %v7066_v28  ;;  %v7068_v20 = vpop.f32.mrb[25].mxu1  ;;  %v1708_v28 = vsel %vm1485_vm0, %v1650_v9, 0.0  ;;  %v1712_v9 = vsel %vm1485_vm0, %v1652_v5, 0.0  ;;  %v1716_v5 = vsel %vm1485_vm0, %v1654_v44, 0.0  ;;  %v1658_v44 = vmul.f32 %v1609_v4, %v1609_v4 }
 0x198   :  { %v7059_v13 = vpop.f32.mrb[76].mxu0  ;;  %10073 = vst [vmem:[#allocation50_spill] sm:$0xff] %v7068_v20  ;;  %v7073_v23 = vpop.f32.mrb[26].mxu1  ;;  %v1709_v20 = vadd.f32 %v1708_v28, %v1707_v30  ;;  %v1660_v4 = vmul.f32 %v1611_v60, %v1611_v60  ;;  %v1662_v60 = vmul.f32 %v1613_v26, %v1613_v26  ;;  %v1617_v26 = vsub.f32 %v6758_v58, %v6979_v53 }
 0x199   :  { %v7064_v27 = vpop.f32.mrb[77].mxu0  ;;  %10074 = vst [vmem:[#allocation51_spill] sm:$0xff] %v7073_v23  ;;  %v7082_v46 = vpop.f32.mrb[27].mxu1  ;;  %v1619_v58 = vsub.f32 %v6772_v8, %v6979_v53  ;;  %v1621_v8 = vsub.f32 %v6786_v22, %v6979_v53  ;;  %v1623_v22 = vsub.f32 %v6800_v34, %v6979_v53  ;;  %v1625_v34 = vsub.f32 %v6814_v50, %v6979_v53 }
 0x19a   :  { %10075 = vst [vmem:[#allocation52_spill] sm:$0xff] %v7082_v46  ;;  %v1711_v29 = vadd.f32 %v1710_v19, %v1709_v20  ;;  %v7089_v23 = vpop.f32.mrb[28].mxu1  ;;  %v1714_v20 = vsel %vm1485_vm0, %v1653_v35, 0.0  ;;  %v1718_v35 = vsel %vm1485_vm0, %v1655_v43, 0.0  ;;  %v1722_v43 = vsel %vm1485_vm0, %v1657_v51, 0.0 }
 0x19b   :  { %10076 = vst [vmem:[#allocation53_spill] sm:$0xff] %v7089_v23  ;;  %v7096_v28 = vpop.f32.mrb[29].mxu1  ;;  %v1726_v51 = vsel %vm1485_vm0, %v1659_v59, 0.0  ;;  %v1663_v59 = vmul.f32 %v1614_v25, %v1614_v25  ;;  %v1665_v25 = vmul.f32 %v1616_v15, %v1616_v15  ;;  %v1667_v15 = vmul.f32 %v1618_v47, %v1618_v47 }
 0x19c   :  { %v7075_v52 = vpop.f32.mrb[78].mxu0  ;;  %10077 = vst [vmem:[#allocation54_spill] sm:$0xff] %v7096_v28  ;;  %v1713_v30 = vadd.f32 %v1712_v9, %v1711_v29  ;;  %v7108_v46 = vpop.f32.mrb[30].mxu1  ;;  %v1720_v28 = vsel %vm1485_vm0, %v1656_v36, 0.0  ;;  %v1724_v36 = vsel %vm1485_vm0, %v1658_v44, 0.0  ;;  %v1728_v44 = vsel %vm1485_vm0, %v1660_v4, 0.0 }
 0x19d   :  { %v7080_v10 = vpop.f32.mrb[79].mxu0  ;;  %10078 = vst [vmem:[#allocation55_spill] sm:$0xff] %v7108_v46  ;;  %v7110_v9 = vpop.f32.mrb[31].mxu1  ;;  %v1664_v4 = vmul.f32 %v1615_v38, %v1615_v38  ;;  %v1666_v38 = vmul.f32 %v1617_v26, %v1617_v26  ;;  %v1668_v26 = vmul.f32 %v1619_v58, %v1619_v58  ;;  %v1622_v47 = vsub.f32 %v6784_v21, %v6979_v53 }
 0x19e   :  { %v1715_v31 = vadd.f32 %v1714_v20, %v1713_v30  ;;  %10079 = vst [vmem:[#allocation56_spill] sm:$0xff] %v7110_v9  ;;  %v7117_v16 = vpop.f32.mrb[32].mxu1  ;;  %v1670_v58 = vmul.f32 %v1621_v8, %v1621_v8  ;;  %v1624_v21 = vsub.f32 %v6798_v33, %v6979_v53  ;;  %v1672_v8 = vmul.f32 %v1623_v22, %v1623_v22 }
 0x19f   :  { %10080 = vst [vmem:[#allocation57_spill] sm:$0xff] %v7117_v16  ;;  %v1626_v33 = vsub.f32 %v6812_v49, %v6979_v53  ;;  %v1627_v50 = vsub.f32 %v6828_v0, %v6979_v53  ;;  %v1674_v22 = vmul.f32 %v1625_v34, %v1625_v34  ;;  %v1629_v0 = vsub.f32 %v6842_v18, %v6979_v53 }
 0x1a0   :  { %v7087_v62 = vpop.f32.mrb[80].mxu0  ;;  %v1717_v29 = vadd.f32 %v1716_v5, %v1715_v31  ;;  %v7124_v5 = vpop.f32.mrb[33].mxu1  ;;  %v1631_v18 = vsub.f32 %v6856_v40, %v6979_v53  ;;  %v1633_v40 = vsub.f32 %v6870_v56, %v6979_v53  ;;  %v1635_v56 = vsub.f32 %v6884_v14, %v6979_v53 }
 0x1a1   :  { %v7094_v12 = vpop.f32.mrb[81].mxu0  ;;  %10081 = vst [vmem:[#allocation58_spill] sm:$0xff] %v7124_v5  ;;  %v7131_v16 = vpop.f32.mrb[34].mxu1  ;;  %v1676_v34 = vmul.f32 %v1627_v50, %v1627_v50  ;;  %v1678_v50 = vmul.f32 %v1629_v0, %v1629_v0  ;;  %v1637_v14 = vsub.f32 %v6898_v42, %v6979_v53  ;;  %v1639_v42 = vsub.f32 %v6912_v2, %v6979_v53 }
 0x1a2   :  { %v1719_v30 = vadd.f32 %v1718_v35, %v1717_v29  ;;  %10082 = vst [vmem:[#allocation59_spill] sm:$0xff] %v7131_v16  ;;  %v1680_v0 = vmul.f32 %v1631_v18, %v1631_v18  ;;  %v1682_v18 = vmul.f32 %v1633_v40, %v1633_v40  ;;  %v1684_v40 = vmul.f32 %v1635_v56, %v1635_v56 }
 0x1a3   :  { %v1686_v56 = vmul.f32 %v1637_v14, %v1637_v14 }
 0x1a4   :  { %v7101_v19 = vpop.f32.mrb[82].mxu0  ;;  %v1721_v9 = vadd.f32 %v1720_v28, %v1719_v30 }
 0x1a5   :  { %v7106_v23 = vpop.f32.mrb[83].mxu0 }
 0x1a6   :  { %v1723_v29 = vadd.f32 %v1722_v43, %v1721_v9  ;;  %v7143_v43 = vpop.f32.mrb[35].mxu1 }
 0x1a7   :  { %10083 = vst [vmem:[#allocation60_spill] sm:$0xff] %v7143_v43 }
 0x1a8   :  { %v7115_v20 = vpop.f32.mrb[84].mxu0  ;;  %v1725_v28 = vadd.f32 %v1724_v36, %v1723_v29  ;;  %v7150_v29 = vpop.f32.mrb[36].mxu1 }
 0x1a9   :  { %v7122_v31 = vpop.f32.mrb[85].mxu0  ;;  %10084 = vst [vmem:[#allocation61_spill] sm:$0xff] %v7150_v29  ;;  %v7152_v37 = vpop.f32.mrb[37].mxu1  ;;  %v1732_v29 = vsel %vm1485_vm0, %v1662_v60, 0.0  ;;  %v1736_v60 = vsel %vm1485_vm0, %v1664_v4, 0.0  ;;  %v1740_v4 = vsel %vm1485_vm0, %v1666_v38, 0.0 }
 0x1aa   :  { %v1727_v9 = vadd.f32 %v1726_v51, %v1725_v28  ;;  %10085 = vst [vmem:[#allocation62_spill] sm:$0xff] %v7152_v37  ;;  %v1730_v28 = vsel %vm1485_vm0, %v1661_v3, 0.0  ;;  %v7159_v48 = vpop.f32.mrb[38].mxu1  ;;  %v1734_v3 = vsel %vm1485_vm0, %v1663_v59, 0.0  ;;  %v1738_v59 = vsel %vm1485_vm0, %v1665_v25, 0.0 }
 0x1ab   :  { %10086 = vst [vmem:[#allocation63_spill] sm:$0xff] %v7159_v48  ;;  %v1669_v25 = vmul.f32 %v1620_v57, %v1620_v57  ;;  %v1744_v38 = vsel %vm1485_vm0, %v1668_v26, 0.0  ;;  %v1671_v57 = vmul.f32 %v1622_v47, %v1622_v47  ;;  %v1748_v26 = vsel %vm1485_vm0, %v1670_v58, 0.0 }
 0x1ac   :  { %v7129_v35 = vpop.f32.mrb[86].mxu0  ;;  %v1729_v36 = vadd.f32 %v1728_v44, %v1727_v9  ;;  %v1673_v47 = vmul.f32 %v1624_v21, %v1624_v21  ;;  %v1752_v58 = vsel %vm1485_vm0, %v1672_v8, 0.0  ;;  %v1628_v21 = vsub.f32 %v6826_v63, %v6979_v53 }
 0x1ad   :  { %v7136_v46 = vpop.f32.mrb[87].mxu0  ;;  %v1756_v8 = vsel %vm1485_vm0, %v1674_v22, 0.0  ;;  %v1630_v63 = vsub.f32 %v6840_v17, %v6979_v53  ;;  %v1760_v22 = vsel %vm1485_vm0, %v1676_v34, 0.0  ;;  %v1632_v17 = vsub.f32 %v6854_v39, %v6979_v53 }
 0x1ae   :  { %v1731_v51 = vadd.f32 %v1730_v28, %v1729_v36  ;;  %v7169_v36 = vpop.f32.mrb[39].mxu1  ;;  %v1764_v34 = vsel %vm1485_vm0, %v1678_v50, 0.0  ;;  %v1634_v39 = vsub.f32 %v6868_v55, %v6979_v53  ;;  %v1768_v50 = vsel %vm1485_vm0, %v1680_v0, 0.0 }
 0x1af   :  { %10087 = vst [vmem:[#allocation64_spill] sm:$0xff] %v7169_v36  ;;  %v1636_v55 = vsub.f32 %v6882_v11, %v6979_v53  ;;  %v1772_v0 = vsel %vm1485_vm0, %v1682_v18, 0.0  ;;  %v1638_v11 = vsub.f32 %v6896_v41, %v6979_v53  ;;  %v1776_v18 = vsel %vm1485_vm0, %v1684_v40, 0.0 }
 0x1b0   :  { %v7141_v30 = vpop.f32.mrb[88].mxu0  ;;  %v1733_v44 = vadd.f32 %v1732_v29, %v1731_v51  ;;  %v7181_v51 = vpop.f32.mrb[40].mxu1 }
 0x1b1   :  { %v7148_v16 = vpop.f32.mrb[89].mxu0  ;;  %10088 = vst [vmem:[#allocation65_spill] sm:$0xff] %v7181_v51  ;;  %v7185_v36 = vpop.f32.mrb[41].mxu1  ;;  %v1687_v41 = vmul.f32 %v1638_v11, %v1638_v11 }
 0x1b2   :  { %v1735_v28 = vadd.f32 %v1734_v3, %v1733_v44  ;;  %10089 = vst [vmem:[#allocation66_spill] sm:$0xff] %v7185_v36 }
 0x1b3   :  { %v1782_v40 = vsel %vm1485_vm0, %v1687_v41, 0.0 }
 0x1b4   :  { %v7157_v43 = vpop.f32.mrb[90].mxu0  ;;  %v1737_v29 = vadd.f32 %v1736_v60, %v1735_v28  ;;  %v7192_v60 = vpop.f32.mrb[42].mxu1 }
 0x1b5   :  { %v7164_v9 = vpop.f32.mrb[91].mxu0 }
 0x1b6   :  { %v1739_v44 = vadd.f32 %v1738_v59, %v1737_v29  ;;  %v1742_v29 = vsel %vm1485_vm0, %v1667_v15, 0.0  ;;  %v7197_v59 = vpop.f32.mrb[43].mxu1  ;;  %v1746_v15 = vsel %vm1485_vm0, %v1669_v25, 0.0  ;;  %v1750_v25 = vsel %vm1485_vm0, %v1671_v57, 0.0 }
 0x1b7   :  { %10090 = vst [vmem:[#allocation67_spill] sm:$0xff] %v7197_v59  ;;  %v1675_v57 = vmul.f32 %v1626_v33, %v1626_v33  ;;  %v1677_v33 = vmul.f32 %v1628_v21, %v1628_v21  ;;  %v1679_v21 = vmul.f32 %v1630_v63, %v1630_v63  ;;  %v1681_v63 = vmul.f32 %v1632_v17, %v1632_v17 }
 0x1b8   :  { %v7171_v37 = vpop.f32.mrb[92].mxu0  ;;  %v1741_v6 = vadd.f32 %v1740_v4, %v1739_v44  ;;  %v7206_v4 = vpop.f32.mrb[44].mxu1  ;;  %v1683_v17 = vmul.f32 %v1634_v39, %v1634_v39  ;;  %v1685_v39 = vmul.f32 %v1636_v55, %v1636_v55 }
 0x1b9   :  { %v7176_v48 = vpop.f32.mrb[93].mxu0  ;;  %10091 = vst [vmem:[#allocation68_spill] sm:$0xff] %v7206_v4 }
 0x1ba   :  { %v1743_v36 = vadd.f32 %v1742_v29, %v1741_v6  ;;  %v7211_v6 = vpop.f32.mrb[45].mxu1  ;;  %v1778_v55 = vsel %vm1485_vm0, %v1685_v39, 0.0 }
 0x1bb   :  { %10092 = vst [vmem:[#allocation69_spill] sm:$0xff] %v7211_v6  ;;  %v7223_v4 = vpop.f32.mrb[46].mxu1 }
 0x1bc   :  { %v7183_v3 = vpop.f32.mrb[94].mxu0  ;;  %v1745_v44 = vadd.f32 %v1744_v38, %v1743_v36  ;;  %10093 = vst [vmem:[#allocation70_spill] sm:$0xff] %v7223_v4  ;;  %v7227_v6 = vpop.f32.mrb[47].mxu1 }
 0x1bd   :  { %v7190_v28 = vpop.f32.mrb[95].mxu0  ;;  %10094 = vst [vmem:[#allocation71_spill] sm:$0xff] %v7227_v6  ;;  %v7234_v49 = vpop.f32.mrb[48].mxu1 }
 0x1be   :  { %v1747_v29 = vadd.f32 %v1746_v15, %v1745_v44  ;;  %10095 = vst [vmem:[#allocation72_spill] sm:$0xff] %v7234_v49 }
 0x1c0   :  { %v7199_v51 = vpop.f32.mrb[96].mxu0  ;;  %v1749_v38 = vadd.f32 %v1748_v26, %v1747_v29 }
 0x1c1   :  { %v7204_v5 = vpop.f32.mrb[97].mxu0 }
 0x1c2   :  { %v1751_v44 = vadd.f32 %v1750_v25, %v1749_v38  ;;  %v1754_v38 = vsel %vm1485_vm0, %v1673_v47, 0.0  ;;  %v7239_v25 = vpop.f32.mrb[49].mxu1  ;;  %v1758_v47 = vsel %vm1485_vm0, %v1675_v57, 0.0  ;;  %v1762_v57 = vsel %vm1485_vm0, %v1677_v33, 0.0 }
 0x1c3   :  { %10096 = vst [vmem:[#allocation73_spill] sm:$0xff] %v7239_v25  ;;  %v7248_v49 = vpop.f32.mrb[50].mxu1  ;;  %v1766_v33 = vsel %vm1485_vm0, %v1679_v21, 0.0  ;;  %v1770_v21 = vsel %vm1485_vm0, %v1681_v63, 0.0  ;;  %v1774_v63 = vsel %vm1485_vm0, %v1683_v17, 0.0 }
 0x1c4   :  { %v7213_v59 = vpop.f32.mrb[98].mxu0  ;;  %v1753_v26 = vadd.f32 %v1752_v58, %v1751_v44 }
 0x1c5   :  { %v7218_v36 = vpop.f32.mrb[99].mxu0 }
 0x1c6   :  { %v1755_v6 = vadd.f32 %v1754_v38, %v1753_v26 }
 0x1c8   :  { %v7225_v15 = vpop.f32.mrb[100].mxu0  ;;  %v1757_v58 = vadd.f32 %v1756_v8, %v1755_v6  ;;  %v7260_v8 = vpop.f32.mrb[51].mxu1 }
 0x1c9   :  { %v7232_v29 = vpop.f32.mrb[101].mxu0  ;;  %10098 = vst [vmem:[#allocation75_spill] sm:$0xff] %v7260_v8 }
 0x1ca   :  { %v1759_v26 = vadd.f32 %v1758_v47, %v1757_v58  ;;  %v7265_v58 = vpop.f32.mrb[52].mxu1 }
 0x1cc   :  { %v7241_v4 = vpop.f32.mrb[102].mxu0  ;;  %v1761_v6 = vadd.f32 %v1760_v22, %v1759_v26  ;;  %v7274_v22 = vpop.f32.mrb[53].mxu1 }
 0x1cd   :  { %v7246_v44 = vpop.f32.mrb[103].mxu0 }
 0x1ce   :  { %v1763_v47 = vadd.f32 %v1762_v57, %v1761_v6 }
 0x1d0   :  { %v7253_v38 = vpop.f32.mrb[104].mxu0  ;;  %v1765_v8 = vadd.f32 %v1764_v34, %v1763_v47 }
 0x1d1   :  { %10097 = vst [vmem:[#allocation74_spill] sm:$0xff] %v7253_v38  ;;  %v7258_v25 = vpop.f32.mrb[105].mxu0 }
 0x1d2   :  { %v1767_v6 = vadd.f32 %v1766_v33, %v1765_v8 }
 0x1d4   :  { %v7267_v38 = vpop.f32.mrb[106].mxu0  ;;  %v1769_v47 = vadd.f32 %v1768_v50, %v1767_v6 }
 0x1d5   :  { %10099 = vst [vmem:[#allocation76_spill] sm:$0xff] %v7267_v38  ;;  %v7272_v26 = vpop.f32.mrb[107].mxu0  ;;  %v7281_v38 = vpop.f32.mrb[54].mxu1 }
 0x1d6   :  { %10100 = vst [vmem:[#allocation77_spill] sm:$0xff] %v7272_v26  ;;  %v1771_v8 = vadd.f32 %v1770_v21, %v1769_v47  ;;  %v7293_v33 = vpop.f32.mrb[55].mxu1 }
 0x1d7   :  { %10104 = vst [vmem:[#allocation81_spill] sm:$0xff] %v7293_v33  ;;  %v7300_v6 = vpop.f32.mrb[56].mxu1 }
 0x1d8   :  { %v7279_v57 = vpop.f32.mrb[108].mxu0  ;;  %10106 = vst [vmem:[#allocation83_spill] sm:$0xff] %v7300_v6  ;;  %v1773_v50 = vadd.f32 %v1772_v0, %v1771_v8  ;;  %v7305_v47 = vpop.f32.mrb[57].mxu1 }
 0x1d9   :  { %10101 = vst [vmem:[#allocation78_spill] sm:$0xff] %v7279_v57  ;;  %v7286_v26 = vpop.f32.mrb[109].mxu0  ;;  %10107 = vst [vmem:[#allocation84_spill] sm:$0xff] %v7305_v47  ;;  %v7314_v0 = vpop.f32.mrb[58].mxu1 }
 0x1da   :  { %10102 = vst [vmem:[#allocation79_spill] sm:$0xff] %v7286_v26  ;;  %v1775_v21 = vadd.f32 %v1774_v63, %v1773_v50  ;;  %10108 = vst [vmem:[#allocation85_spill] sm:$0xff] %v7314_v0  ;;  %v1688_v50 = vmul.f32 %v1639_v42, %v1639_v42  ;;  %v1780_v63 = vsel %vm1485_vm0, %v1686_v56, 0.0  ;;  %v7322_v14 = vpop.f32.mrb[59].mxu1 }
 0x1db   :  { %10110 = vst [vmem:[#allocation87_spill] sm:$0xff] %v7322_v14  ;;  %v7325_v26 = vpop.f32.mrb[60].mxu1 }
 0x1dc   :  { %v7291_v34 = vpop.f32.mrb[110].mxu0  ;;  %v1777_v8 = vadd.f32 %v1776_v18, %v1775_v21  ;;  %10111 = vst [vmem:[#allocation88_spill] sm:$0xff] %v7325_v26  ;;  %v1784_v11 = vsel %vm1485_vm0, %v1688_v50, 0.0 }
 0x1dd   :  { %10103 = vst [vmem:[#allocation80_spill] sm:$0xff] %v7291_v34  ;;  %v7298_v57 = vpop.f32.mrb[111].mxu0 }
 0x1de   :  { %10105 = vst [vmem:[#allocation82_spill] sm:$0xff] %v7298_v57  ;;  %v1779_v17 = vadd.f32 %v1778_v55, %v1777_v8  ;;  %v7332_v8 = vpop.f32.mrb[61].mxu1 }
 0x1df   :  { %10114 = vst [vmem:[#allocation91_spill] sm:$0xff] %v7332_v8 }
 0x1e0   :  { %v7307_v34 = vpop.f32.mrb[112].mxu0  ;;  %v1781_v2 = vadd.f32 %v1780_v63, %v1779_v17  ;;  %v7336_v17 = vpop.f32.mrb[62].mxu1 }
 0x1e1   :  { %v7312_v57 = vpop.f32.mrb[113].mxu0  ;;  %10116 = vst [vmem:[#allocation93_spill] sm:$0xff] %v7336_v17 }
 0x1e2   :  { %v1783_v21 = vadd.f32 %v1782_v40, %v1781_v2  ;;  %v7342_v2 = vpop.f32.mrb[63].mxu1 }
 0x1e3   :  { %10119 = vst [vmem:[#allocation96_spill] sm:$0xff] %v7342_v2 }
 0x1e4   :  { %v7317_v6 = vpop.f32.mrb[114].mxu0  ;;  %v1785_v42 = vadd.f32 %v1784_v11, %v1783_v21 }
 0x1e5   :  { %v7320_v47 = vpop.f32.mrb[115].mxu0 }
 0x1e6   :  { %10109 = vst [vmem:[#allocation86_spill] sm:$0xff] %v7320_v47  ;;  %v1786_v56 = vrot.slane %v1785_v42, 4 }
 0x1e8   :  { %v7327_v18 = vpop.f32.mrb[116].mxu0  ;;  %v1787_v41 = vadd.f32 %v1786_v56, %v1785_v42 }
 0x1e9   :  { %10112 = vst [vmem:[#allocation89_spill] sm:$0xff] %v7327_v18  ;;  %v7330_v39 = vpop.f32.mrb[117].mxu0 }
 0x1ea   :  { %10113 = vst [vmem:[#allocation90_spill] sm:$0xff] %v7330_v39  ;;  %v1788_v14 = vrot.slane %v1787_v41, 2 }
 0x1ec   :  { %v7334_v55 = vpop.f32.mrb[118].mxu0  ;;  %v1789_v50 = vadd.f32 %v1788_v14, %v1787_v41 }
 0x1ed   :  { %10115 = vst [vmem:[#allocation92_spill] sm:$0xff] %v7334_v55  ;;  %v7338_v63 = vpop.f32.mrb[119].mxu0 }
 0x1ee   :  { %10117 = vst [vmem:[#allocation94_spill] sm:$0xff] %v7338_v63  ;;  %v1790_v21 = vrot.slane %v1789_v50, 1 }
 0x1f0   :  { %v7340_v26 = vpop.f32.mrb[120].mxu0  ;;  %v1791_v17 = vadd.f32 %v1790_v21, %v1789_v50 }
 0x1f1   :  { %10118 = vst [vmem:[#allocation95_spill] sm:$0xff] %v7340_v26  ;;  %v7344_v40 = vpop.f32.mrb[121].mxu0 }
 0x1f2   :  { %10120 = vst [vmem:[#allocation97_spill] sm:$0xff] %v7344_v40  ;;  %v1792_v56 = vmul.f32 0.0025510204, %v1791_v17 }
 0x1f4   :  { %v7346_v0 = vpop.f32.mrb[122].mxu0  ;;  %v1794_v14 = vadd.f32 1e-05, %v1792_v56  ;;  %v1793_v56 = vld [vmem:[%s10136_s21] sm:$0x1]  ;;  %s5906_s21 = smov 80  }
 0x1f5   :  { %10121 = vst [vmem:[#allocation98_spill] sm:$0xff] %v7346_v0  ;;  %v7348_v8 = vpop.f32.mrb[123].mxu0 }
 0x1f6   :  { %10122 = vst [vmem:[#allocation99_spill] sm:$0xff] %v7348_v8  ;;  %5869 = vrsqrt.f32 %v1794_v14 }
 0x1f8   :  { %v7350_v11 = vpop.f32.mrb[124].mxu0 }
 0x1f9   :  { %10123 = vst [vmem:[#allocation100_spill] sm:$0xff] %v7350_v11  ;;  %v7352_v55 = vpop.f32.mrb[125].mxu0 }
 0x1fa   :  { %10124 = vst [vmem:[#allocation101_spill] sm:$0xff] %v7352_v55 }
 0x1fc   :  { %v7354_v63 = vpop.f32.mrb[126].mxu0 }
 0x1fd   :  { %10125 = vst [vmem:[#allocation102_spill] sm:$0xff] %v7354_v63  ;;  %v7356_v42 = vpop.f32.mrb[127].mxu0 }
 0x1fe   :  { %10126 = vst [vmem:[#allocation103_spill] sm:$0xff] %v7356_v42 }
 0x200   :  { %v7358_v26 = vpop.f32.mrb[128].mxu0  ;;  %v5870_v17 = vpop.eup %5869 }
 0x201   :  { %10127 = vst [vmem:[#allocation104_spill] sm:$0xff] %v7358_v26  ;;  %v7360_v2 = vpop.f32.mrb[129].mxu0 }
 0x202   :  { %10128 = vst [vmem:[#allocation105_spill] sm:$0xff] %v7360_v2 }
 0x204   :  { %v7362_v41 = vpop.f32.mrb[130].mxu0 }
 0x205   :  { %10129 = vst [vmem:[#allocation106_spill] sm:$0xff] %v7362_v41  ;;  %v7364_v0 = vpop.f32.mrb[131].mxu0  ;;  %v1801_v41 = vlaneseq }
 0x206   :  { %10130 = vst [vmem:[#allocation107_spill] sm:$0xff] %v7364_v0  ;;  %v1796_v0 = vmul.f32 %v5870_v17, %v1793_v56 }
 0x208   :  { %v7366_v8 = vpop.f32.mrb[132].mxu0 }
 0x209   :  { %10131 = vst [vmem:[#allocation108_spill] sm:$0xff] %v7366_v8  ;;  %v7368_v11 = vpop.f32.mrb[133].mxu0 }
 0x20a   :  { %10132 = vst [vmem:[#allocation109_spill] sm:$0xff] %v7368_v11  ;;  %v1802_v11 = vshrl.u32 %v1801_v41, 7 }
 0x20c   :  { %v7370_v50 = vpop.f32.mrb[134].mxu0  ;;  %v7393_v63 = vsub.s32 0, %v1802_v11 }
 0x20d   :  { %10133 = vst [vmem:[#allocation110_spill] sm:$0xff] %v7370_v50  ;;  %v7372_v21 = vpop.f32.mrb[135].mxu0  ;;  %v1798_v50 = vmul.f32 %v1796_v0, %v6979_v53 }
 0x20e   :  { %10134 = vst [vmem:[#allocation111_spill] sm:$0xff] %v7372_v21  ;;  %10142 = vst [vmem:[#allocation118_spill] sm:$0xff] %v7393_v63  ;;  %v7400_v56 = vrot.slane %v1796_v0, %v7393_v63 }
 0x210   :  { %v7374_v42 = vpop.f32.mrb[136].mxu0  ;;  %v1816_v0 = vmul.f32 %v6957_v24, %v7400_v56  ;;  %v10156_v24 = vld [vmem:[#allocation28_spill] sm:$0xff] }
 0x211   :  { %10135 = vst [vmem:[#allocation112_spill] sm:$0xff] %v7374_v42  ;;  %v7379_v2 = vpop.f32.mrb[137].mxu0  ;;  %v1797_v42 = vld [vmem:[%s9940_s3] sm:$0x1]  ;;  %s5901_s3 = smov 16  }
 0x212   :  { %10137 = vst [vmem:[#allocation113_spill] sm:$0xff] %v7379_v2  ;;  %v1799_v2 = vsub.f32 %v1797_v42, %v1798_v50  ;;  %v10148_v42 = vld [vmem:[#allocation19_spill] sm:$0xff] }
 0x213   :  { %v1813_v50 = vmul.f32 %v7400_v56, %v10148_v42  ;;  %v10155_v42 = vld [vmem:[#allocation25_spill] sm:$0xff] }
 0x214   :  { %v7381_v14 = vpop.f32.mrb[138].mxu0  ;;  %v7403_v53 = vrot.slane %v1799_v2, %v7393_v63 }
 0x215   :  { %10138 = vst [vmem:[#allocation114_spill] sm:$0xff] %v7381_v14  ;;  %v7383_v8 = vpop.f32.mrb[139].mxu0 }
 0x216   :  { %10139 = vst [vmem:[#allocation115_spill] sm:$0xff] %v7383_v8  ;;  %v7423_v63 = vadd.f32 %v7403_v53, %v1813_v50  ;;  %v1817_v8 = vmul.f32 %v7400_v56, %v10155_v42 }
 0x218   :  { %v7386_v26 = vpop.f32.mrb[140].mxu0  ;;  %10151 = vst [vmem:[#allocation125_spill] sm:$0xff] %v7423_v63 }
 0x219   :  { %10140 = vst [vmem:[#allocation116_spill] sm:$0xff] %v7386_v26  ;;  %v7391_v21 = vpop.f32.mrb[141].mxu0 }
 0x21a   :  { %10141 = vst [vmem:[#allocation117_spill] sm:$0xff] %v7391_v21  ;;  %v1814_v21 = vmul.f32 %v6949_v1, %v7400_v56  ;;  %v10153_v1 = vld [vmem:[#allocation21_spill] sm:$0xff] }
 0x21c   :  { %v7395_v55 = vpop.f32.mrb[142].mxu0  ;;  %v7412_v11 = vadd.f32 %v7403_v53, %v1814_v21  ;;  %v1815_v21 = vmul.f32 %v7400_v56, %v10153_v1  ;;  %v7446_v1 = vadd.f32 %v7403_v53, %v1817_v8  ;;  %v10163_v8 = vld [vmem:[#allocation35_spill] sm:$0xff] }
 0x21d   :  { %10143 = vst [vmem:[#allocation119_spill] sm:$0xff] %v7395_v55  ;;  %v7397_v17 = vpop.f32.mrb[143].mxu0  ;;  %v1824_v39 = vmul.f32 %v10163_v8, %v7400_v56 }
 0x21e   :  { %10144 = vst [vmem:[#allocation120_spill] sm:$0xff] %v7397_v17  ;;  %10147 = vst [vmem:[#allocation123_spill] sm:$0xff] %v7412_v11  ;;  %v7440_v50 = vadd.f32 %v7403_v53, %v1815_v21  ;;  %v10160_v11 = vld [vmem:[#allocation29_spill] sm:$0xff]  ;;  %v10161_v21 = vld [vmem:[#allocation32_spill] sm:$0xff] }
 0x21f   :  { %v1822_v40 = vmul.f32 %v10161_v21, %v7400_v56 }
 0x220   :  { %v7405_v41 = vpop.f32.mrb[144].mxu0 }
 0x221   :  { %10145 = vst [vmem:[#allocation121_spill] sm:$0xff] %v7405_v41  ;;  %v7407_v26 = vpop.f32.mrb[145].mxu0  ;;  %v10154_v41 = vld [vmem:[#allocation23_spill] sm:$0xff] }
 0x222   :  { %10146 = vst [vmem:[#allocation122_spill] sm:$0xff] %v7407_v26  ;;  %v7426_v26 = vadd.f32 %v7403_v53, %v1816_v0  ;;  %v1818_v55 = vmul.f32 %v10154_v41, %v7400_v56 }
 0x224   :  { %v7418_v17 = vpop.f32.mrb[146].mxu0  ;;  %10152 = vst [vmem:[#allocation126_spill] sm:$0xff] %v7426_v26  ;;  %v7443_v0 = vadd.f32 %v7403_v53, %v1818_v55  ;;  %v10162_v55 = vld [vmem:[#allocation33_spill] sm:$0xff] }
 0x225   :  { %10149 = vst [vmem:[#allocation19_spill] sm:$0xff] %v7418_v17  ;;  %v7420_v2 = vpop.f32.mrb[147].mxu0  ;;  %v1820_v17 = vmul.f32 %v10156_v24, %v7400_v56  ;;  %v1821_v33 = vmul.f32 %v7400_v56, %v10162_v55  ;;  %v10166_v26 = vld [vmem:[#allocation41_spill] sm:$0xff]  ;;  %v1828_v55 = vmul.f32 %v7019_v32, %v7400_v56 }
 0x226   :  { %10150 = vst [vmem:[#allocation124_spill] sm:$0xff] %v7420_v2  ;;  %10158 = vst [vmem:[#allocation23_spill] sm:$0xff] %v7443_v0  ;;  %v1825_v21 = vmul.f32 %v7400_v56, %v10166_v26  ;;  %v1835_v0 = vmul.f32 %v7400_v56, %v7080_v10 }
 0x227   :  { %v7449_v41 = vadd.f32 %v7403_v53, %v1820_v17  ;;  %v10164_v17 = vld [vmem:[#allocation37_spill] sm:$0xff]  ;;  %v7480_v8 = vadd.f32 %v7403_v53, %v1821_v33  ;;  %v7497_v32 = vadd.f32 %v7403_v53, %v1828_v55  ;;  %v1827_v33 = vmul.f32 %v7400_v56, %v7024_v61 }
 0x228   :  { %v7437_v14 = vpop.f32.mrb[148].mxu0  ;;  %v1823_v18 = vmul.f32 %v7400_v56, %v10164_v17  ;;  %v7483_v17 = vadd.f32 %v7403_v53, %v1824_v39  ;;  %v7494_v26 = vadd.f32 %v7403_v53, %v1825_v21  ;;  %v1830_v39 = vmul.f32 %v7033_v45, %v7400_v56 }
 0x229   :  { %10157 = vst [vmem:[#allocation21_spill] sm:$0xff] %v7437_v14  ;;  %v7451_v42 = vpop.f32.mrb[149].mxu0  ;;  %v1819_v14 = vmul.f32 %v7400_v56, %v10160_v11  ;;  %v7471_v11 = vadd.f32 %v7403_v53, %v1822_v40  ;;  %v7509_v47 = vadd.f32 %v7403_v53, %v1827_v33  ;;  %v1829_v61 = vmul.f32 %v7400_v56, %v7040_v54 }
 0x22a   :  { %10159 = vst [vmem:[#allocation25_spill] sm:$0xff] %v7451_v42  ;;  %v10165_v42 = vld [vmem:[#allocation40_spill] sm:$0xff]  ;;  %v7512_v55 = vadd.f32 %v7403_v53, %v1830_v39 }
 0x22b   :  { %v1826_v24 = vmul.f32 %v10165_v42, %v7400_v56  ;;  %v7468_v2 = vadd.f32 %v7403_v53, %v1819_v14  ;;  %v7486_v14 = vadd.f32 %v7403_v53, %v1823_v18  ;;  %10169 = vst [vmem:[#allocation32_spill] sm:$0xff] %v7509_v47  ;;  %v7528_v54 = vadd.f32 %v7403_v53, %v1829_v61 }
 0x22c   :  { %v7477_v63 = vpop.f32.mrb[150].mxu0  ;;  %v1832_v18 = vmul.f32 %v7047_v7, %v7400_v56  ;;  %v1836_v61 = vmul.f32 %v7075_v52, %v7400_v56  ;;  %v1842_v52 = vmul.f32 %v7115_v20, %v7400_v56 }
 0x22d   :  { %10167 = vst [vmem:[#allocation28_spill] sm:$0xff] %v7477_v63  ;;  %v7489_v40 = vadd.f32 %v7403_v53, %v1826_v24  ;;  %v7491_v42 = vpop.f32.mrb[151].mxu0  ;;  %10172 = vst [vmem:[#allocation37_spill] sm:$0xff] %v7528_v54  ;;  %v1833_v24 = vmul.f32 %v7400_v56, %v7064_v27 }
 0x22e   :  { %10168 = vst [vmem:[#allocation29_spill] sm:$0xff] %v7491_v42  ;;  %v1834_v42 = vmul.f32 %v7059_v13, %v7400_v56  ;;  %v7562_v10 = vadd.f32 %v7403_v53, %v1836_v61 }
 0x22f   :  { %v7556_v33 = vadd.f32 %v7403_v53, %v1833_v24  ;;  %v1839_v24 = vmul.f32 %v7400_v56, %v7106_v23 }
 0x230   :  { %v7516_v45 = vpop.f32.mrb[152].mxu0  ;;  %v7553_v27 = vadd.f32 %v7403_v53, %v1834_v42  ;;  %10177 = vst [vmem:[#allocation127_spill] sm:$0xff] %v7562_v10  ;;  %v1837_v42 = vmul.f32 %v7400_v56, %v7094_v12  ;;  %v1844_v12 = vmul.f32 %v7129_v35, %v7400_v56 }
 0x231   :  { %10170 = vst [vmem:[#allocation33_spill] sm:$0xff] %v7516_v45  ;;  %v7522_v21 = vpop.f32.mrb[153].mxu0  ;;  %v10173_v45 = vld [vmem:[#allocation47_spill] sm:$0xff]  ;;  %10175 = vst [vmem:[#allocation41_spill] sm:$0xff] %v7556_v33  ;;  %v7595_v20 = vadd.f32 %v7403_v53, %v1839_v24  ;;  %v10189_v24 = vld [vmem:[#allocation22_spill] sm:$0xff] }
 0x232   :  { %10171 = vst [vmem:[#allocation35_spill] sm:$0xff] %v7522_v21  ;;  %v1831_v63 = vmul.f32 %v7400_v56, %v10173_v45  ;;  %v7547_v45 = vadd.f32 %v7403_v53, %v1832_v18  ;;  %v1840_v18 = vmul.f32 %v7101_v19, %v7400_v56  ;;  %v7589_v19 = vadd.f32 %v7403_v53, %v1837_v42  ;;  %v10211_v33 = vld [vmem:[#allocation46_spill] sm:$0xff] }
 0x233   :  { %v7609_v42 = vadd.f32 %v7403_v53, %v1844_v12 }
 0x234   :  { %v7544_v7 = vpop.f32.mrb[154].mxu0  ;;  %v7550_v13 = vadd.f32 %v7403_v53, %v1831_v63  ;;  %v1838_v63 = vmul.f32 %v7087_v62, %v7400_v56  ;;  %v7592_v23 = vadd.f32 %v7403_v53, %v1840_v18  ;;  %v1843_v18 = vmul.f32 %v7400_v56, %v7136_v46 }
 0x235   :  { %10174 = vst [vmem:[#allocation40_spill] sm:$0xff] %v7544_v7  ;;  %v7558_v39 = vpop.f32.mrb[155].mxu0  ;;  %v7565_v7 = vadd.f32 %v7403_v53, %v1835_v0  ;;  %v1841_v0 = vmul.f32 %v7400_v56, %v7122_v31  ;;  %10185 = vst [vmem:[#allocation133_spill] sm:$0xff] %v7609_v42  ;;  %v1845_v46 = vmul.f32 %v7400_v56, %v7148_v16 }
 0x236   :  { %10176 = vst [vmem:[#allocation47_spill] sm:$0xff] %v7558_v39  ;;  %v7578_v61 = vadd.f32 %v7403_v53, %v1838_v63  ;;  %v10179_v39 = vld [vmem:[#allocation9_spill] sm:$0xff]  ;;  %10181 = vst [vmem:[#allocation129_spill] sm:$0xff] %v7592_v23  ;;  %v7598_v63 = vadd.f32 %v7403_v53, %v1842_v52  ;;  %v7621_v12 = vadd.f32 %v7403_v53, %v1843_v18 }
 0x237   :  { %v1917_v62 = vmul.f32 %v7400_v56, %v10179_v39  ;;  %v7603_v39 = vadd.f32 %v7403_v53, %v1841_v0  ;;  %v1846_v18 = vmul.f32 %v7141_v30, %v7400_v56  ;;  %v1926_v23 = vmul.f32 %v10189_v24, %v7400_v56 }
 0x238   :  { %10178 = vst [vmem:[#allocation128_spill] sm:$0xff] %v7578_v61  ;;  %v7586_v21 = vpop.f32.mrb[156].mxu0  ;;  %10182 = vst [vmem:[#allocation130_spill] sm:$0xff] %v7598_v63  ;;  %v10191_v61 = vld [vmem:[#allocation26_spill] sm:$0xff]  ;;  %v1848_v30 = vmul.f32 %v7157_v43, %v7400_v56  ;;  %v7653_v42 = vadd.f32 %v7403_v53, %v1845_v46  ;;  %v1847_v43 = vmul.f32 %v7400_v56, %v7164_v9  ;;  %v10197_v46 = vld [vmem:[#allocation31_spill] sm:$0xff] }
 0x239   :  { %10180 = vst [vmem:[#allocation9_spill] sm:$0xff] %v7586_v21  ;;  %v7600_v31 = vpop.f32.mrb[157].mxu0  ;;  %10184 = vst [vmem:[#allocation132_spill] sm:$0xff] %v7603_v39  ;;  %v7606_v35 = vadd.f32 %v7403_v53, %v1917_v62  ;;  %v10190_v21 = vld [vmem:[#allocation24_spill] sm:$0xff]  ;;  %v7646_v54 = vadd.f32 %v7403_v53, %v1846_v18  ;;  %v10192_v62 = vld [vmem:[#allocation27_spill] sm:$0xff]  ;;  %v7656_v24 = vadd.f32 %v7403_v53, %v1926_v23 }
 0x23a   :  { %10183 = vst [vmem:[#allocation131_spill] sm:$0xff] %v7600_v31  ;;  %10186 = vst [vmem:[#allocation134_spill] sm:$0xff] %v7621_v12  ;;  %v1925_v52 = vmul.f32 %v7400_v56, %v10190_v21  ;;  %v1927_v16 = vmul.f32 %v7400_v56, %v10192_v62  ;;  %v7665_v18 = vadd.f32 %v7403_v53, %v1848_v30  ;;  %v10196_v62 = vld [vmem:[#allocation30_spill] sm:$0xff] }
 0x23b   :  { %10193 = vst [vmem:[#allocation22_spill] sm:$0xff] %v7653_v42  ;;  %v1930_v0 = vmul.f32 %v10196_v62, %v7400_v56  ;;  %v1929_v12 = vmul.f32 %v7400_v56, %v10197_v46  ;;  %v1849_v30 = vmul.f32 %v7400_v56, %v7176_v48  ;;  %v7683_v9 = vadd.f32 %v7403_v53, %v1847_v43  ;;  %v10205_v43 = vld [vmem:[#allocation39_spill] sm:$0xff]  ;;  %v10207_v63 = vld [vmem:[#allocation42_spill] sm:$0xff] }
 0x23c   :  { %v7623_v47 = vpop.f32.mrb[158].mxu0  ;;  %v7659_v21 = vadd.f32 %v7403_v53, %v1925_v52  ;;  %10195 = vst [vmem:[#allocation26_spill] sm:$0xff] %v7665_v18  ;;  %v7674_v23 = vadd.f32 %v7403_v53, %v1927_v16  ;;  %v10199_v52 = vld [vmem:[#allocation34_spill] sm:$0xff]  ;;  %v1936_v42 = vmul.f32 %v10207_v63, %v7400_v56  ;;  %v10215_v63 = vld [vmem:[#allocation48_spill] sm:$0xff]  ;;  %v1858_v18 = vmul.f32 %v7225_v15, %v7400_v56 }
 0x23d   :  { %10187 = vst [vmem:[#allocation135_spill] sm:$0xff] %v7623_v47  ;;  %v7629_v31 = vpop.f32.mrb[159].mxu0  ;;  %v1932_v39 = vmul.f32 %v10199_v52, %v7400_v56  ;;  %v7686_v62 = vadd.f32 %v7403_v53, %v1930_v0  ;;  %v7689_v46 = vadd.f32 %v7403_v53, %v1929_v12  ;;  %v10202_v16 = vld [vmem:[#allocation38_spill] sm:$0xff]  ;;  %v7700_v48 = vadd.f32 %v7403_v53, %v1849_v30 }
 0x23e   :  { %10188 = vst [vmem:[#allocation136_spill] sm:$0xff] %v7629_v31  ;;  %v1928_v31 = vmul.f32 %v10191_v61, %v7400_v56  ;;  %10198 = vst [vmem:[#allocation27_spill] sm:$0xff] %v7674_v23  ;;  %v1934_v10 = vmul.f32 %v10202_v16, %v7400_v56  ;;  %v1933_v47 = vmul.f32 %v7400_v56, %v10205_v43 }
 0x23f   :  { %10200 = vst [vmem:[#allocation30_spill] sm:$0xff] %v7686_v62  ;;  %10201 = vst [vmem:[#allocation31_spill] sm:$0xff] %v7689_v46  ;;  %v7694_v52 = vadd.f32 %v7403_v53, %v1932_v39  ;;  %v1852_v43 = vmul.f32 %v7183_v3, %v7400_v56  ;;  %v1851_v12 = vmul.f32 %v7400_v56, %v7190_v28  ;;  %v10210_v39 = vld [vmem:[#allocation45_spill] sm:$0xff] }
 0x240   :  { %v7662_v61 = vadd.f32 %v7403_v53, %v1928_v31  ;;  %v1850_v31 = vmul.f32 %v7171_v37, %v7400_v56  ;;  %10204 = vst [vmem:[#allocation38_spill] sm:$0xff] %v7700_v48  ;;  %v7708_v16 = vadd.f32 %v7403_v53, %v1934_v10  ;;  %v7714_v30 = vadd.f32 %v7403_v53, %v1933_v47 }
 0x241   :  { %v7734_v10 = vadd.f32 %v7403_v53, %v1936_v42  ;;  %v1940_v47 = vmul.f32 %v10211_v33, %v7400_v56  ;;  %v7741_v62 = vadd.f32 %v7403_v53, %v1852_v43  ;;  %v1854_v28 = vmul.f32 %v7199_v51, %v7400_v56 }
 0x242   :  { %10194 = vst [vmem:[#allocation24_spill] sm:$0xff] %v7662_v61  ;;  %v7697_v37 = vadd.f32 %v7403_v53, %v1850_v31  ;;  %10206 = vst [vmem:[#allocation39_spill] sm:$0xff] %v7708_v16  ;;  %v10208_v61 = vld [vmem:[#allocation43_spill] sm:$0xff]  ;;  %v1937_v31 = vmul.f32 %v7400_v56, %v10210_v39  ;;  %v1939_v33 = vmul.f32 %v7400_v56, %v10215_v63  ;;  %v10218_v16 = vld [vmem:[#allocation50_spill] sm:$0xff] }
 0x243   :  { %v1935_v0 = vmul.f32 %v7400_v56, %v10208_v61  ;;  %10209 = vst [vmem:[#allocation42_spill] sm:$0xff] %v7734_v10  ;;  %10212 = vst [vmem:[#allocation43_spill] sm:$0xff] %v7741_v62  ;;  %v7747_v61 = vadd.f32 %v7403_v53, %v1851_v12  ;;  %v7755_v39 = vadd.f32 %v7403_v53, %v1940_v47  ;;  %v10217_v12 = vld [vmem:[#allocation49_spill] sm:$0xff]  ;;  %v10295_v62 = vmax.f32 %v7449_v41, 0.0 }
 0x244   :  { %10203 = vst [vmem:[#allocation34_spill] sm:$0xff] %v7697_v37  ;;  %v7752_v42 = vadd.f32 %v7403_v53, %v1937_v31  ;;  %v1853_v43 = vmul.f32 %v7400_v56, %v7204_v5  ;;  %v1942_v46 = vmul.f32 %v10217_v12, %v7400_v56  ;;  %v1941_v51 = vmul.f32 %v7400_v56, %v10218_v16  ;;  %v10219_v31 = vld [vmem:[#allocation51_spill] sm:$0xff] }
 0x245   :  { %v7744_v3 = vadd.f32 %v7403_v53, %v1935_v0  ;;  %v7762_v0 = vadd.f32 %v7403_v53, %v1854_v28  ;;  %v1944_v23 = vmul.f32 %v10219_v31, %v7400_v56  ;;  %v7771_v47 = vadd.f32 %v7403_v53, %v1939_v33  ;;  %v10220_v28 = vld [vmem:[#allocation52_spill] sm:$0xff] }
 0x246   :  { %10214 = vst [vmem:[#allocation46_spill] sm:$0xff] %v7752_v42  ;;  %v7774_v63 = vadd.f32 %v7403_v53, %v1853_v43  ;;  %v1856_v5 = vmul.f32 %v7213_v59, %v7400_v56  ;;  %v1943_v37 = vmul.f32 %v7400_v56, %v10220_v28  ;;  %v7781_v12 = vadd.f32 %v7403_v53, %v1942_v46  ;;  %v10230_v46 = vld [vmem:[#allocation56_spill] sm:$0xff] }
 0x247   :  { %10213 = vst [vmem:[#allocation45_spill] sm:$0xff] %v7744_v3  ;;  %10216 = vst [vmem:[#allocation48_spill] sm:$0xff] %v7762_v0  ;;  %v7784_v16 = vadd.f32 %v7403_v53, %v1941_v51  ;;  %v7787_v31 = vadd.f32 %v7403_v53, %v1944_v23  ;;  %v1855_v33 = vmul.f32 %v7400_v56, %v7218_v36  ;;  %v10228_v36 = vld [vmem:[#allocation55_spill] sm:$0xff] }
 0x248   :  { %10221 = vst [vmem:[#allocation49_spill] sm:$0xff] %v7781_v12  ;;  %v7794_v59 = vadd.f32 %v7403_v53, %v1856_v5  ;;  %v7797_v28 = vadd.f32 %v7403_v53, %v1943_v37  ;;  %v10227_v5 = vld [vmem:[#allocation53_spill] sm:$0xff]  ;;  %v1948_v43 = vmul.f32 %v10228_v36, %v7400_v56  ;;  %v1947_v51 = vmul.f32 %v7400_v56, %v10230_v46 }
 0x249   :  { %10222 = vst [vmem:[#allocation50_spill] sm:$0xff] %v7784_v16  ;;  %10223 = vst [vmem:[#allocation51_spill] sm:$0xff] %v7787_v31  ;;  %v7803_v48 = vadd.f32 %v7403_v53, %v1855_v33  ;;  %v1946_v10 = vmul.f32 %v10227_v5, %v7400_v56  ;;  %v1857_v23 = vmul.f32 %v7400_v56, %v7232_v29  ;;  %v10233_v36 = vld [vmem:[#allocation57_spill] sm:$0xff]  ;;  %v10234_v31 = vld [vmem:[#allocation58_spill] sm:$0xff] }
 0x24a   :  { %10224 = vst [vmem:[#allocation52_spill] sm:$0xff] %v7794_v59  ;;  %10225 = vst [vmem:[#allocation137_spill] sm:$0xff] %v7797_v28  ;;  %v7829_v33 = vadd.f32 %v7403_v53, %v1948_v43  ;;  %v7832_v42 = vadd.f32 %v7403_v53, %v1858_v18  ;;  %v1950_v15 = vmul.f32 %v10233_v36, %v7400_v56  ;;  %v10237_v43 = vld [vmem:[#allocation60_spill] sm:$0xff]  ;;  %v10243_v16 = vld [vmem:[#allocation62_spill] sm:$0xff] }
 0x24b   :  { %10226 = vst [vmem:[#allocation138_spill] sm:$0xff] %v7803_v48  ;;  %v7822_v37 = vadd.f32 %v7403_v53, %v1946_v10  ;;  %v1949_v5 = vmul.f32 %v7400_v56, %v10234_v31  ;;  %v7839_v10 = vadd.f32 %v7403_v53, %v1947_v51  ;;  %v7842_v46 = vadd.f32 %v7403_v53, %v1857_v23  ;;  %v10240_v51 = vld [vmem:[#allocation61_spill] sm:$0xff] }
 0x24c   :  { %10231 = vst [vmem:[#allocation55_spill] sm:$0xff] %v7829_v33  ;;  %10232 = vst [vmem:[#allocation56_spill] sm:$0xff] %v7832_v42  ;;  %v1860_v29 = vmul.f32 %v7241_v4, %v7400_v56  ;;  %v1951_v28 = vmul.f32 %v7400_v56, %v10237_v43  ;;  %v7849_v18 = vadd.f32 %v7403_v53, %v1950_v15  ;;  %v10244_v15 = vld [vmem:[#allocation63_spill] sm:$0xff] }
 0x24d   :  { %10229 = vst [vmem:[#allocation53_spill] sm:$0xff] %v7822_v37  ;;  %10235 = vst [vmem:[#allocation57_spill] sm:$0xff] %v7839_v10  ;;  %v7852_v36 = vadd.f32 %v7403_v53, %v1949_v5  ;;  %v1859_v31 = vmul.f32 %v7400_v56, %v7246_v44  ;;  %v1954_v12 = vmul.f32 %v10240_v51, %v7400_v56  ;;  %v10247_v51 = vld [vmem:[#allocation64_spill] sm:$0xff]  ;;  %v10288_v37 = vld [vmem:[#allocation123_spill] sm:$0xff] }
 0x24e   :  { %10236 = vst [vmem:[#allocation58_spill] sm:$0xff] %v7842_v46  ;;  %10238 = vst [vmem:[#allocation60_spill] sm:$0xff] %v7849_v18  ;;  %v7859_v23 = vadd.f32 %v7403_v53, %v1860_v29  ;;  %v7862_v4 = vadd.f32 %v7403_v53, %v1951_v28  ;;  %v1953_v43 = vmul.f32 %v7400_v56, %v10243_v16  ;;  %v10252_v18 = vld [vmem:[#allocation66_spill] sm:$0xff] }
 0x24f   :  { %10239 = vst [vmem:[#allocation139_spill] sm:$0xff] %v7852_v36  ;;  %v1956_v3 = vmul.f32 %v10244_v15, %v7400_v56  ;;  %v7870_v48 = vadd.f32 %v7403_v53, %v1859_v31  ;;  %v7873_v44 = vadd.f32 %v7403_v53, %v1954_v12  ;;  %v1955_v29 = vmul.f32 %v7400_v56, %v10247_v51 }
 0x250   :  { %10241 = vst [vmem:[#allocation61_spill] sm:$0xff] %v7859_v23  ;;  %10242 = vst [vmem:[#allocation140_spill] sm:$0xff] %v7862_v4  ;;  %v7880_v16 = vadd.f32 %v7403_v53, %v1953_v43  ;;  %v1861_v51 = vmul.f32 %v7400_v56, %v7258_v25  ;;  %v1957_v0 = vmul.f32 %v7400_v56, %v10252_v18  ;;  %v10255_v4 = vld [vmem:[#allocation69_spill] sm:$0xff]  ;;  %v10258_v18 = vld [vmem:[#allocation70_spill] sm:$0xff] }
 0x251   :  { %10245 = vst [vmem:[#allocation62_spill] sm:$0xff] %v7870_v48  ;;  %10246 = vst [vmem:[#allocation63_spill] sm:$0xff] %v7873_v44  ;;  %v7883_v15 = vadd.f32 %v7403_v53, %v1956_v3  ;;  %v7888_v12 = vadd.f32 %v7403_v53, %v1955_v29  ;;  %v10251_v29 = vld [vmem:[#allocation65_spill] sm:$0xff]  ;;  %v1960_v33 = vmul.f32 %v7192_v60, %v7400_v56  ;;  %v10271_v23 = vld [vmem:[#allocation86_spill] sm:$0xff]  ;;  %v10289_v44 = vmax.f32 %v10288_v37, 0.0 }
 0x252   :  { %10248 = vst [vmem:[#allocation64_spill] sm:$0xff] %v7880_v16  ;;  %v7899_v31 = vadd.f32 %v7403_v53, %v1861_v51  ;;  %v1958_v42 = vmul.f32 %v10251_v29, %v7400_v56  ;;  %v10254_v51 = vld [vmem:[#allocation68_spill] sm:$0xff]  ;;  %v1961_v29 = vmul.f32 %v7400_v56, %v10255_v4  ;;  %v7918_v25 = vadd.f32 %v7403_v53, %v1957_v0  ;;  %v10262_v4 = vld [vmem:[#allocation73_spill] sm:$0xff] }
 0x253   :  { %10249 = vst [vmem:[#allocation141_spill] sm:$0xff] %v7883_v15  ;;  %10250 = vst [vmem:[#allocation142_spill] sm:$0xff] %v7888_v12  ;;  %v1962_v5 = vmul.f32 %v10254_v51, %v7400_v56  ;;  %v7921_v28 = vadd.f32 %v7403_v53, %v1960_v33  ;;  %v1964_v60 = vmul.f32 %v10258_v18, %v7400_v56  ;;  %v10259_v15 = vld [vmem:[#allocation71_spill] sm:$0xff]  ;;  %v10290_v16 = vld [vmem:[#allocation125_spill] sm:$0xff] }
 0x254   :  { %v7911_v3 = vadd.f32 %v7403_v53, %v1958_v42  ;;  %10256 = vst [vmem:[#allocation66_spill] sm:$0xff] %v7918_v25  ;;  %v1963_v43 = vmul.f32 %v7400_v56, %v10259_v15  ;;  %v7932_v51 = vadd.f32 %v7403_v53, %v1961_v29  ;;  %v1965_v0 = vmul.f32 %v7400_v56, %v10262_v4  ;;  %v10265_v18 = vld [vmem:[#allocation75_spill] sm:$0xff] }
 0x255   :  { %10257 = vst [vmem:[#allocation68_spill] sm:$0xff] %v7921_v28  ;;  %v7929_v12 = vadd.f32 %v7403_v53, %v1962_v5  ;;  %v7937_v33 = vadd.f32 %v7403_v53, %v1964_v60  ;;  %v1968_v15 = vmul.f32 %v7248_v49, %v7400_v56  ;;  %v1967_v42 = vmul.f32 %v7400_v56, %v10265_v18 }
 0x256   :  { %10253 = vst [vmem:[#allocation65_spill] sm:$0xff] %v7911_v3  ;;  %10261 = vst [vmem:[#allocation70_spill] sm:$0xff] %v7932_v51  ;;  %v7940_v36 = vadd.f32 %v7403_v53, %v1963_v43  ;;  %v7947_v5 = vadd.f32 %v7403_v53, %v1965_v0  ;;  %v1870_v29 = vmul.f32 %v7307_v34, %v7400_v56  ;;  %v10276_v3 = vld [vmem:[#allocation92_spill] sm:$0xff]  ;;  %v10291_v59 = vmax.f32 %v10290_v16, 0.0 }
 0x257   :  { %10260 = vst [vmem:[#allocation69_spill] sm:$0xff] %v7929_v12  ;;  %10263 = vst [vmem:[#allocation71_spill] sm:$0xff] %v7937_v33  ;;  %v1970_v4 = vmul.f32 %v7265_v58, %v7400_v56  ;;  %v1869_v60 = vmul.f32 %v7400_v56, %v7312_v57  ;;  %v7958_v49 = vadd.f32 %v7403_v53, %v1968_v15 }
 0x258   :  { %10264 = vst [vmem:[#allocation73_spill] sm:$0xff] %v7940_v36  ;;  %10266 = vst [vmem:[#allocation75_spill] sm:$0xff] %v7947_v5  ;;  %v7961_v18 = vadd.f32 %v7403_v53, %v1967_v42  ;;  %v7964_v0 = vadd.f32 %v7403_v53, %v1870_v29  ;;  %v1969_v57 = vmul.f32 %v7400_v56, %v7274_v22  ;;  %v10273_v22 = vld [vmem:[#allocation89_spill] sm:$0xff] }
 0x259   :  { %10267 = vst [vmem:[#allocation143_spill] sm:$0xff] %v7958_v49  ;;  %v7967_v34 = vadd.f32 %v7403_v53, %v1970_v4  ;;  %v7970_v58 = vadd.f32 %v7403_v53, %v1869_v60  ;;  %v1872_v42 = vmul.f32 %v7317_v6, %v7400_v56  ;;  %v1972_v15 = vmul.f32 %v7281_v38, %v7400_v56  ;;  %v10274_v38 = vld [vmem:[#allocation90_spill] sm:$0xff]  ;;  %v10275_v29 = vld [vmem:[#allocation81_spill] sm:$0xff] }
 0x25a   :  { %10268 = vst [vmem:[#allocation144_spill] sm:$0xff] %v7961_v18  ;;  %v7983_v60 = vadd.f32 %v7403_v53, %v1969_v57  ;;  %v1871_v6 = vmul.f32 %v7400_v56, %v10271_v23  ;;  %v2226_v4 = vmax.f32 %v7964_v0, 0.0  ;;  %v1874_v33 = vmul.f32 %v10273_v22, %v7400_v56 }
 0x25b   :  { %10269 = vst [vmem:[#allocation145_spill] sm:$0xff] %v7967_v34  ;;  %v7987_v43 = vadd.f32 %v7403_v53, %v1872_v42  ;;  %v2225_v57 = vmax.f32 %v7970_v58, 0.0  ;;  %v7998_v5 = vadd.f32 %v7403_v53, %v1972_v15  ;;  %v1873_v25 = vmul.f32 %v7400_v56, %v10274_v38  ;;  %v10277_v58 = vld [vmem:[#allocation94_spill] sm:$0xff]  ;;  %v10278_v38 = vld [vmem:[#allocation95_spill] sm:$0xff] }
 0x25c   :  { %10270 = vst [vmem:[#allocation146_spill] sm:$0xff] %v7983_v60  ;;  %v2052_v42 = vadd.f32 %v7403_v53, %v1871_v6  ;;  %v1971_v0 = vmul.f32 %v7400_v56, %v10275_v29  ;;  %v1876_v34 = vmul.f32 %v10276_v3, %v7400_v56  ;;  %v1875_v15 = vmul.f32 %v7400_v56, %v10277_v58  ;;  %v10279_v60 = vld [vmem:[#allocation97_spill] sm:$0xff]  ;;  %v10280_v58 = vld [vmem:[#allocation98_spill] sm:$0xff] }
 0x25d   :  { %10272 = vst [vmem:[#allocation86_spill] sm:$0xff] %v7998_v5  ;;  %v2228_v36 = vmax.f32 %v7987_v43, 0.0  ;;  %v8014_v6 = vadd.f32 %v7403_v53, %v1874_v33  ;;  %v2054_v22 = vadd.f32 %v7403_v53, %v1873_v25  ;;  %v1878_v12 = vmul.f32 %v10278_v38, %v7400_v56  ;;  %v10284_v43 = vld [vmem:[#allocation101_spill] sm:$0xff] }
 0x25e   :  { %v2057_v23 = vadd.f32 %v7403_v53, %v1876_v34  ;;  %v8021_v29 = vadd.f32 %v7403_v53, %v1875_v15  ;;  %v1877_v3 = vmul.f32 %v7400_v56, %v10279_v60  ;;  %v1880_v48 = vmul.f32 %v10280_v58, %v7400_v56  ;;  %v10282_v15 = vld [vmem:[#allocation99_spill] sm:$0xff]  ;;  %v10283_v60 = vld [vmem:[#allocation100_spill] sm:$0xff] }
 0x25f   :  { %v2227_v33 = vmax.f32 %v2052_v42, 0.0  ;;  %v8029_v46 = vadd.f32 %v7403_v53, %v1971_v0  ;;  %v2059_v25 = vadd.f32 %v7403_v53, %v1878_v12  ;;  %v1879_v51 = vmul.f32 %v7400_v56, %v10282_v15  ;;  %v10285_v0 = vld [vmem:[#allocation102_spill] sm:$0xff]  ;;  %v10287_v58 = vld [vmem:[#allocation104_spill] sm:$0xff] }
 0x260   :  { %v2058_v38 = vadd.f32 %v7403_v53, %v1877_v3  ;;  %v2061_v34 = vadd.f32 %v7403_v53, %v1880_v48  ;;  %v1882_v28 = vmul.f32 %v10283_v60, %v7400_v56  ;;  %v2229_v49 = vmax.f32 %v2054_v22, 0.0  ;;  %v10286_v22 = vld [vmem:[#allocation103_spill] sm:$0xff] }
 0x261   :  { %10281 = vst [vmem:[#allocation89_spill] sm:$0xff] %v8029_v46  ;;  %v1881_v42 = vmul.f32 %v7400_v56, %v10284_v43  ;;  %v1884_v5 = vmul.f32 %v10285_v0, %v7400_v56  ;;  %v2232_v12 = vmax.f32 %v2057_v23, 0.0  ;;  %v2231_v3 = vmax.f32 %v8021_v29, 0.0 }
 0x262   :  { %v2060_v48 = vadd.f32 %v7403_v53, %v1879_v51  ;;  %v8046_v46 = vadd.f32 %v7403_v53, %v1882_v28  ;;  %v1883_v43 = vmul.f32 %v7400_v56, %v10286_v22  ;;  %v1886_v0 = vmul.f32 %v10287_v58, %v7400_v56 }
 0x263   :  { %v8049_v15 = vadd.f32 %v7403_v53, %v1881_v42  ;;  %v8052_v60 = vadd.f32 %v7403_v53, %v1884_v5  ;;  %v2234_v23 = vmax.f32 %v2059_v25, 0.0  ;;  %v2233_v18 = vmax.f32 %v2058_v38, 0.0  ;;  %v10292_v25 = vld [vmem:[#allocation105_spill] sm:$0xff] }
 0x264   :  { %v2236_v29 = vmax.f32 %v2061_v34, 0.0  ;;  %v2235_v10 = vmax.f32 %v2060_v48, 0.0  ;;  %v2238_v51 = vmax.f32 %v8046_v46, 0.0  ;;  %v8061_v42 = vadd.f32 %v7403_v53, %v1883_v43  ;;  %v10293_v34 = vld [vmem:[#allocation106_spill] sm:$0xff] }
 0x265   :  { %v8064_v5 = vadd.f32 %v7403_v53, %v1886_v0  ;;  %v5484_v22 = vpack.i.bf16 %v10289_v44, %v2226_v4  ;;  %v5474_v58 = vpack.i.bf16 %v10291_v59, %v2225_v57  ;;  %v1885_v38 = vmul.f32 %v7400_v56, %v10292_v25  ;;  %v10296_v4 = vld [vmem:[#allocation107_spill] sm:$0xff]  ;;  %v10297_v57 = vld [vmem:[#allocation108_spill] sm:$0xff] }
 0x266   :  { %v1888_v46 = vmul.f32 %v10293_v34, %v7400_v56  ;;  %v2240_v48 = vmax.f32 %v8052_v60, 0.0  ;;  %v2239_v43 = vmax.f32 %v8061_v42, 0.0  ;;  %v10294_v28 = vmax.f32 %v7440_v50, 0.0  ;;  %v10336_v60 = vld [vmem:[#allocation124_spill] sm:$0xff] }
 0x267   :  { %v5479_v37 = vpack.i.bf16 %v10295_v62, %v2232_v12  ;;  %v2242_v44 = vmax.f32 %v8064_v5, 0.0  ;;  %5485 = vrot.lane.b32.xlu1 %v5484_v22, %s5901_s3  ;;  %5475 = vrot.lane.b32.xlu0 %v5474_v58, %s5901_s3  ;;  %v8084_v59 = vadd.f32 %v7403_v53, %v1885_v38  ;;  %v1887_v50 = vmul.f32 %v7400_v56, %v10296_v4  ;;  %v10300_v22 = vld [vmem:[#allocation109_spill] sm:$0xff] }
 0x268   :  { %v5494_v0 = vpack.i.bf16 %v10294_v28, %v2227_v33  ;;  %v8087_v16 = vadd.f32 %v7403_v53, %v1888_v46  ;;  %v1890_v41 = vmul.f32 %v10297_v57, %v7400_v56  ;;  %v10298_v62 = vmax.f32 %v7471_v11, 0.0  ;;  %v10301_v46 = vld [vmem:[#allocation110_spill] sm:$0xff] }
 0x269   :  { %v10299_v12 = vmax.f32 %v7480_v8, 0.0  ;;  %v1889_v58 = vmul.f32 %v7400_v56, %v10300_v22  ;;  %v8102_v34 = vadd.f32 %v7403_v53, %v1887_v50  ;;  %v1892_v4 = vmul.f32 %v10301_v46, %v7400_v56  ;;  %v10306_v46 = vld [vmem:[#allocation112_spill] sm:$0xff] }
 0x26a   :  { %v5499_v33 = vpack.i.bf16 %v10298_v62, %v2234_v23  ;;  %v2244_v38 = vmax.f32 %v8087_v16, 0.0  ;;  %v8107_v57 = vadd.f32 %v7403_v53, %v1890_v41  ;;  %v10302_v8 = vmax.f32 %v7446_v1, 0.0  ;;  %v10303_v23 = vld [vmem:[#allocation126_spill] sm:$0xff]  ;;  %v10305_v41 = vld [vmem:[#allocation111_spill] sm:$0xff] }
 0x26b   :  { %v5489_v28 = vpack.i.bf16 %v10299_v12, %v2233_v18  ;;  %v8110_v11 = vadd.f32 %v7403_v53, %v1889_v58  ;;  %v10304_v62 = vmax.f32 %v10303_v23, 0.0  ;;  %5495 = vrot.lane.b32.xlu1 %v5494_v0, %s5901_s3  ;;  %5480 = vrot.lane.b32.xlu0 %v5479_v37, %s5902_s23  ;;  %v8120_v22 = vadd.f32 %v7403_v53, %v1892_v4 }
 0x26c   :  { %v5514_v18 = vpack.i.bf16 %v10302_v8, %v2229_v49  ;;  %v1891_v58 = vmul.f32 %v7400_v56, %v10305_v41  ;;  %v1894_v1 = vmul.f32 %v10306_v46, %v7400_v56  ;;  %v10307_v0 = vmax.f32 %v7483_v17, 0.0  ;;  %v10309_v41 = vld [vmem:[#allocation113_spill] sm:$0xff]  ;;  %v10310_v49 = vld [vmem:[#allocation114_spill] sm:$0xff] }
 0x26d   :  { %v5504_v12 = vpack.i.bf16 %v10304_v62, %v2228_v36  ;;  %v10308_v37 = vmax.f32 %v7486_v14, 0.0  ;;  %v2248_v62 = vmax.f32 %v8120_v22, 0.0  ;;  %v1893_v46 = vmul.f32 %v7400_v56, %v10309_v41  ;;  %v10313_v14 = vld [vmem:[#allocation23_spill] sm:$0xff]  ;;  %v10370_v22 = vld [vmem:[#allocation136_spill] sm:$0xff] }
 0x26e   :  { %v5519_v8 = vpack.i.bf16 %v10307_v0, %v2236_v29  ;;  %v2072_v4 = vadd.f32 %v7403_v53, %v1891_v58  ;;  %v8135_v50 = vadd.f32 %v7403_v53, %v1894_v1  ;;  %v1896_v25 = vmul.f32 %v10310_v49, %v7400_v56 }
 0x26f   :  { %v5509_v23 = vpack.i.bf16 %v10308_v37, %v2235_v10  ;;  %v10311_v36 = vmax.f32 %v7468_v2, 0.0  ;;  %v10312_v29 = vmax.f32 %v8014_v6, 0.0  ;;  %v10314_v10 = vmax.f32 %v10313_v14, 0.0  ;;  %v10315_v37 = vld [vmem:[#allocation115_spill] sm:$0xff]  ;;  %5500 = vrot.lane.b32.xlu1 %v5499_v33, %s5902_s23  ;;  %5490 = vrot.lane.b32.xlu0 %v5489_v28, %s5902_s23  ;;  %v10316_v2 = vld [vmem:[#allocation116_spill] sm:$0xff] }
 0x270   :  { %v1895_v58 = vmul.f32 %v7400_v56, %v10315_v37  ;;  %v2247_v1 = vmax.f32 %v2072_v4, 0.0  ;;  %v2250_v41 = vmax.f32 %v8135_v50, 0.0  ;;  %v2074_v49 = vadd.f32 %v7403_v53, %v1893_v46  ;;  %v10320_v37 = vld [vmem:[#allocation117_spill] sm:$0xff] }
 0x271   :  { %v5529_v17 = vpack.i.bf16 %v10311_v36, %v2231_v3  ;;  %v5524_v0 = vpack.i.bf16 %v10314_v10, %v10312_v29  ;;  %v1898_v3 = vmul.f32 %v10316_v2, %v7400_v56  ;;  %v8156_v6 = vadd.f32 %v7403_v53, %v1896_v25 }
 0x272   :  { %v8159_v36 = vadd.f32 %v7403_v53, %v1895_v58  ;;  %v10317_v29 = vmax.f32 %v7659_v21, 0.0  ;;  %v10318_v33 = vmax.f32 %v7656_v24, 0.0  ;;  %v10319_v28 = vmax.f32 %v7489_v40, 0.0  ;;  %v10321_v58 = vld [vmem:[#allocation119_spill] sm:$0xff] }
 0x273   :  { %v2249_v46 = vmax.f32 %v2074_v49, 0.0  ;;  %v8172_v10 = vadd.f32 %v7403_v53, %v1898_v3  ;;  %v1897_v25 = vmul.f32 %v7400_v56, %v10320_v37  ;;  %v1900_v2 = vmul.f32 %v10321_v58, %v7400_v56  ;;  %5515 = vrot.lane.b32.xlu1 %v5514_v18, %s5901_s3  ;;  %5505 = vrot.lane.b32.xlu0 %v5504_v12, %s5901_s3 }
 0x274   :  { %v8165_v14 = vpack.i.bf16 %v10318_v33, %v10317_v29  ;;  %v8169_v4 = vpack.i.bf16 %v10319_v28, %v2238_v51  ;;  %v2252_v21 = vmax.f32 %v8156_v6, 0.0  ;;  %v2251_v24 = vmax.f32 %v8159_v36, 0.0 }
 0x275   :  { %v10322_v29 = vmax.f32 %v7694_v52, 0.0  ;;  %v10323_v40 = vmax.f32 %v7714_v30, 0.0  ;;  %v10324_v49 = vmax.f32 %v7606_v35, 0.0  ;;  %v10325_v3 = vmax.f32 %v7899_v31, 0.0  ;;  %v10326_v30 = vld [vmem:[#allocation120_spill] sm:$0xff]  ;;  %v10327_v35 = vld [vmem:[#allocation121_spill] sm:$0xff] }
 0x276   :  { %v2254_v28 = vmax.f32 %v8172_v10, 0.0  ;;  %v8196_v36 = vadd.f32 %v7403_v53, %v1897_v25  ;;  %v8199_v52 = vadd.f32 %v7403_v53, %v1900_v2  ;;  %v1899_v37 = vmul.f32 %v7400_v56, %v10326_v30  ;;  %v10332_v2 = vld [vmem:[#allocation122_spill] sm:$0xff] }
 0x277   :  { %v8184_v51 = vpack.i.bf16 %v10323_v40, %v10322_v29  ;;  %v8190_v33 = vpack.i.bf16 %v10325_v3, %v10324_v49  ;;  %v1902_v31 = vmul.f32 %v10327_v35, %v7400_v56  ;;  %v10328_v58 = vmax.f32 %v7771_v47, 0.0  ;;  %5520 = vrot.lane.b32.xlu1 %v5519_v8, %s5902_s23  ;;  %5510 = vrot.lane.b32.xlu0 %v5509_v23, %s5902_s23 }
 0x278   :  { %v10329_v18 = vmax.f32 %v7755_v39, 0.0  ;;  %v10330_v12 = vmax.f32 %v8049_v15, 0.0  ;;  %v10331_v10 = vmax.f32 %v7494_v26, 0.0  ;;  %v1901_v40 = vmul.f32 %v7400_v56, %v10332_v2  ;;  %v10333_v39 = vld [vmem:[#allocation19_spill] sm:$0xff] }
 0x279   :  { %v2253_v49 = vmax.f32 %v8196_v36, 0.0  ;;  %v2256_v3 = vmax.f32 %v8199_v52, 0.0  ;;  %v8222_v30 = vadd.f32 %v7403_v53, %v1899_v37  ;;  %v1904_v47 = vmul.f32 %v10333_v39, %v7400_v56  ;;  %v3079_v52 = vld [vmem:[%s9941_s4 + $0x8] sm:$0xff] }
 0x27a   :  { %v8209_v29 = vpack.i.bf16 %v10329_v18, %v10328_v58  ;;  %v8215_v25 = vpack.i.bf16 %v10331_v10, %v10330_v12  ;;  %v8227_v35 = vadd.f32 %v7403_v53, %v1902_v31  ;;  %v8230_v26 = vadd.f32 %v7403_v53, %v1901_v40 }
 0x27b   :  { %v10334_v15 = vmax.f32 %v7497_v32, 0.0  ;;  %v10335_v36 = vmax.f32 %v7512_v55, 0.0  ;;  %v2255_v31 = vmax.f32 %v8222_v30, 0.0  ;;  %v8248_v18 = vadd.f32 %v7403_v53, %v1904_v47  ;;  %5530 = vrot.lane.b32.xlu1 %v5529_v17, %s5901_s3  ;;  %5525 = vrot.lane.b32.xlu0 %v5524_v0, %s5901_s3  ;;  %v10385_v30 = vld [vmem:[#allocation26_spill] sm:$0xff] }
 0x27c   :  { %v1903_v32 = vmul.f32 %v7400_v56, %v10336_v60  ;;  %v2258_v5 = vmax.f32 %v8227_v35, 0.0  ;;  %v2257_v55 = vmax.f32 %v8230_v26, 0.0  ;;  %v10340_v10 = vmax.f32 %v7547_v45, 0.0  ;;  %v10344_v60 = vld [vmem:[#allocation37_spill] sm:$0xff]  ;;  %v10383_v35 = vld [vmem:[#allocation38_spill] sm:$0xff]  ;;  %v3097_v26 = vld [vmem:[%s9941_s4 + $0x98] sm:$0xff] }
 0x27d   :  { %v8236_v58 = vpack.i.bf16 %v10334_v15, %v2240_v48  ;;  %v8242_v37 = vpack.i.bf16 %v10335_v36, %v2242_v44  ;;  %v10337_v48 = vld [vmem:[#allocation21_spill] sm:$0xff]  ;;  %v10338_v44 = vld [vmem:[#allocation32_spill] sm:$0xff]  ;;  %v2260_v40 = vmax.f32 %v8248_v18, 0.0  ;;  %v10343_v16 = vmax.f32 %v8084_v59, 0.0 }
 0x27e   :  { %v1906_v12 = vmul.f32 %v10337_v48, %v7400_v56  ;;  %v10339_v8 = vmax.f32 %v10338_v44, 0.0  ;;  %v8266_v2 = vpack.i.bf16 %v10340_v10, %v2244_v38  ;;  %v8270_v39 = vadd.f32 %v7403_v53, %v1903_v32  ;;  %v10341_v15 = vld [vmem:[#allocation25_spill] sm:$0xff] }
 0x27f   :  { %v1905_v42 = vmul.f32 %v7400_v56, %v10341_v15  ;;  %v10345_v45 = vmax.f32 %v10344_v60, 0.0  ;;  %v10346_v48 = vmax.f32 %v7565_v7, 0.0  ;;  %v10347_v32 = vld [vmem:[#allocation29_spill] sm:$0xff]  ;;  %v10350_v17 = vmax.f32 %v7550_v13, 0.0  ;;  %5540 = vrot.lane.b32.xlu0 %v8165_v14, %s5901_s3  ;;  %5535 = vrot.lane.b32.xlu1 %v8169_v4, %s5902_s23 }
 0x280   :  { %v8260_v23 = vpack.i.bf16 %v10339_v8, %v2239_v43  ;;  %v8273_v47 = vadd.f32 %v7403_v53, %v1906_v12  ;;  %v10342_v43 = vld [vmem:[#allocation28_spill] sm:$0xff]  ;;  %v1907_v12 = vmul.f32 %v7400_v56, %v10347_v32  ;;  %v2259_v8 = vmax.f32 %v8270_v39, 0.0  ;;  %v10348_v15 = vld [vmem:[#allocation33_spill] sm:$0xff] }
 0x281   :  { %v1908_v36 = vmul.f32 %v10342_v43, %v7400_v56  ;;  %v8283_v38 = vpack.i.bf16 %v10345_v45, %v10343_v16  ;;  %v8287_v44 = vpack.i.bf16 %v10346_v48, %v2247_v1  ;;  %v2086_v59 = vadd.f32 %v7403_v53, %v1905_v42  ;;  %v10352_v48 = vld [vmem:[#allocation35_spill] sm:$0xff]  ;;  %v10353_v32 = vld [vmem:[#allocation40_spill] sm:$0xff] }
 0x282   :  { %v2262_v10 = vmax.f32 %v8273_v47, 0.0  ;;  %v1910_v43 = vmul.f32 %v10348_v15, %v7400_v56  ;;  %v2088_v1 = vadd.f32 %v7403_v53, %v1907_v12  ;;  %v10349_v16 = vmax.f32 %v8102_v34, 0.0 }
 0x283   :  { %v8299_v7 = vadd.f32 %v7403_v53, %v1908_v36  ;;  %v10351_v0 = vmax.f32 %v7589_v19, 0.0  ;;  %v2261_v45 = vmax.f32 %v2086_v59, 0.0  ;;  %v1909_v36 = vmul.f32 %v7400_v56, %v10352_v48  ;;  %5550 = vrot.lane.b32.xlu0 %v8184_v51, %s5902_s23  ;;  %5545 = vrot.lane.b32.xlu1 %v8190_v33, %s5903_s24  ;;  %v3094_v51 = vld [vmem:[%s9941_s4 + $0x80] sm:$0xff] }
 0x284   :  { %v8306_v60 = vpack.i.bf16 %v10350_v17, %v10349_v16  ;;  %v8313_v42 = vadd.f32 %v7403_v53, %v1910_v43  ;;  %v1912_v12 = vmul.f32 %v10353_v32, %v7400_v56  ;;  %v2263_v15 = vmax.f32 %v2088_v1, 0.0  ;;  %v10357_v1 = vld [vmem:[#allocation47_spill] sm:$0xff]  ;;  %v10358_v17 = vld [vmem:[#allocation9_spill] sm:$0xff]  ;;  %v10362_v32 = vld [vmem:[#allocation130_spill] sm:$0xff] }
 0x285   :  { %v8310_v39 = vpack.i.bf16 %v10351_v0, %v2249_v46  ;;  %v2264_v34 = vmax.f32 %v8299_v7, 0.0  ;;  %v10354_v13 = vmax.f32 %v8107_v57, 0.0  ;;  %v10355_v16 = vmax.f32 %v7553_v27, 0.0  ;;  %v10360_v0 = vld [vmem:[#allocation41_spill] sm:$0xff] }
 0x286   :  { %v10356_v46 = vmax.f32 %v7595_v20, 0.0  ;;  %v2266_v43 = vmax.f32 %v8313_v42, 0.0  ;;  %v2090_v7 = vadd.f32 %v7403_v53, %v1909_v36  ;;  %v2093_v57 = vadd.f32 %v7403_v53, %v1912_v12  ;;  %v10364_v42 = vld [vmem:[#allocation131_spill] sm:$0xff]  ;;  %v10373_v33 = vld [vmem:[#allocation133_spill] sm:$0xff] }
 0x287   :  { %v8324_v19 = vpack.i.bf16 %v10355_v16, %v10354_v13  ;;  %v1911_v27 = vmul.f32 %v7400_v56, %v10357_v1  ;;  %v1914_v20 = vmul.f32 %v10358_v17, %v7400_v56  ;;  %v10361_v48 = vmax.f32 %v10360_v0, 0.0  ;;  %v10365_v1 = vld [vmem:[#allocation135_spill] sm:$0xff]  ;;  %5555 = vrot.lane.b32.xlu1 %v8209_v29, %s5904_s2  ;;  %5560 = vrot.lane.b32.xlu0 %v8215_v25, %s5902_s23  ;;  %v10388_v29 = vld [vmem:[#allocation34_spill] sm:$0xff] }
 0x288   :  { %v8328_v59 = vpack.i.bf16 %v10356_v46, %v2251_v24  ;;  %v10359_v24 = vmax.f32 %v8110_v11, 0.0  ;;  %v10363_v4 = vmax.f32 %v10362_v32, 0.0  ;;  %v1913_v36 = vmul.f32 %v7400_v56, %v10364_v42  ;;  %v10368_v32 = vld [vmem:[#allocation132_spill] sm:$0xff] }
 0x289   :  { %v2265_v12 = vmax.f32 %v2090_v7, 0.0  ;;  %v2268_v16 = vmax.f32 %v2093_v57, 0.0  ;;  %v2092_v46 = vadd.f32 %v7403_v53, %v1911_v27  ;;  %v1916_v17 = vmul.f32 %v10365_v1, %v7400_v56 }
 0x28a   :  { %v8345_v14 = vpack.i.bf16 %v10361_v48, %v10359_v24  ;;  %v8349_v13 = vpack.i.bf16 %v10363_v4, %v2254_v28  ;;  %v2095_v11 = vadd.f32 %v7403_v53, %v1914_v20  ;;  %v2094_v0 = vadd.f32 %v7403_v53, %v1913_v36  ;;  %v10366_v24 = vld [vmem:[#allocation127_spill] sm:$0xff] }
 0x28b   :  { %v10367_v48 = vmax.f32 %v10366_v24, 0.0  ;;  %v10369_v4 = vmax.f32 %v10368_v32, 0.0  ;;  %v2267_v7 = vmax.f32 %v2092_v46, 0.0  ;;  %v8373_v57 = vadd.f32 %v7403_v53, %v1916_v17  ;;  %v10375_v24 = vld [vmem:[#allocation129_spill] sm:$0xff]  ;;  %v10378_v32 = vld [vmem:[#allocation134_spill] sm:$0xff]  ;;  %5565 = vrot.lane.b32.xlu1 %v8236_v58, %s5904_s2  ;;  %5575 = vrot.lane.b32.xlu0 %v8242_v37, %s5904_s2 }
 0x28c   :  { %v1915_v27 = vmul.f32 %v7400_v56, %v10370_v22  ;;  %v2270_v36 = vmax.f32 %v2095_v11, 0.0  ;;  %v2269_v1 = vmax.f32 %v2094_v0, 0.0  ;;  %v10374_v46 = vmax.f32 %v10373_v33, 0.0  ;;  %v3078_v11 = vld [vmem:[%s9941_s4] sm:$0xff] }
 0x28d   :  { %v8362_v28 = vpack.i.bf16 %v10367_v48, %v2248_v62  ;;  %v8366_v42 = vpack.i.bf16 %v10369_v4, %v2253_v49  ;;  %v10371_v62 = vld [vmem:[#allocation128_spill] sm:$0xff]  ;;  %v10376_v50 = vmax.f32 %v10375_v24, 0.0  ;;  %v10379_v4 = vmax.f32 %v10378_v32, 0.0  ;;  %v3080_v24 = vld [vmem:[%s9941_s4 + $0x10] sm:$0xff] }
 0x28e   :  { %v10372_v20 = vmax.f32 %v10371_v62, 0.0  ;;  %v8390_v17 = vpack.i.bf16 %v10374_v46, %v2256_v3  ;;  %v2272_v3 = vmax.f32 %v8373_v57, 0.0  ;;  %v2096_v6 = vadd.f32 %v7403_v53, %v1915_v27  ;;  %v10381_v57 = vld [vmem:[#allocation22_spill] sm:$0xff] }
 0x28f   :  { %v8396_v48 = vpack.i.bf16 %v10376_v50, %v2252_v21  ;;  %v10377_v21 = vmax.f32 %v7646_v54, 0.0  ;;  %v8419_v22 = vpack.i.bf16 %v10379_v4, %v2255_v31  ;;  %v10380_v62 = vmax.f32 %v7683_v9, 0.0  ;;  %v3096_v9 = vld [vmem:[%s9941_s4 + $0x90] sm:$0xff]  ;;  %v3081_v50 = vld [vmem:[%s9941_s4 + $0x18] sm:$0xff]  ;;  %5570 = vrot.lane.b32.xlu1 %v8260_v23, %s5904_s2  ;;  %5585 = vrot.lane.b32.xlu0 %v8266_v2, %s5904_s2 }
 0x290   :  { %v8381_v49 = vpack.i.bf16 %v10372_v20, %v2250_v41  ;;  %v3095_v41 = vld [vmem:[%s9941_s4 + $0x88] sm:$0xff]  ;;  %v10382_v27 = vmax.f32 %v10381_v57, 0.0  ;;  %v10384_v54 = vmax.f32 %v10383_v35, 0.0  ;;  %v10386_v46 = vmax.f32 %v10385_v30, 0.0  ;;  %v10395_v4 = vld [vmem:[#allocation48_spill] sm:$0xff]  ;;  %v10401_v35 = vld [vmem:[#allocation63_spill] sm:$0xff] }
 0x291   :  { %v8413_v0 = vpack.i.bf16 %v10377_v21, %v2258_v5  ;;  %v8423_v20 = vpack.i.bf16 %v10380_v62, %v2259_v8  ;;  %v2271_v18 = vmax.f32 %v2096_v6, 0.0  ;;  %v5250_v8 = vpack.c.bf16 %v3095_v41, %v3094_v51  ;;  %v10391_v51 = vld [vmem:[#allocation43_spill] sm:$0xff]  ;;  %v10397_v57 = vld [vmem:[#allocation138_spill] sm:$0xff]  ;;  %v10469_v23 = vld [vmem:[#allocation60_spill] sm:$0xff] }
 0x292   :  { %v8429_v33 = vpack.i.bf16 %v10382_v27, %v2257_v55  ;;  %v8433_v5 = vpack.i.bf16 %v10384_v54, %v2261_v45  ;;  %v8439_v31 = vpack.i.bf16 %v10386_v46, %v2260_v40  ;;  %v10387_v55 = vmax.f32 %v7747_v61, 0.0 }
 0x293   :  { %v5252_v45 = vpack.c.bf16 %v3079_v52, %v3078_v11  ;;  %v10389_v21 = vmax.f32 %v10388_v29, 0.0  ;;  %v10390_v61 = vmax.f32 %v7774_v63, 0.0  ;;  %v10392_v41 = vmax.f32 %v10391_v51, 0.0  ;;  %v10393_v52 = vld [vmem:[#allocation52_spill] sm:$0xff]  ;;  %5251 = vmatprep.subr.bf16.mxu1 %v5250_v8  ;;  %5580 = vrot.lane.b32.xlu1 %v8283_v38, %s5904_s2 }
 0x294   :  { %v8453_v40 = vpack.i.bf16 %v10387_v55, %v2263_v15  ;;  %v10394_v6 = vmax.f32 %v10393_v52, 0.0  ;;  %v10396_v62 = vmax.f32 %v10395_v4, 0.0  ;;  %v10399_v63 = vld [vmem:[#allocation64_spill] sm:$0xff]  ;;  %v10402_v54 = vmax.f32 %v10401_v35, 0.0  ;;  %v10405_v55 = vld [vmem:[#allocation57_spill] sm:$0xff]  ;;  %5610 = vrot.lane.b32.xlu0 %v8287_v44, %s5905_s29 }
 0x295   :  { %v8465_v25 = vpack.i.bf16 %v10389_v21, %v2262_v10  ;;  %v8469_v15 = vpack.i.bf16 %v10390_v61, %v2265_v12  ;;  %v8473_v11 = vpack.i.bf16 %v10392_v41, %v2264_v34  ;;  %v10398_v10 = vmax.f32 %v10397_v57, 0.0  ;;  %v10403_v34 = vld [vmem:[#allocation53_spill] sm:$0xff]  ;;  %5253 = vmatpush3.bf16.msra.mxu1 %v5252_v45  ;;  %v10407_v61 = vld [vmem:[#allocation144_spill] sm:$0xff]  ;;  %v10409_v41 = vld [vmem:[#allocation143_spill] sm:$0xff] }
 0x296   :  { %v8477_v32 = vpack.i.bf16 %v10394_v6, %v2268_v16  ;;  %v8481_v47 = vpack.i.bf16 %v10396_v62, %v2266_v43  ;;  %v10400_v12 = vmax.f32 %v10399_v63, 0.0  ;;  %v10404_v46 = vmax.f32 %v10403_v34, 0.0  ;;  %v3098_v43 = vld [vmem:[%s9941_s4 + $0xa0] sm:$0xff]  ;;  %v10413_v57 = vld [vmem:[#allocation70_spill] sm:$0xff]  ;;  %v3105_v38 = vld [vmem:[%s9941_s4 + $0xd8] sm:$0xff] }
 0x297   :  { %v8485_v27 = vpack.i.bf16 %v10398_v10, %v2267_v7  ;;  %v10406_v16 = vmax.f32 %v10405_v55, 0.0  ;;  %v3099_v7 = vld [vmem:[%s9941_s4 + $0xa8] sm:$0xff]  ;;  %v5254_v8 = vpack.c.bf16 %v3097_v26, %v3096_v9  ;;  %v5256_v21 = vpack.c.bf16 %v3081_v50, %v3080_v24  ;;  %v10411_v4 = vld [vmem:[#allocation68_spill] sm:$0xff]  ;;  %v10416_v24 = vld [vmem:[#allocation27_spill] sm:$0xff]  ;;  %5590 = vrot.lane.b32.xlu1 %v8306_v60, %s5904_s2 }
 0x298   :  { %v8491_v30 = vpack.i.bf16 %v10402_v54, %v10400_v12  ;;  %v10408_v51 = vmax.f32 %v10407_v61, 0.0  ;;  %v10410_v52 = vmax.f32 %v10409_v41, 0.0  ;;  %v10412_v62 = vmax.f32 %v10411_v4, 0.0  ;;  %v3082_v12 = vld [vmem:[%s9941_s4 + $0x20] sm:$0xff]  ;;  %v3083_v9 = vld [vmem:[%s9941_s4 + $0x28] sm:$0xff]  ;;  %5620 = vrot.lane.b32.xlu0 %v8310_v39, %s5905_s29 }
 0x299   :  { %v8497_v29 = vpack.i.bf16 %v10406_v16, %v10404_v46  ;;  %v10414_v10 = vmax.f32 %v10413_v57, 0.0  ;;  %v10415_v26 = vld [vmem:[#allocation89_spill] sm:$0xff]  ;;  %v10417_v50 = vmax.f32 %v10416_v24, 0.0  ;;  %v10418_v35 = vld [vmem:[#allocation24_spill] sm:$0xff]  ;;  %v10420_v46 = vld [vmem:[#allocation58_spill] sm:$0xff]  ;;  %5255 = vmatprep.subr.bf16.mxu1 %v5254_v8 }
 0x29a   :  { %v8509_v6 = vpack.i.bf16 %v10410_v52, %v10408_v51  ;;  %v2327_v45 = vmax.f32 %v10415_v26, 0.0  ;;  %v10419_v54 = vmax.f32 %v10418_v35, 0.0  ;;  %v10421_v55 = vmax.f32 %v10420_v46, 0.0  ;;  %v10422_v61 = vld [vmem:[#allocation56_spill] sm:$0xff]  ;;  %v10424_v52 = vld [vmem:[#allocation39_spill] sm:$0xff]  ;;  %v10426_v4 = vld [vmem:[#allocation45_spill] sm:$0xff]  ;;  %5257 = vmatpush3.bf16.msra.mxu1 %v5256_v21 }
 0x29b   :  { %v8515_v63 = vpack.i.bf16 %v10414_v10, %v10412_v62  ;;  %v10423_v51 = vmax.f32 %v10422_v61, 0.0  ;;  %v10425_v58 = vmax.f32 %v10424_v52, 0.0  ;;  %v10427_v62 = vmax.f32 %v10426_v4, 0.0  ;;  %v10428_v57 = vld [vmem:[#allocation50_spill] sm:$0xff]  ;;  %v10430_v26 = vld [vmem:[#allocation49_spill] sm:$0xff]  ;;  %v3101_v8 = vld [vmem:[%s9941_s4 + $0xb8] sm:$0xff]  ;;  %5595 = vrot.lane.b32.xlu1 %v8324_v19, %s5905_s29 }
 0x29c   :  { %v8532_v34 = vpack.i.bf16 %v10419_v54, %v10417_v50  ;;  %v8536_v16 = vpack.i.bf16 %v10421_v55, %v2269_v1  ;;  %v10429_v10 = vmax.f32 %v10428_v57, 0.0  ;;  %v10431_v24 = vmax.f32 %v10430_v26, 0.0  ;;  %v10432_v35 = vld [vmem:[#allocation62_spill] sm:$0xff]  ;;  %v10434_v61 = vld [vmem:[#allocation61_spill] sm:$0xff]  ;;  %5630 = vrot.lane.b32.xlu0 %v8328_v59, %s5905_s29  ;;  %v3109_v59 = vld [vmem:[%s9941_s4 + $0xf8] sm:$0xff] }
 0x29d   :  { %v8540_v41 = vpack.i.bf16 %v10423_v51, %v2270_v36  ;;  %v8546_v37 = vpack.i.bf16 %v10427_v62, %v10425_v58  ;;  %v10433_v1 = vmax.f32 %v10432_v35, 0.0  ;;  %v5258_v46 = vpack.c.bf16 %v3099_v7, %v3098_v43  ;;  %v3100_v36 = vld [vmem:[%s9941_s4 + $0xb0] sm:$0xff]  ;;  %v10447_v35 = vld [vmem:[#allocation69_spill] sm:$0xff] }
 0x29e   :  { %v8552_v50 = vpack.i.bf16 %v10431_v24, %v10429_v10  ;;  %v5260_v55 = vpack.c.bf16 %v3083_v9, %v3082_v12  ;;  %v10435_v51 = vmax.f32 %v10434_v61, 0.0  ;;  %v10437_v58 = vld [vmem:[#allocation55_spill] sm:$0xff]  ;;  %v10442_v43 = vld [vmem:[#allocation142_spill] sm:$0xff]  ;;  %v10444_v10 = vld [vmem:[#allocation141_spill] sm:$0xff] }
 0x29f   :  { %v8556_v54 = vpack.i.bf16 %v10433_v1, %v2271_v18  ;;  %v10438_v4 = vmax.f32 %v10437_v58, 0.0  ;;  %v10439_v62 = vld [vmem:[#allocation139_spill] sm:$0xff]  ;;  %v10443_v7 = vmax.f32 %v10442_v43, 0.0  ;;  %v10445_v26 = vmax.f32 %v10444_v10, 0.0  ;;  %v10449_v12 = vld [vmem:[#allocation73_spill] sm:$0xff]  ;;  %v10457_v43 = vld [vmem:[#allocation30_spill] sm:$0xff]  ;;  %5259 = vmatprep.subr.bf16.mxu1 %v5258_v46  ;;  %5600 = vrot.lane.b32.xlu1 %v8345_v14, %s5904_s2 }
 0x2a0   :  { %v8566_v52 = vpack.i.bf16 %v10435_v51, %v2272_v3  ;;  %v10440_v57 = vmax.f32 %v10439_v62, 0.0  ;;  %v10448_v1 = vmax.f32 %v10447_v35, 0.0  ;;  %v10450_v9 = vmax.f32 %v10449_v12, 0.0  ;;  %v10451_v3 = vld [vmem:[#allocation146_spill] sm:$0xff]  ;;  %v10453_v58 = vld [vmem:[#allocation145_spill] sm:$0xff]  ;;  %v10466_v12 = vld [vmem:[#allocation51_spill] sm:$0xff]  ;;  %5261 = vmatpush3.bf16.msra.mxu1 %v5260_v55  ;;  %5635 = vrot.lane.b32.xlu0 %v8349_v13, %s5906_s21 }
 0x2a1   :  { %v8578_v24 = vpack.i.bf16 %v10445_v26, %v10443_v7  ;;  %v10452_v51 = vmax.f32 %v10451_v3, 0.0  ;;  %v10459_v7 = vld [vmem:[#allocation42_spill] sm:$0xff] }
 0x2a2   :  { %10436 = vst [vmem:[#allocation90_spill] sm:$0xff] %v8566_v52  ;;  %v8572_v18 = vpack.i.bf16 %v10440_v57, %v10438_v4  ;;  %v8584_v61 = vpack.i.bf16 %v10450_v9, %v10448_v1  ;;  %v10454_v52 = vmax.f32 %v10453_v58, 0.0  ;;  %v10455_v4 = vld [vmem:[#allocation31_spill] sm:$0xff]  ;;  %v10460_v21 = vmax.f32 %v10459_v7, 0.0  ;;  %v10461_v26 = vld [vmem:[#allocation46_spill] sm:$0xff] }
 0x2a3   :  { %10446 = vst [vmem:[#allocation92_spill] sm:$0xff] %v8578_v24  ;;  %v10456_v57 = vmax.f32 %v10455_v4, 0.0  ;;  %v10462_v35 = vmax.f32 %v10461_v26, 0.0  ;;  %v10467_v9 = vmax.f32 %v10466_v12, 0.0  ;;  %v3085_v58 = vld [vmem:[%s9941_s4 + $0x38] sm:$0xff]  ;;  %v10470_v4 = vmax.f32 %v10469_v23, 0.0  ;;  %5605 = vrot.lane.b32.xlu1 %v8362_v28, %s5905_s29 }
 0x2a4   :  { %10441 = vst [vmem:[#allocation81_spill] sm:$0xff] %v8572_v18  ;;  %v8590_v62 = vpack.i.bf16 %v10454_v52, %v10452_v51  ;;  %v10458_v18 = vmax.f32 %v10457_v43, 0.0  ;;  %v10464_v52 = vld [vmem:[#allocation137_spill] sm:$0xff]  ;;  %v3084_v51 = vld [vmem:[%s9941_s4 + $0x30] sm:$0xff]  ;;  %5640 = vrot.lane.b32.xlu0 %v8366_v42, %s5906_s21  ;;  %v3093_v28 = vld [vmem:[%s9941_s4 + $0x78] sm:$0xff] }
 0x2a5   :  { %v8602_v24 = vpack.i.bf16 %v10462_v35, %v10460_v21  ;;  %v10465_v1 = vmax.f32 %v10464_v52, 0.0  ;;  %v10473_v7 = vld [vmem:[#allocation66_spill] sm:$0xff]  ;;  %v10475_v26 = vld [vmem:[#allocation65_spill] sm:$0xff] }
 0x2a6   :  { %v8596_v10 = vpack.i.bf16 %v10458_v18, %v10456_v57  ;;  %v5262_v18 = vpack.c.bf16 %v3101_v8, %v3100_v36  ;;  %v10471_v57 = vld [vmem:[#allocation140_spill] sm:$0xff]  ;;  %v10474_v21 = vmax.f32 %v10473_v7, 0.0  ;;  %v10476_v35 = vmax.f32 %v10475_v26, 0.0  ;;  %v10477_v8 = vld [vmem:[#allocation71_spill] sm:$0xff]  ;;  %v3107_v60 = vld [vmem:[%s9941_s4 + $0xe8] sm:$0xff] }
 0x2a7   :  { %10463 = vst [vmem:[#allocation94_spill] sm:$0xff] %v8602_v24  ;;  %v8612_v3 = vpack.i.bf16 %v10467_v9, %v10465_v1  ;;  %v10472_v2 = vmax.f32 %v10471_v57, 0.0  ;;  %v10478_v52 = vmax.f32 %v10477_v8, 0.0  ;;  %v10479_v1 = vld [vmem:[#allocation75_spill] sm:$0xff]  ;;  %v3102_v23 = vld [vmem:[%s9941_s4 + $0xc0] sm:$0xff]  ;;  %v5264_v57 = vpack.c.bf16 %v3085_v58, %v3084_v51  ;;  %5615 = vrot.lane.b32.xlu1 %v8381_v49, %s5905_s29 }
 0x2a8   :  { %v8630_v36 = vpack.i.bf16 %v10476_v35, %v10474_v21  ;;  %v10480_v12 = vmax.f32 %v10479_v1, 0.0  ;;  %5263 = vmatprep.subr.bf16.mxu1 %v5262_v18  ;;  %v3104_v55 = vld [vmem:[%s9941_s4 + $0xd0] sm:$0xff]  ;;  %v3089_v51 = vld [vmem:[%s9941_s4 + $0x58] sm:$0xff]  ;;  %v3106_v7 = vld [vmem:[%s9941_s4 + $0xe0] sm:$0xff]  ;;  %5645 = vrot.lane.b32.xlu0 %v8390_v17, %s5906_s21  ;;  %v10021_v49 = vmov 0.0|0.0  }
 0x2a9   :  { %10468 = vst [vmem:[#allocation95_spill] sm:$0xff] %v8612_v3  ;;  %v8624_v43 = vpack.i.bf16 %v10472_v2, %v10470_v4  ;;  %v10481_v3 = vld [vmem:[#allocation86_spill] sm:$0xff]  ;;  %5265 = vmatpush3.bf16.msra.mxu1 %v5264_v57  ;;  %v5270_v58 = vpack.c.bf16 %v3105_v38, %v3104_v55  ;;  %v5274_v21 = vpack.c.bf16 %v3107_v60, %v3106_v7  ;;  %v3090_v26 = vld [vmem:[%s9941_s4 + $0x60] sm:$0xff] }
 0x2aa   :  { %v8636_v9 = vpack.i.bf16 %v10480_v12, %v10478_v52  ;;  %v10482_v46 = vmax.f32 %v10481_v3, 0.0  ;;  %v3103_v4 = vld [vmem:[%s9941_s4 + $0xc8] sm:$0xff]  ;;  %v3088_v18 = vld [vmem:[%s9941_s4 + $0x50] sm:$0xff]  ;;  %v10490_v57 = vld [vmem:[#allocation12_spill] sm:$0xff] }
 0x2ab   :  { %v3087_v3 = vld [vmem:[%s9941_s4 + $0x48] sm:$0xff]  ;;  %v5266_v2 = vpack.c.bf16 %v3103_v4, %v3102_v23  ;;  %v5272_v39 = vpack.c.bf16 %v3089_v51, %v3088_v18  ;;  %v3108_v19 = vld [vmem:[%s9941_s4 + $0xf0] sm:$0xff]  ;;  %5625 = vrot.lane.b32.xlu1 %v8396_v48, %s5905_s29 }
 0x2ac   :  { %v8640_v24 = vpack.i.bf16 %v10482_v46, %v2327_v45  ;;  %v3086_v45 = vld [vmem:[%s9941_s4 + $0x40] sm:$0xff]  ;;  %v3091_v35 = vld [vmem:[%s9941_s4 + $0x68] sm:$0xff]  ;;  %v5278_v14 = vpack.c.bf16 %v3109_v59, %v3108_v19  ;;  %5655 = vrot.lane.b32.xlu0 %v8413_v0, %s5906_s21  ;;  %v3092_v13 = vld [vmem:[%s9941_s4 + $0x70] sm:$0xff] }
 0x2ad   :  { %v5268_v44 = vpack.c.bf16 %v3087_v3, %v3086_v45  ;;  %5267 = vmatprep.subr.bf16.mxu1 %v5266_v2  ;;  %v5276_v8 = vpack.c.bf16 %v3091_v35, %v3090_v26  ;;  %v5280_v42 = vpack.c.bf16 %v3093_v28, %v3092_v13  ;;  %v10483_v17 = vld [vmem:[#allocation5_spill] sm:$0xff]  ;;  %v10484_v0 = vld [vmem:[#allocation8_spill] sm:$0xff]  ;;  %v10489_v4 = vld [vmem:[#allocation10_spill] sm:$0xff] }
 0x2ae   :  { %v1806_v48 = vmul.f32 %v10483_v17, %v7400_v56  ;;  %v10491_v45 = vld [vmem:[#allocation90_spill] sm:$0xff]  ;;  %v10492_v3 = vld [vmem:[#allocation81_spill] sm:$0xff]  ;;  %v10494_v19 = vld [vmem:[#allocation15_spill] sm:$0xff] }
 0x2af   :  { %5269 = vmatpush3.bf16.msra.mxu1 %v5268_v44  ;;  %5650 = vrot.lane.b32.xlu1 %v8419_v22, %s5906_s21  ;;  %v1807_v22 = vmul.f32 %v7400_v56, %v10484_v0  ;;  %v10493_v51 = vld [vmem:[#allocation13_spill] sm:$0xff]  ;;  %v1811_v59 = vmul.f32 %v7400_v56, %v10494_v19  ;;  %v10496_v28 = vld [vmem:[#allocation79_spill] sm:$0xff]  ;;  %v10497_v17 = vld [vmem:[#allocation92_spill] sm:$0xff] }
 0x2b0   :  { %5271 = vmatprep.subr.bf16.mxu1 %v5270_v58  ;;  %5670 = vrot.lane.b32.xlu0 %v8423_v20, %s5906_s21  ;;  %v10485_v20 = vld [vmem:[#allocation74_spill] sm:$0xff]  ;;  %v1812_v58 = vmul.f32 %v10493_v51, %v7400_v56 }
 0x2b3   :  { %5273 = vmatpush3.bf16.msra.mxu1 %v5272_v39  ;;  %5660 = vrot.lane.b32.xlu1 %v8429_v33, %s5906_s21  ;;  %v1862_v33 = vmul.f32 %v10485_v20, %v7400_v56 }
 0x2b4   :  { %5275 = vmatprep.subr.bf16.mxu1 %v5274_v21  ;;  %5680 = vrot.lane.b32.xlu0 %v8433_v5, %s5907_s27  ;;  %v10486_v5 = vld [vmem:[#allocation77_spill] sm:$0xff] }
 0x2b7   :  { %5277 = vmatpush3.bf16.msra.mxu1 %v5276_v8  ;;  %5665 = vrot.lane.b32.xlu1 %v8439_v31, %s5907_s27  ;;  %v1863_v31 = vmul.f32 %v7400_v56, %v10486_v5 }
 0x2b8   :  { %5279 = vmatprep.subr.bf16.mxu1 %v5278_v14  ;;  %5690 = vrot.lane.b32.xlu0 %v8453_v40, %s5907_s27  ;;  %v1987_v40 = vadd.f32 %v7403_v53, %v1806_v48  ;;  %v10495_v14 = vld [vmem:[#allocation78_spill] sm:$0xff] }
 0x2b9   :  { %v1866_v13 = vmul.f32 %v10495_v14, %v7400_v56 }
 0x2bb   :  { %5281 = vmatpush3.bf16.msra.mxu1 %v5280_v42  ;;  %5675 = vrot.lane.b32.xlu1 %v8465_v25, %s5907_s27  ;;  %v1988_v25 = vadd.f32 %v7403_v53, %v1807_v22  ;;  %v1865_v42 = vmul.f32 %v7400_v56, %v10496_v28 }
 0x2bc   :  { %5282 = vmatprep.subr.bf16.mxu1 %v10021_v49  ;;  %5700 = vrot.lane.b32.xlu0 %v8469_v15, %s5907_s27  ;;  %v2043_v15 = vadd.f32 %v7403_v53, %v1862_v33 }
 0x2bf   :  { %5685 = vrot.lane.b32.xlu1 %v8473_v11, %s5907_s27  ;;  %v2044_v11 = vadd.f32 %v7403_v53, %v1863_v31  ;;  %v2047_v31 = vadd.f32 %v7403_v53, %v1866_v13 }
 0x2c0   :  { %5705 = vrot.lane.b32.xlu0 %v8477_v32, %s5903_s24  ;;  %v10487_v32 = vld [vmem:[#allocation6_spill] sm:$0xff] }
 0x2c3   :  { %5695 = vrot.lane.b32.xlu1 %v8481_v47, %s5907_s27  ;;  %v1808_v47 = vmul.f32 %v10487_v32, %v7400_v56 }
 0x2c4   :  { %5710 = vrot.lane.b32.xlu0 %v8485_v27, %s5903_s24  ;;  %v10488_v27 = vld [vmem:[#allocation76_spill] sm:$0xff] }
 0x2c7   :  { %5720 = vrot.lane.b32.xlu1 %v8491_v30, %s5906_s21  ;;  %v1864_v30 = vmul.f32 %v10488_v27, %v7400_v56  ;;  %v8818_v27 = vadd.f32 %v7403_v53, %v1812_v58 }
 0x2c8   :  { %5715 = vrot.lane.b32.xlu0 %v8497_v29, %s5905_s29  ;;  %v2162_v29 = vmax.f32 %v1987_v40, 0.0  ;;  %v2046_v40 = vadd.f32 %v7403_v53, %v1865_v42 }
 0x2cb   :  { %5730 = vrot.lane.b32.xlu1 %v8509_v6, %s5903_s24  ;;  %v1989_v6 = vadd.f32 %v7403_v53, %v1808_v47 }
 0x2cc   :  { %5725 = vrot.lane.b32.xlu0 %v8515_v63, %s5907_s27  ;;  %v2163_v63 = vmax.f32 %v1988_v25, 0.0 }
 0x2cd   :  { %v2164_v18 = vmax.f32 %v1989_v6, 0.0 }
 0x2cf   :  { %5745 = vrot.lane.b32.xlu1 %v8536_v16, %s5903_s24  ;;  %v2045_v16 = vadd.f32 %v7403_v53, %v1864_v30  ;;  %v8821_v30 = vadd.f32 %v7403_v53, %v1811_v59 }
 0x2d0   :  { %5735 = vrot.lane.b32.xlu0 %v8532_v34, %s5901_s3  ;;  %v2218_v34 = vmax.f32 %v2043_v15, 0.0 }
 0x2d1   :  { %v2220_v7 = vmax.f32 %v2045_v16, 0.0  ;;  %v2167_v28 = vmax.f32 %v8821_v30, 0.0 }
 0x2d3   :  { %5750 = vrot.lane.b32.xlu1 %v8546_v37, %s5902_s23 }
 0x2d4   :  { %5740 = vrot.lane.b32.xlu0 %v8540_v41, %s5903_s24  ;;  %v2219_v41 = vmax.f32 %v2044_v11, 0.0 }
 0x2d7   :  { %5765 = vrot.lane.b32.xlu1 %v8556_v54, %s5903_s24  ;;  %v1809_v54 = vmul.f32 %v7400_v56, %v10490_v57 }
 0x2d8   :  { %5755 = vrot.lane.b32.xlu0 %v8552_v50, %s5904_s2  ;;  %v1810_v50 = vmul.f32 %v10489_v4, %v7400_v56  ;;  %v2168_v4 = vmax.f32 %v8818_v27, 0.0 }
 0x2d9   :  { %v5486_v37 = vpop.permute.xlu1 %5485  ;;  %v5476_v52 = vpop.permute.xlu0 %5475  ;;  %v1990_v5 = vadd.f32 %v7403_v53, %v1809_v54  ;;  %v10499_v54 = vld [vmem:[#allocation80_spill] sm:$0xff] }
 0x2da   :  { %v5488_v1 = vunpack.i.h.bf16 %v5486_v37  ;;  %v5487_v12 = vunpack.i.l.bf16 %v5486_v37  ;;  %v5478_v46 = vunpack.i.h.bf16 %v5476_v52  ;;  %v5477_v23 = vunpack.i.l.bf16 %v5476_v52 }
 0x2db   :  { %5770 = vrot.lane.b32.xlu1 %v10492_v3, %s5905_s29  ;;  %v1991_v33 = vadd.f32 %v7403_v53, %v1810_v50  ;;  %v2222_v37 = vmax.f32 %v2047_v31, 0.0  ;;  %v2221_v52 = vmax.f32 %v2046_v40, 0.0  ;;  %v10498_v50 = vld [vmem:[#allocation7_spill] sm:$0xff]  ;;  %v10500_v3 = vld [vmem:[#allocation82_spill] sm:$0xff] }
 0x2dc   :  { %5760 = vrot.lane.b32.xlu0 %v10491_v45, %s5903_s24  ;;  %v2730_v2 = vsel %vm1485_vm0, %v2163_v63, %v5488_v1  ;;  %v2785_v55 = vsel %vm1485_vm0, %v2219_v41, %v5487_v12  ;;  %v2729_v38 = vsel %vm1485_vm0, %v2162_v29, %v5478_v46  ;;  %v2784_v44 = vsel %vm1485_vm0, %v2218_v34, %v5477_v23 }
 0x2dd   :  { %v5496_v60 = vpop.permute.xlu1 %5495  ;;  %v5481_v39 = vpop.permute.xlu0 %5480  ;;  %v2166_v16 = vmax.f32 %v1991_v33, 0.0  ;;  %v2165_v41 = vmax.f32 %v1990_v5, 0.0  ;;  %v1918_v57 = vmul.f32 %v10498_v50, %v7400_v56  ;;  %v1868_v45 = vmul.f32 %v10499_v54, %v7400_v56 }
 0x2de   :  { %v5498_v21 = vunpack.i.h.bf16 %v5496_v60  ;;  %v5497_v26 = vunpack.i.l.bf16 %v5496_v60  ;;  %v5483_v35 = vunpack.i.h.bf16 %v5481_v39  ;;  %v5482_v8 = vunpack.i.l.bf16 %v5481_v39  ;;  %v10503_v60 = vld [vmem:[#allocation14_spill] sm:$0xff] }
 0x2df   :  { %5780 = vrot.lane.b32.xlu1 %v8584_v61, %s5907_s27  ;;  %v1919_v39 = vmul.f32 %v7400_v56, %v10503_v60 }
 0x2e0   :  { %5775 = vrot.lane.b32.xlu0 %v10497_v17, %s5906_s21  ;;  %v2731_v48 = vsel %vm1485_vm0, %v2164_v18, %v5498_v21  ;;  %v2786_v0 = vsel %vm1485_vm0, %v2220_v7, %v5497_v26  ;;  %v8808_v22 = vsel %vm2736_vm1, %v2729_v38, %v5483_v35  ;;  %v8811_v20 = vsel %vm2736_vm1, %v2784_v44, %v5482_v8  ;;  %v10502_v38 = vld [vmem:[#allocation95_spill] sm:$0xff]  ;;  %v10504_v17 = vld [vmem:[#allocation36_spill] sm:$0xff] }
 0x2e1   :  { %v5501_v25 = vpop.permute.xlu1 %5500  ;;  %v5491_v61 = vpop.permute.xlu0 %5490  ;;  %v2099_v7 = vadd.f32 %v7403_v53, %v1918_v57  ;;  %v2049_v21 = vadd.f32 %v7403_v53, %v1868_v45  ;;  %v2100_v42 = vadd.f32 %v7403_v53, %v1919_v39 }
 0x2e2   :  { %v5503_v15 = vunpack.i.h.bf16 %v5501_v25  ;;  %v5502_v11 = vunpack.i.l.bf16 %v5501_v25  ;;  %v5493_v32 = vunpack.i.h.bf16 %v5491_v61  ;;  %v5492_v47 = vunpack.i.l.bf16 %v5491_v61 }
 0x2e3   :  { %5790 = vrot.lane.b32.xlu1 %v8596_v10, %s5901_s3 }
 0x2e4   :  { %5785 = vrot.lane.b32.xlu0 %v8590_v62, %s5903_s24  ;;  %v8828_v29 = vsel %vm2736_vm1, %v2731_v48, %v5503_v15  ;;  %v8831_v6 = vsel %vm2736_vm1, %v2786_v0, %v5502_v11  ;;  %v8834_v63 = vsel %vm2736_vm1, %v2730_v2, %v5493_v32  ;;  %v8837_v34 = vsel %vm2736_vm1, %v2785_v55, %v5492_v47  ;;  %v10501_v55 = vld [vmem:[#allocation94_spill] sm:$0xff]  ;;  %v10505_v0 = vld [vmem:[#allocation44_spill] sm:$0xff] }
 0x2e5   :  { %v5516_v62 = vpop.permute.xlu1 %5515  ;;  %v5506_v1 = vpop.permute.xlu0 %5505  ;;  %v1867_v2 = vmul.f32 %v7400_v56, %v10500_v3  ;;  %v1931_v48 = vmul.f32 %v7400_v56, %v10504_v17  ;;  %v1938_v33 = vmul.f32 %v10505_v0, %v7400_v56 }
 0x2e6   :  { %v5518_v12 = vunpack.i.h.bf16 %v5516_v62  ;;  %v5517_v10 = vunpack.i.l.bf16 %v5516_v62  ;;  %v5508_v46 = vunpack.i.h.bf16 %v5506_v1  ;;  %v5507_v23 = vunpack.i.l.bf16 %v5506_v1  ;;  %v10507_v1 = vld [vmem:[#allocation59_spill] sm:$0xff] }
 0x2e7   :  { %5800 = vrot.lane.b32.xlu1 %v10502_v38, %s5904_s2  ;;  %v2048_v26 = vadd.f32 %v7403_v53, %v1867_v2  ;;  %v2112_v61 = vadd.f32 %v7403_v53, %v1931_v48  ;;  %v2119_v15 = vadd.f32 %v7403_v53, %v1938_v33 }
 0x2e8   :  { %5795 = vrot.lane.b32.xlu0 %v10501_v55, %s5902_s23  ;;  %v2733_v44 = vsel %vm1485_vm0, %v2166_v16, %v5518_v12  ;;  %v2788_v18 = vsel %vm1485_vm0, %v2222_v37, %v5517_v10  ;;  %v2732_v51 = vsel %vm1485_vm0, %v2165_v41, %v5508_v46  ;;  %v2787_v58 = vsel %vm1485_vm0, %v2221_v52, %v5507_v23  ;;  %v10506_v52 = vld [vmem:[#allocation54_spill] sm:$0xff] }
 0x2e9   :  { %v5521_v35 = vpop.permute.xlu1 %5520  ;;  %v5511_v8 = vpop.permute.xlu0 %5510  ;;  %v2223_v11 = vmax.f32 %v2048_v26, 0.0  ;;  %v2274_v41 = vmax.f32 %v2099_v7, 0.0  ;;  %v2275_v37 = vmax.f32 %v2100_v42, 0.0  ;;  %v1945_v62 = vmul.f32 %v7400_v56, %v10506_v52  ;;  %v10510_v42 = vld [vmem:[#allocation84_spill] sm:$0xff] }
 0x2ea   :  { %v5523_v19 = vunpack.i.h.bf16 %v5521_v35  ;;  %v5522_v59 = vunpack.i.l.bf16 %v5521_v35  ;;  %v5513_v14 = vunpack.i.h.bf16 %v5511_v8  ;;  %v5512_v13 = vunpack.i.l.bf16 %v5511_v8 }
 0x2eb   :  { %5810 = vrot.lane.b32.xlu1 %v8630_v36, %s5906_s21  ;;  %v1952_v12 = vmul.f32 %v10507_v1, %v7400_v56  ;;  %v2287_v57 = vmax.f32 %v2112_v61, 0.0  ;;  %v2294_v54 = vmax.f32 %v2119_v15, 0.0  ;;  %v2126_v45 = vadd.f32 %v7403_v53, %v1945_v62 }
 0x2ec   :  { %5805 = vrot.lane.b32.xlu0 %v8624_v43, %s5905_s29  ;;  %v8870_v5 = vsel %vm2736_vm1, %v2733_v44, %v5523_v19  ;;  %v8873_v31 = vsel %vm2736_vm1, %v2788_v18, %v5522_v59  ;;  %v8876_v40 = vsel %vm2736_vm1, %v2732_v51, %v5513_v14  ;;  %v8879_v25 = vsel %vm2736_vm1, %v2787_v58, %v5512_v13  ;;  %v10508_v18 = vld [vmem:[#allocation67_spill] sm:$0xff]  ;;  %v10509_v51 = vld [vmem:[#allocation72_spill] sm:$0xff] }
 0x2ed   :  { %v2224_v43 = vmax.f32 %v2049_v21, 0.0  ;;  %v5531_v32 = vpop.permute.xlu1 %5530  ;;  %v5526_v36 = vpop.permute.xlu0 %5525  ;;  %v2133_v3 = vadd.f32 %v7403_v53, %v1952_v12  ;;  %v1966_v58 = vmul.f32 %v10509_v51, %v7400_v56  ;;  %v2301_v26 = vmax.f32 %v2126_v45, 0.0 }
 0x2ee   :  { %v5533_v47 = vunpack.i.h.bf16 %v5531_v32  ;;  %v5532_v27 = vunpack.i.l.bf16 %v5531_v32  ;;  %v5528_v30 = vunpack.i.h.bf16 %v5526_v36  ;;  %v5527_v16 = vunpack.i.l.bf16 %v5526_v36 }
 0x2ef   :  { %5820 = vrot.lane.b32.xlu1 %v8640_v24, %s5903_s24  ;;  %v2308_v35 = vmax.f32 %v2133_v3, 0.0  ;;  %v2147_v19 = vadd.f32 %v7403_v53, %v1966_v58  ;;  %v1973_v17 = vmul.f32 %v7400_v56, %v10510_v42 }
 0x2f0   :  { %5815 = vrot.lane.b32.xlu0 %v8636_v9, %s5907_s27  ;;  %v2735_v10 = vsel %vm1485_vm0, %v2168_v4, %v5533_v47  ;;  %v2790_v46 = vsel %vm1485_vm0, %v2224_v43, %v5532_v27  ;;  %v2734_v23 = vsel %vm1485_vm0, %v2167_v28, %v5528_v30  ;;  %v2789_v50 = vsel %vm1485_vm0, %v2223_v11, %v5527_v16 }
 0x2f1   :  { %v5541_v2 = vpop.permute.xlu0 %5540  ;;  %v5536_v55 = vpop.permute.xlu1 %5535  ;;  %v1959_v4 = vmul.f32 %v7400_v56, %v10508_v18  ;;  %v2322_v61 = vmax.f32 %v2147_v19, 0.0  ;;  %v2154_v15 = vadd.f32 %v7403_v53, %v1973_v17  ;;  %v8980_v17 = vld [vmem:[%s9941_s4 + $0x100] sm:$0xff] }
 0x2f2   :  { %v5543_v9 = vunpack.i.h.bf16 %v5541_v2  ;;  %v5542_v38 = vunpack.i.l.bf16 %v5541_v2  ;;  %v5538_v44 = vunpack.i.h.bf16 %v5536_v55  ;;  %v5537_v24 = vunpack.i.l.bf16 %v5536_v55 }
 0x2f3   :  { %2880 = vrot.lane.b32.xlu1 %v2294_v54, %s5902_s23  ;;  %v2140_v8 = vadd.f32 %v7403_v53, %v1959_v4  ;;  %v2329_v52 = vmax.f32 %v2154_v15, 0.0 }
 0x2f4   :  { %2852 = vrot.lane.b32.xlu0 %v2287_v57, %s5901_s3  ;;  %v3030_v7 = vsel %vm1485_vm0, %v2275_v37, %v5543_v9  ;;  %v3029_v60 = vsel %vm1485_vm0, %v2274_v41, %v5542_v38  ;;  %v8906_v39 = vsel %vm2736_vm1, %v2735_v10, %v5538_v44  ;;  %v8909_v21 = vsel %vm2736_vm1, %v2790_v46, %v5537_v24 }
 0x2f5   :  { %v5551_v59 = vpop.permute.xlu0 %5550  ;;  %v8913_v14 = vpop.permute.xlu1 %5545  ;;  %v2315_v33 = vmax.f32 %v2140_v8, 0.0 }
 0x2f6   :  { %v5553_v13 = vunpack.i.h.bf16 %v5551_v59  ;;  %v5552_v28 = vunpack.i.l.bf16 %v5551_v59  ;;  %v5548_v15 = vunpack.i.h.bf16 %v8913_v14 }
 0x2f7   :  { %2936 = vrot.lane.b32.xlu1 %v2308_v35, %s5905_s29 }
 0x2f8   :  { %2908 = vrot.lane.b32.xlu0 %v2301_v26, %s5904_s2  ;;  %v3036_v48 = vsel %vm2736_vm1, %v3029_v60, %v5552_v28  ;;  %v3037_v0 = vsel %vm2736_vm1, %v3030_v7, %v5553_v13 }
 0x2f9   :  { %v5556_v43 = vpop.permute.xlu1 %5555  ;;  %v5561_v11 = vpop.permute.xlu0 %5560 }
 0x2fa   :  { %v5558_v32 = vunpack.i.h.bf16 %v5556_v43  ;;  %v5557_v36 = vunpack.i.l.bf16 %v5556_v43  ;;  %v5563_v47 = vunpack.i.h.bf16 %v5561_v11  ;;  %v5562_v27 = vunpack.i.l.bf16 %v5561_v11 }
 0x2fb   :  { %2992 = vrot.lane.b32.xlu1 %v2322_v61, %s5907_s27  ;;  %v5547_v43 = vunpack.i.l.bf16 %v8913_v14  ;;  %v9081_v14 = vld [vmem:[%s9941_s4 + $0x138] sm:$0xff] }
 0x2fc   :  { %2964 = vrot.lane.b32.xlu0 %v2315_v33, %s5906_s21  ;;  %v8925_v30 = vsel %vm2744_vm2, %v3037_v0, %v5558_v32  ;;  %v8928_v16 = vsel %vm2744_vm2, %v3036_v48, %v5557_v36  ;;  %v2742_v41 = vsel %vm2736_vm1, %v2734_v23, %v5563_v47  ;;  %v2796_v37 = vsel %vm2736_vm1, %v2789_v50, %v5562_v27  ;;  %v8985_v48 = vld [vmem:[%s9941_s4 + $0x108] sm:$0xff] }
 0x2fd   :  { %v5566_v62 = vpop.permute.xlu1 %5565  ;;  %v5576_v1 = vpop.permute.xlu0 %5575  ;;  %v5283_v47 = vpack.c.bf16 %v8985_v48, %v8980_v17 }
 0x2fe   :  { %v5578_v12 = vunpack.i.h.bf16 %v5576_v1  ;;  %v5577_v10 = vunpack.i.l.bf16 %v5576_v1  ;;  %v5568_v42 = vunpack.i.h.bf16 %v5566_v62  ;;  %v5567_v0 = vunpack.i.l.bf16 %v5566_v62 }
 0x300   :  { %3020 = vrot.lane.b32.xlu0 %v2329_v52, %s5903_s24  ;;  %v8935_v46 = vsel %vm2744_vm2, %v8876_v40, %v5578_v12  ;;  %v8939_v57 = vsel %vm2744_vm2, %v8879_v25, %v5577_v10  ;;  %v8998_v27 = vsel %vm2744_vm2, %v8834_v63, %v5568_v42  ;;  %v2799_v62 = vsel %vm2744_vm2, %v8837_v34, %v5567_v0 }
 0x301   :  { %v5571_v54 = vpop.permute.xlu1 %5570  ;;  %v5586_v45 = vpop.permute.xlu0 %5585 }
 0x302   :  { %v5588_v23 = vunpack.i.h.bf16 %v5586_v45  ;;  %v5587_v3 = vunpack.i.l.bf16 %v5586_v45  ;;  %v5573_v33 = vunpack.i.h.bf16 %v5571_v54  ;;  %v5572_v61 = vunpack.i.l.bf16 %v5571_v54 }
 0x304   :  { %v8942_v50 = vsel %vm2744_vm2, %v2742_v41, %v5588_v23  ;;  %v8945_v2 = vsel %vm2744_vm2, %v2796_v37, %v5587_v3  ;;  %v2745_v1 = vsel %vm2744_vm2, %v8808_v22, %v5573_v33  ;;  %v2798_v12 = vsel %vm2744_vm2, %v8811_v20, %v5572_v61 }
 0x305   :  { %v8947_v55 = vpop.permute.xlu1 %5580 }
 0x306   :  { %v8949_v9 = vpop.permute.xlu0 %5610 }
 0x307   :  { %v5612_v11 = vunpack.i.l.bf16 %v8949_v9  ;;  %v5613_v3 = vunpack.i.h.bf16 %v8949_v9 }
 0x309   :  { %v8951_v40 = vpop.permute.xlu1 %5590 }
 0x30a   :  { %v8953_v38 = vpop.permute.xlu0 %5620  ;;  %v5593_v17 = vunpack.i.h.bf16 %v8951_v40  ;;  %v5592_v48 = vunpack.i.l.bf16 %v8951_v40 }
 0x30d   :  { %v5596_v25 = vpop.permute.xlu1 %5595 }
 0x30e   :  { %v8955_v44 = vpop.permute.xlu0 %5630  ;;  %v5598_v41 = vunpack.i.h.bf16 %v5596_v25  ;;  %v5597_v37 = vunpack.i.l.bf16 %v5596_v25  ;;  %v2806_v25 = vsel %vm2752_vm3, %v2799_v62, %v5612_v11 }
 0x310   :  { %v2753_v20 = vsel %vm2752_vm3, %v2745_v1, %v5598_v41 }
 0x311   :  { %v5601_v24 = vpop.permute.xlu1 %5600 }
 0x312   :  { %v8957_v18 = vpop.permute.xlu0 %5635  ;;  %v5603_v52 = vunpack.i.h.bf16 %v5601_v24  ;;  %v5602_v10 = vunpack.i.l.bf16 %v5601_v24  ;;  %v2805_v24 = vsel %vm2752_vm3, %v2798_v12, %v5597_v37 }
 0x313   :  { %v5637_v54 = vunpack.i.l.bf16 %v8957_v18 }
 0x314   :  { %v2751_v33 = vsel %vm2744_vm2, %v8906_v39, %v5603_v52  ;;  %v2804_v9 = vsel %vm2744_vm2, %v8909_v21, %v5602_v10 }
 0x315   :  { %v8959_v4 = vpop.permute.xlu1 %5605  ;;  %v2813_v37 = vsel %vm2760_vm4, %v2806_v25, %v5637_v54 }
 0x316   :  { %v5641_v51 = vpop.permute.xlu0 %5640 }
 0x317   :  { %v5643_v45 = vunpack.i.h.bf16 %v5641_v51  ;;  %v5642_v63 = vunpack.i.l.bf16 %v5641_v51  ;;  %v5638_v51 = vunpack.i.h.bf16 %v8957_v18 }
 0x319   :  { %v8961_v58 = vpop.permute.xlu1 %5615  ;;  %v2761_v62 = vsel %vm2760_vm4, %v2753_v20, %v5643_v45  ;;  %v2812_v41 = vsel %vm2760_vm4, %v2805_v24, %v5642_v63 }
 0x31a   :  { %v8963_v7 = vpop.permute.xlu0 %5645 }
 0x31d   :  { %v5626_v60 = vpop.permute.xlu1 %5625 }
 0x31e   :  { %v8965_v26 = vpop.permute.xlu0 %5655  ;;  %v5627_v23 = vunpack.i.l.bf16 %v5626_v60  ;;  %v5628_v42 = vunpack.i.h.bf16 %v5626_v60 }
 0x320   :  { %v2811_v49 = vsel %vm2752_vm3, %v2804_v9, %v5627_v23  ;;  %v2759_v1 = vsel %vm2752_vm3, %v2751_v33, %v5628_v42 }
 0x321   :  { %v8967_v35 = vpop.permute.xlu1 %5650 }
 0x322   :  { %v8969_v8 = vpop.permute.xlu0 %5670  ;;  %v5653_v40 = vunpack.i.h.bf16 %v8967_v35 }
 0x323   :  { %v5672_v34 = vunpack.i.l.bf16 %v8969_v8  ;;  %v5673_v60 = vunpack.i.h.bf16 %v8969_v8 }
 0x325   :  { %v8971_v19 = vpop.permute.xlu1 %5660  ;;  %v2818_v8 = vsel %vm2760_vm4, %v2811_v49, %v5672_v34  ;;  %v2767_v25 = vsel %vm2760_vm4, %v2759_v1, %v5673_v60  ;;  %v3112_v49 = vld [vmem:[%s9941_s4 + $0x110] sm:$0xff]  ;;  %v3113_v34 = vld [vmem:[%s9941_s4 + $0x118] sm:$0xff] }
 0x326   :  { %v8973_v59 = vpop.permute.xlu0 %5680 }
 0x327   :  { %v5682_v39 = vunpack.i.l.bf16 %v8973_v59  ;;  %v5683_v23 = vunpack.i.h.bf16 %v8973_v59 }
 0x329   :  { %v5666_v13 = vpop.permute.xlu1 %5665 }
 0x32a   :  { %v8975_v28 = vpop.permute.xlu0 %5690  ;;  %v5668_v61 = vunpack.i.h.bf16 %v5666_v13  ;;  %v5667_v11 = vunpack.i.l.bf16 %v5666_v13 }
 0x32c   :  { %v2769_v63 = vsel %vm2768_vm5, %v2761_v62, %v5668_v61  ;;  %v2819_v54 = vsel %vm2768_vm5, %v2812_v41, %v5667_v11  ;;  %v2820_v61 = vsel %vm2768_vm5, %v2813_v37, %v5682_v39  ;;  %v3114_v11 = vld [vmem:[%s9941_s4 + $0x120] sm:$0xff]  ;;  %v3115_v62 = vld [vmem:[%s9941_s4 + $0x128] sm:$0xff]  ;;  %v10511_v37 = vld [vmem:[#allocation11_spill] sm:$0xff]  ;;  %v2754_v39 = vsel %vm2752_vm3, %v8998_v27, %v5613_v3 }
 0x32d   :  { %v8990_v32 = vpop.permute.xlu1 %5675  ;;  %v9068_v1 = vmul.f32 %v10511_v37, %v7400_v56  ;;  %v5583_v27 = vunpack.i.h.bf16 %v8947_v55  ;;  %v5582_v3 = vunpack.i.l.bf16 %v8947_v55  ;;  %v9107_v55 = vld [vmem:[%s9941_s4 + $0x158] sm:$0xff] }
 0x32e   :  { %v8992_v36 = vpop.permute.xlu0 %5700 }
 0x331   :  { %v9010_v0 = vpop.permute.xlu1 %5685 }
 0x332   :  { %v9012_v22 = vpop.permute.xlu0 %5705 }
 0x333   :  { %v5707_v18 = vunpack.i.l.bf16 %v9012_v22  ;;  %v5708_v33 = vunpack.i.h.bf16 %v9012_v22 }
 0x335   :  { %v5696_v52 = vpop.permute.xlu1 %5695 }
 0x336   :  { %v5711_v21 = vpop.permute.xlu0 %5710  ;;  %v5698_v12 = vunpack.i.h.bf16 %v5696_v52  ;;  %v5697_v13 = vunpack.i.l.bf16 %v5696_v52  ;;  %v2827_v52 = vsel %vm2776_vm6, %v2820_v61, %v5707_v18  ;;  %v2762_v18 = vsel %vm2760_vm4, %v2754_v39, %v5638_v51 }
 0x337   :  { %v5713_v10 = vunpack.i.h.bf16 %v5711_v21  ;;  %v5712_v45 = vunpack.i.l.bf16 %v5711_v21  ;;  %v5286_v21 = vpack.c.bf16 %v3113_v34, %v3112_v49  ;;  %v2770_v51 = vsel %vm2768_vm5, %v2762_v18, %v5683_v23 }
 0x338   :  { %v2825_v59 = vsel %vm2768_vm5, %v2818_v8, %v5697_v13  ;;  %v2775_v24 = vsel %vm2768_vm5, %v2767_v25, %v5698_v12  ;;  %v9097_v8 = vld [vmem:[%s9941_s4 + $0x148] sm:$0xff]  ;;  %v9102_v12 = vld [vmem:[%s9941_s4 + $0x150] sm:$0xff]  ;;  %v5289_v13 = vpack.c.bf16 %v3115_v62, %v3114_v11  ;;  %v2778_v25 = vsel %vm2776_vm6, %v2770_v51, %v5708_v33 }
 0x339   :  { %v2826_v42 = vsel %vm2776_vm6, %v2819_v54, %v5712_v45  ;;  %v2777_v20 = vsel %vm2776_vm6, %v2769_v63, %v5713_v10  ;;  %v9045_v9 = vpop.permute.xlu1 %5720  ;;  %v9059_v41 = vsel %vm2776_vm6, %v2825_v59, %v5547_v43  ;;  %v9064_v22 = vsel %vm2776_vm6, %v2775_v24, %v5548_v15  ;;  %v9076_v43 = vld [vmem:[%s9941_s4 + $0x130] sm:$0xff]  ;;  %v9086_v15 = vld [vmem:[%s9941_s4 + $0x140] sm:$0xff] }
 0x33a   :  { %v9047_v60 = vpop.permute.xlu0 %5715  ;;  %3213 = vmatprep.mubr.f32.mxu1 %v2826_v42  ;;  %v5608_v10 = vunpack.i.h.bf16 %v8959_v4  ;;  %v5607_v45 = vunpack.i.l.bf16 %v8959_v4  ;;  %v5292_v42 = vpack.c.bf16 %v9081_v14, %v9076_v43  ;;  %v5295_v23 = vpack.c.bf16 %v9097_v8, %v9086_v15  ;;  %v10513_v8 = vld [vmem:[#allocation16_spill] sm:$0xff] }
 0x33b   :  { %3214 = vmatmul.mubr.f32.vlgmr.msra.gmra.mrb[64].mxu1 %v2777_v20  ;;  %v5652_v20 = vunpack.i.l.bf16 %v8967_v35  ;;  %v5298_v4 = vpack.c.bf16 %v9107_v55, %v9102_v12  ;;  %v2747_v49 = vsel %vm2744_vm2, %v8828_v29, %v5583_v27  ;;  %v2800_v34 = vsel %vm2744_vm2, %v8831_v6, %v5582_v3  ;;  %v3125_v12 = vld [vmem:[%s9941_s4 + $0x178] sm:$0xff] }
 0x33c   :  { %5284 = vmatpush1.bf16.msra.mxu1 %v5283_v47  ;;  %3218 = vmatprep.mubr.f32.mxu1 %v2827_v52  ;;  %v10512_v47 = vmov 0.0|0.0   ;;  %v5678_v59 = vunpack.i.h.bf16 %v8990_v32  ;;  %v5677_v24 = vunpack.i.l.bf16 %v8990_v32  ;;  %v2749_v35 = vsel %vm2744_vm2, %v8870_v5, %v5593_v17 }
 0x33d   :  { %5285 = vmatprep.subr.bf16.mxu1 %v10512_v47  ;;  %v9115_v63 = vpop.permute.xlu1 %5730  ;;  %v2802_v33 = vsel %vm2744_vm2, %v8873_v31, %v5592_v48  ;;  %v5623_v61 = vunpack.i.h.bf16 %v8953_v38  ;;  %v5622_v11 = vunpack.i.l.bf16 %v8953_v38  ;;  %v2755_v29 = vsel %vm2752_vm3, %v2747_v49, %v5608_v10 }
 0x33e   :  { %v9117_v54 = vpop.permute.xlu0 %5725  ;;  %v2807_v6 = vsel %vm2752_vm3, %v2800_v34, %v5607_v45  ;;  %v5648_v62 = vunpack.i.h.bf16 %v8963_v7  ;;  %v5647_v32 = vunpack.i.l.bf16 %v8963_v7  ;;  %v2763_v43 = vsel %vm2760_vm4, %v2755_v29, %v5653_v40 }
 0x33f   :  { %3219 = vmatmul.mubr.f32.gmra.mrb[66].mxu1 %v2778_v25  ;;  %v2814_v31 = vsel %vm2760_vm4, %v2807_v6, %v5652_v20  ;;  %v5693_v38 = vunpack.i.h.bf16 %v8975_v28  ;;  %v5692_v14 = vunpack.i.l.bf16 %v8975_v28  ;;  %v2771_v3 = vsel %vm2768_vm5, %v2763_v43, %v5678_v59 }
 0x340   :  { %5287 = vmatpush1.bf16.msra.mxu1 %v5286_v21  ;;  %v2821_v27 = vsel %vm2768_vm5, %v2814_v31, %v5677_v24  ;;  %v2756_v7 = vsel %vm2752_vm3, %v8935_v46, %v5623_v61  ;;  %v2808_v18 = vsel %vm2752_vm3, %v8939_v57, %v5622_v11  ;;  %v5618_v48 = vunpack.i.h.bf16 %v8961_v58 }
 0x341   :  { %5288 = vmatprep.subr.bf16.mxu1 %v10512_v47  ;;  %v5746_v5 = vpop.permute.xlu1 %5745  ;;  %v5617_v28 = vunpack.i.l.bf16 %v8961_v58  ;;  %v2815_v10 = vsel %vm2760_vm4, %v2808_v18, %v5647_v32  ;;  %v2764_v46 = vsel %vm2760_vm4, %v2756_v7, %v5648_v62  ;;  %v5663_v57 = vunpack.i.h.bf16 %v8971_v19 }
 0x342   :  { %v9145_v37 = vpop.permute.xlu0 %5735  ;;  %v5748_v39 = vunpack.i.h.bf16 %v5746_v5  ;;  %v5747_v52 = vunpack.i.l.bf16 %v5746_v5  ;;  %v5662_v45 = vunpack.i.l.bf16 %v8971_v19  ;;  %v5688_v20 = vunpack.i.h.bf16 %v9010_v0 }
 0x343   :  { %v5687_v49 = vunpack.i.l.bf16 %v9010_v0  ;;  %v2822_v58 = vsel %vm2768_vm5, %v2815_v10, %v5692_v14  ;;  %v2772_v34 = vsel %vm2768_vm5, %v2764_v46, %v5693_v38  ;;  %v5633_v59 = vunpack.i.h.bf16 %v8955_v44  ;;  %v3122_v38 = vld [vmem:[%s9941_s4 + $0x160] sm:$0xff] }
 0x344   :  { %5290 = vmatpush1.bf16.msra.mxu1 %v5289_v13  ;;  %v2828_v21 = vsel %vm2776_vm6, %v2821_v27, %v5747_v52  ;;  %v2779_v17 = vsel %vm2776_vm6, %v2771_v3, %v5748_v39  ;;  %v5632_v24 = vunpack.i.l.bf16 %v8955_v44  ;;  %v2757_v11 = vsel %vm2752_vm3, %v2749_v35, %v5618_v48  ;;  %v10514_v48 = vld [vmem:[#allocation83_spill] sm:$0xff]  ;;  %v10515_v10 = vld [vmem:[#allocation17_spill] sm:$0xff] }
 0x345   :  { %5291 = vmatprep.subr.bf16.mxu1 %v10512_v47  ;;  %v9162_v13 = vpop.permute.xlu1 %5750  ;;  %3223 = vmatprep.mubr.f32.mxu1 %v2828_v21  ;;  %v2809_v29 = vsel %vm2752_vm3, %v2802_v33, %v5617_v28  ;;  %v5658_v0 = vunpack.i.h.bf16 %v8965_v26  ;;  %v2765_v39 = vsel %vm2760_vm4, %v2757_v11, %v5663_v57  ;;  %v5703_v52 = vunpack.i.h.bf16 %v8992_v36 }
 0x346   :  { %v5741_v51 = vpop.permute.xlu0 %5740  ;;  %3224 = vmatmul.mubr.f32.gmra.mrb[68].mxu1 %v2779_v17  ;;  %v2816_v5 = vsel %vm2760_vm4, %v2809_v29, %v5662_v45  ;;  %v5702_v35 = vunpack.i.l.bf16 %v8992_v36  ;;  %v2773_v33 = vsel %vm2768_vm5, %v2765_v39, %v5688_v20  ;;  %v3123_v36 = vld [vmem:[%s9941_s4 + $0x168] sm:$0xff]  ;;  %v9203_v15 = vadd.f32 %v7403_v53, %v9068_v1 }
 0x347   :  { %v5743_v25 = vunpack.i.h.bf16 %v5741_v51  ;;  %v5742_v40 = vunpack.i.l.bf16 %v5741_v51  ;;  %v2758_v14 = vsel %vm2752_vm3, %v8942_v50, %v5633_v59  ;;  %v2810_v27 = vsel %vm2752_vm3, %v8945_v2, %v5632_v24 }
 0x348   :  { %5293 = vmatpush1.bf16.msra.mxu1 %v5292_v42  ;;  %v5657_v42 = vunpack.i.l.bf16 %v8965_v26  ;;  %v2823_v26 = vsel %vm2768_vm5, %v2816_v5, %v5687_v49  ;;  %v2766_v1 = vsel %vm2760_vm4, %v2758_v14, %v5658_v0  ;;  %v1974_v28 = vmul.f32 %v10514_v48, %v7400_v56  ;;  %v10518_v0 = vld [vmem:[#allocation20_spill] sm:$0xff] }
 0x349   :  { %5294 = vmatprep.subr.bf16.mxu1 %v10512_v47  ;;  %v2829_v19 = vsel %vm2776_vm6, %v2822_v58, %v5742_v40  ;;  %v2780_v61 = vsel %vm2776_vm6, %v2772_v34, %v5743_v25  ;;  %v5766_v62 = vpop.permute.xlu1 %5765  ;;  %v2774_v2 = vsel %vm2768_vm5, %v2766_v1, %v5703_v52  ;;  %v5301_v51 = vpack.c.bf16 %v3123_v36, %v3122_v38  ;;  %v3124_v25 = vld [vmem:[%s9941_s4 + $0x170] sm:$0xff]  ;;  %v3126_v5 = vld [vmem:[%s9941_s4 + $0x180] sm:$0xff] }
 0x34a   :  { %v9181_v6 = vpop.permute.xlu0 %5755  ;;  %3228 = vmatprep.mubr.f32.mxu1 %v2829_v19  ;;  %v5768_v32 = vunpack.i.h.bf16 %v5766_v62  ;;  %v5767_v44 = vunpack.i.l.bf16 %v5766_v62  ;;  %v2817_v17 = vsel %vm2760_vm4, %v2810_v27, %v5657_v42  ;;  %v1921_v46 = vmul.f32 %v7400_v56, %v10515_v10  ;;  %v10516_v58 = vld [vmem:[#allocation18_spill] sm:$0xff]  ;;  %v10517_v19 = vld [vmem:[#allocation85_spill] sm:$0xff]  ;;  %v10519_v62 = vld [vmem:[#allocation87_spill] sm:$0xff] }
 0x34b   :  { %3229 = vmatmul.mubr.f32.gmra.mrb[70].mxu1 %v2780_v61  ;;  %v2824_v50 = vsel %vm2768_vm5, %v2817_v17, %v5702_v35  ;;  %v1924_v34 = vmul.f32 %v10516_v58, %v7400_v56  ;;  %v5717_v59 = vunpack.i.l.bf16 %v9047_v60  ;;  %v2276_v24 = vmax.f32 %v9203_v15, 0.0 }
 0x34c   :  { %5296 = vmatpush1.bf16.msra.mxu1 %v5295_v23  ;;  %v2830_v31 = vsel %vm2776_vm6, %v2823_v26, %v5767_v44  ;;  %v2781_v43 = vsel %vm2776_vm6, %v2773_v33, %v5768_v32  ;;  %v1922_v23 = vmul.f32 %v10513_v8, %v7400_v56  ;;  %v9242_v49 = vadd.f32 %v7403_v53, %v1921_v46  ;;  %v10520_v8 = vld [vmem:[#allocation88_spill] sm:$0xff] }
 0x34d   :  { %5297 = vmatprep.subr.bf16.mxu1 %v10512_v47  ;;  %v9211_v7 = vpop.permute.xlu1 %5770  ;;  %3233 = vmatprep.mubr.f32.mxu1 %v2830_v31  ;;  %v1976_v61 = vmul.f32 %v10517_v19, %v7400_v56  ;;  %v5304_v11 = vpack.c.bf16 %v3125_v12, %v3124_v25  ;;  %v9252_v29 = vadd.f32 %v7403_v53, %v1924_v34  ;;  %v5718_v44 = vunpack.i.h.bf16 %v9047_v60 }
 0x34e   :  { %v5761_v3 = vpop.permute.xlu0 %5760  ;;  %v9234_v55 = vadd.f32 %v7403_v53, %v1922_v23  ;;  %v1923_v42 = vmul.f32 %v7400_v56, %v10518_v0  ;;  %v1975_v32 = vmul.f32 %v7400_v56, %v10519_v62  ;;  %v5722_v26 = vunpack.i.l.bf16 %v9045_v9 }
 0x34f   :  { %v5763_v18 = vunpack.i.h.bf16 %v5761_v3  ;;  %v5762_v21 = vunpack.i.l.bf16 %v5761_v3  ;;  %3234 = vmatmul.mubr.f32.gmra.mrb[72].mxu1 %v2781_v43  ;;  %v9268_v35 = vadd.f32 %v7403_v53, %v1976_v61  ;;  %v2277_v31 = vmax.f32 %v9242_v49, 0.0  ;;  %v10521_v3 = vld [vmem:[#allocation91_spill] sm:$0xff] }
 0x350   :  { %5299 = vmatpush1.bf16.msra.mxu1 %v5298_v4  ;;  %v2155_v4 = vadd.f32 %v7403_v53, %v1974_v28  ;;  %v2278_v39 = vmax.f32 %v9234_v55, 0.0  ;;  %v2156_v43 = vadd.f32 %v7403_v53, %v1975_v32  ;;  %v3050_v38 = vsel %vm2752_vm3, %v8928_v16, %v5717_v59 }
 0x351   :  { %5300 = vmatprep.subr.bf16.mxu1 %v10512_v47  ;;  %v2831_v57 = vsel %vm2776_vm6, %v2824_v50, %v5762_v21  ;;  %v2782_v45 = vsel %vm2776_vm6, %v2774_v2, %v5763_v18  ;;  %v9239_v20 = vpop.permute.xlu1 %5780  ;;  %v5727_v36 = vunpack.i.l.bf16 %v9117_v54  ;;  %v9282_v15 = vadd.f32 %v7403_v53, %v1923_v42 }
 0x352   :  { %v9237_v40 = vpop.permute.xlu0 %5775  ;;  %3238 = vmatprep.mubr.f32.mxu1 %v2831_v57  ;;  %v2330_v52 = vmax.f32 %v2155_v4, 0.0  ;;  %v1978_v23 = vmul.f32 %v10520_v8, %v7400_v56  ;;  %v5723_v14 = vunpack.i.h.bf16 %v9045_v9  ;;  %v1977_v18 = vmul.f32 %v7400_v56, %v10521_v3 }
 0x353   :  { %3239 = vmatmul.mubr.f32.gmra.mrb[74].mxu1 %v2782_v45  ;;  %v3051_v16 = vsel %vm2752_vm3, %v8925_v30, %v5718_v44  ;;  %v5737_v21 = vunpack.i.l.bf16 %v9145_v37  ;;  %v2332_v17 = vmax.f32 %v9268_v35, 0.0  ;;  %v5732_v9 = vunpack.i.l.bf16 %v9115_v63 }
 0x354   :  { %5302 = vmatpush1.bf16.msra.mxu1 %v5301_v51  ;;  %3243 = vmatprep.mubr.f32.mxu1 %v9059_v41  ;;  %v3127_v41 = vld [vmem:[%s9941_s4 + $0x188] sm:$0xff]  ;;  %v3057_v1 = vsel %vm2760_vm4, %v3050_v38, %v5722_v26  ;;  %v5752_v48 = vunpack.i.l.bf16 %v9162_v13  ;;  %v2331_v2 = vmax.f32 %v2156_v43, 0.0  ;;  %v5757_v51 = vunpack.i.l.bf16 %v9181_v6 }
 0x355   :  { %5303 = vmatprep.subr.bf16.mxu1 %v10512_v47  ;;  %v9273_v60 = vpop.permute.xlu1 %5790  ;;  %v5307_v27 = vpack.c.bf16 %v3127_v41, %v3126_v5  ;;  %v3064_v30 = vsel %vm2768_vm5, %v3057_v1, %v5727_v36  ;;  %v5733_v10 = vunpack.i.h.bf16 %v9115_v63  ;;  %v5753_v46 = vunpack.i.h.bf16 %v9162_v13 }
 0x356   :  { %v9271_v33 = vpop.permute.xlu0 %5785  ;;  %v5772_v57 = vunpack.i.l.bf16 %v9211_v7  ;;  %v3058_v45 = vsel %vm2760_vm4, %v3051_v16, %v5723_v14  ;;  %v3031_v25 = vsel %vm1485_vm0, %v2276_v24, %v5737_v21  ;;  %v5758_v12 = vunpack.i.h.bf16 %v9181_v6 }
 0x357   :  { %3244 = vmatmul.mubr.f32.gmra.mrb[76].mxu1 %v9064_v22  ;;  %v5728_v22 = vunpack.i.h.bf16 %v9117_v54  ;;  %v5738_v54 = vunpack.i.h.bf16 %v9145_v37  ;;  %v5777_v4 = vunpack.i.l.bf16 %v9237_v40  ;;  %v2158_v37 = vadd.f32 %v7403_v53, %v1977_v18 }
 0x358   :  { %5305 = vmatpush1.bf16.msra.mxu1 %v5304_v11  ;;  %4330 = vmatprep.mubr.msk.f32.mxu1 %vm1485_vm0, %v2330_v52  ;;  %v3038_v58 = vsel %vm2736_vm1, %v3031_v25, %v5752_v48  ;;  %v5792_v63 = vunpack.i.l.bf16 %v9273_v60  ;;  %v3071_v59 = vsel %vm2776_vm6, %v3064_v30, %v5732_v9  ;;  %v5773_v19 = vunpack.i.h.bf16 %v9211_v7  ;;  %v10522_v9 = vld [vmem:[#allocation96_spill] sm:$0xff] }
 0x359   :  { %5306 = vmatprep.subr.bf16.mxu1 %v10512_v47  ;;  %v9299_v50 = vpop.permute.xlu1 %5800  ;;  %v3065_v49 = vsel %vm2768_vm5, %v3058_v45, %v5728_v22  ;;  %v3032_v24 = vsel %vm1485_vm0, %v2277_v31, %v5738_v54  ;;  %v3045_v6 = vsel %vm2744_vm2, %v3038_v58, %v5757_v51  ;;  %v5778_v42 = vunpack.i.h.bf16 %v9237_v40 }
 0x35a   :  { %v5796_v28 = vpop.permute.xlu0 %5795  ;;  %v3039_v11 = vsel %vm2736_vm1, %v3032_v24, %v5753_v46  ;;  %v3052_v0 = vsel %vm2752_vm3, %v3045_v6, %v5772_v57  ;;  %v3072_v62 = vsel %vm2776_vm6, %v3065_v49, %v5733_v10  ;;  %v5782_v44 = vunpack.i.l.bf16 %v9239_v20 }
 0x35b   :  { %v5797_v61 = vunpack.i.l.bf16 %v5796_v28  ;;  %v3046_v32 = vsel %vm2744_vm2, %v3039_v11, %v5758_v12  ;;  %v5793_v5 = vunpack.i.h.bf16 %v9273_v60  ;;  %v3059_v7 = vsel %vm2760_vm4, %v3052_v0, %v5777_v4 }
 0x35c   :  { %5308 = vmatpush1.bf16.msra.mxu1 %v5307_v27  ;;  %v5787_v41 = vunpack.i.l.bf16 %v9271_v33  ;;  %v3033_v52 = vsel %vm1485_vm0, %v2278_v39, %v5792_v63  ;;  %v5798_v35 = vunpack.i.h.bf16 %v5796_v28  ;;  %v5802_v40 = vunpack.i.l.bf16 %v9299_v50 }
 0x35d   :  { %v9317_v34 = vpop.permute.xlu1 %5810  ;;  %v2279_v43 = vmax.f32 %v9282_v15, 0.0  ;;  %v3053_v38 = vsel %vm2752_vm3, %v3046_v32, %v5773_v19  ;;  %v3040_v36 = vsel %vm2736_vm1, %v3033_v52, %v5797_v61  ;;  %v2159_v8 = vadd.f32 %v7403_v53, %v1978_v23 }
 0x35e   :  { %v9315_v13 = vpop.permute.xlu0 %5805  ;;  %v2333_v14 = vmax.f32 %v2158_v37, 0.0  ;;  %v5783_v55 = vunpack.i.h.bf16 %v9239_v20  ;;  %v3060_v39 = vsel %vm2760_vm4, %v3053_v38, %v5778_v42  ;;  %v5788_v27 = vunpack.i.h.bf16 %v9271_v33 }
 0x35f   :  { %3314 = vmatmul.mubr.f32.vlgmr.msra.gmra.mrb[78].mxu1 %v3071_v59  ;;  %v5807_v60 = vunpack.i.l.bf16 %v9315_v13  ;;  %v3034_v15 = vsel %vm1485_vm0, %v2279_v43, %v5793_v5  ;;  %v5803_v3 = vunpack.i.h.bf16 %v9299_v50  ;;  %v3066_v18 = vsel %vm2768_vm5, %v3059_v7, %v5782_v44 }
 0x360   :  { %4331 = vmatprep.mubr.msk.f32.mxu1 %vm1485_vm0, %v2331_v2  ;;  %v3041_v16 = vsel %vm2736_vm1, %v3034_v15, %v5798_v35  ;;  %v3047_v22 = vsel %vm2744_vm2, %v3040_v36, %v5802_v40  ;;  %v5812_v23 = vunpack.i.l.bf16 %v9317_v34  ;;  %v1979_v1 = vmul.f32 %v7400_v56, %v10522_v9  ;;  %v3558_v9 = vld [vmem:[%s9944_s7 + $0x98] sm:$0xff] }
 0x361   :  { %v5821_v31 = vpop.permute.xlu1 %5820  ;;  %v5808_v33 = vunpack.i.h.bf16 %v9315_v13  ;;  %v3054_v48 = vsel %vm2752_vm3, %v3047_v22, %v5807_v60  ;;  %v2280_v50 = vmax.f32 %v9252_v29, 0.0  ;;  %v3067_v2 = vsel %vm2768_vm5, %v3060_v39, %v5783_v55  ;;  %v10523_v29 = vld [vmem:[#allocation93_spill] sm:$0xff] }
 0x362   :  { %v5816_v26 = vpop.permute.xlu0 %5815  ;;  %v2334_v30 = vmax.f32 %v2159_v8, 0.0  ;;  %v2160_v54 = vadd.f32 %v7403_v53, %v1979_v1  ;;  %v3048_v51 = vsel %vm2744_vm2, %v3041_v16, %v5803_v3  ;;  %v3074_v10 = vsel %vm2776_vm6, %v3067_v2, %v5788_v27  ;;  %v3555_v16 = vld [vmem:[%s9944_s7 + $0x80] sm:$0xff]  ;;  %v3556_v22 = vld [vmem:[%s9944_s7 + $0x88] sm:$0xff] }
 0x363   :  { %3319 = vmatmul.mubr.f32.gmra.mrb[80].mxu1 %v3072_v62  ;;  %v5817_v28 = vunpack.i.l.bf16 %v5816_v26  ;;  %v5813_v46 = vunpack.i.h.bf16 %v9317_v34  ;;  %v5822_v57 = vunpack.i.l.bf16 %v5821_v31  ;;  %v3061_v12 = vsel %vm2760_vm4, %v3054_v48, %v5812_v23  ;;  %v3539_v23 = vld [vmem:[%s9944_s7] sm:$0xff] }
 0x364   :  { %4332 = vmatprep.mubr.msk.f32.mxu1 %vm1485_vm0, %v2332_v17  ;;  %v3073_v17 = vsel %vm2776_vm6, %v3066_v18, %v5787_v41  ;;  %v1980_v4 = vmul.f32 %v10523_v29, %v7400_v56  ;;  %v3055_v49 = vsel %vm2752_vm3, %v3048_v51, %v5808_v33  ;;  %v5818_v37 = vunpack.i.h.bf16 %v5816_v26  ;;  %v3559_v2 = vld [vmem:[%s9944_s7 + $0xa0] sm:$0xff] }
 0x365   :  { %v2881_v20 = vpop.permute.xlu1 %2880  ;;  %v3068_v58 = vsel %vm2768_vm5, %v3061_v12, %v5817_v28  ;;  %v2335_v34 = vmax.f32 %v2160_v54, 0.0  ;;  %v5823_v24 = vunpack.i.h.bf16 %v5821_v31  ;;  %v3062_v61 = vsel %vm2760_vm4, %v3055_v49, %v5813_v46  ;;  %v3541_v28 = vld [vmem:[%s9944_s7 + $0x10] sm:$0xff]  ;;  %v3560_v54 = vld [vmem:[%s9944_s7 + $0xa8] sm:$0xff]  ;;  %v3562_v12 = vld [vmem:[%s9944_s7 + $0xb8] sm:$0xff] }
 0x366   :  { %v2853_v21 = vpop.permute.xlu0 %2852  ;;  %v2161_v13 = vadd.f32 %v7403_v53, %v1980_v4  ;;  %v3075_v56 = vsel %vm2776_vm6, %v3068_v58, %v5822_v57  ;;  %v3069_v11 = vsel %vm2768_vm5, %v3062_v61, %v5818_v37  ;;  %v5317_v46 = vpack.c.bf16 %v3560_v54, %v3559_v2  ;;  %v3543_v57 = vld [vmem:[%s9944_s7 + $0x20] sm:$0xff]  ;;  %v3545_v49 = vld [vmem:[%s9944_s7 + $0x30] sm:$0xff]  ;;  %v3546_v37 = vld [vmem:[%s9944_s7 + $0x38] sm:$0xff] }
 0x367   :  { %3324 = vmatmul.mubr.f32.gmra.mrb[82].mxu1 %v3073_v17  ;;  %v3035_v45 = vsel %vm1485_vm0, %v2280_v50, %v2853_v21  ;;  %v3076_v32 = vsel %vm2776_vm6, %v3069_v11, %v5823_v24  ;;  %v5309_v21 = vpack.c.bf16 %v3556_v22, %v3555_v16  ;;  %v3557_v17 = vld [vmem:[%s9944_s7 + $0x90] sm:$0xff]  ;;  %v3542_v50 = vld [vmem:[%s9944_s7 + $0x18] sm:$0xff]  ;;  %v5323_v24 = vpack.c.bf16 %v3546_v37, %v3545_v49 }
 0x368   :  { %4333 = vmatprep.mubr.msk.f32.mxu1 %vm1485_vm0, %v2333_v14  ;;  %v3042_v59 = vsel %vm2736_vm1, %v3035_v45, %v2881_v20  ;;  %v2336_v42 = vmax.f32 %v2161_v13, 0.0  ;;  %v3540_v20 = vld [vmem:[%s9944_s7 + $0x8] sm:$0xff]  ;;  %v5313_v48 = vpack.c.bf16 %v3558_v9, %v3557_v17  ;;  %v3565_v11 = vld [vmem:[%s9944_s7 + $0xd0] sm:$0xff] }
 0x369   :  { %v2937_v63 = vpop.permute.xlu1 %2936  ;;  %v5311_v33 = vpack.c.bf16 %v3540_v20, %v3539_v23  ;;  %5310 = vmatprep.subr.bf16.mxu1 %v5309_v21  ;;  %v3544_v45 = vld [vmem:[%s9944_s7 + $0x28] sm:$0xff] }
 0x36a   :  { %v2909_v25 = vpop.permute.xlu0 %2908  ;;  %v5319_v29 = vpack.c.bf16 %v3544_v45, %v3543_v57  ;;  %v3564_v13 = vld [vmem:[%s9944_s7 + $0xc8] sm:$0xff] }
 0x36b   :  { %3329 = vmatmul.mubr.f32.gmra.mrb[84].mxu1 %v3074_v10  ;;  %v3049_v6 = vsel %vm2744_vm2, %v3042_v59, %v2909_v25  ;;  %v5315_v10 = vpack.c.bf16 %v3542_v50, %v3541_v28  ;;  %v3561_v25 = vld [vmem:[%s9944_s7 + $0xb0] sm:$0xff] }
 0x36c   :  { %4334 = vmatprep.mubr.msk.f32.mxu1 %vm1485_vm0, %v2334_v30  ;;  %v3056_v0 = vsel %vm2752_vm3, %v3049_v6, %v2937_v63  ;;  %5312 = vmatpush3.bf16.msra.mxu1 %v5311_v33  ;;  %v5321_v4 = vpack.c.bf16 %v3562_v12, %v3561_v25  ;;  %v3563_v63 = vld [vmem:[%s9944_s7 + $0xc0] sm:$0xff] }
 0x36d   :  { %v2993_v62 = vpop.permute.xlu1 %2992  ;;  %5314 = vmatprep.subr.bf16.mxu1 %v5313_v48  ;;  %v5325_v6 = vpack.c.bf16 %v3564_v13, %v3563_v63 }
 0x36e   :  { %v2965_v19 = vpop.permute.xlu0 %2964 }
 0x36f   :  { %3334 = vmatmul.mubr.f32.gmra.mrb[86].mxu1 %v3075_v56  ;;  %v3063_v53 = vsel %vm2760_vm4, %v3056_v0, %v2965_v19  ;;  %v3547_v19 = vld [vmem:[%s9944_s7 + $0x40] sm:$0xff]  ;;  %v3548_v56 = vld [vmem:[%s9944_s7 + $0x48] sm:$0xff]  ;;  %v3566_v0 = vld [vmem:[%s9944_s7 + $0xd8] sm:$0xff] }
 0x370   :  { %4335 = vmatprep.mubr.msk.f32.mxu1 %vm1485_vm0, %v2335_v34  ;;  %v3070_v5 = vsel %vm2768_vm5, %v3063_v53, %v2993_v62  ;;  %5316 = vmatpush3.bf16.msra.mxu1 %v5315_v10  ;;  %v5327_v62 = vpack.c.bf16 %v3548_v56, %v3547_v19 }
 0x371   :  { %5318 = vmatprep.subr.bf16.mxu1 %v5317_v46 }
 0x372   :  { %v3021_v44 = vpop.permute.xlu0 %3020 }
 0x373   :  { %3339 = vmatmul.mubr.f32.gmra.mrb[88].mxu1 %v3076_v32  ;;  %v3077_v7 = vsel %vm2776_vm6, %v3070_v5, %v3021_v44  ;;  %v5329_v5 = vpack.c.bf16 %v3566_v0, %v3565_v11 }
 0x374   :  { %4336 = vmatprep.mubr.msk.f32.mxu1 %vm1485_vm0, %v2336_v42  ;;  %5320 = vmatpush3.bf16.msra.mxu1 %v5319_v29 }
 0x375   :  { %5322 = vmatprep.subr.bf16.mxu1 %v5321_v4 }
 0x377   :  { %3344 = vmatmul.mubr.f32.gmra.mrb[90].mxu1 %v3077_v7  ;;  %v3549_v7 = vld [vmem:[%s9944_s7 + $0x50] sm:$0xff] }
 0x378   :  { %5324 = vmatpush3.bf16.msra.mxu1 %v5323_v24 }
 0x379   :  { %5326 = vmatprep.subr.bf16.mxu1 %v5325_v6 }
 0x37c   :  { %5328 = vmatpush3.bf16.msra.mxu1 %v5327_v62 }
 0x37d   :  { %5330 = vmatprep.subr.bf16.mxu1 %v5329_v5 }
 0x40e   :  { %v4620_v41 = vpop.f32.mrb[64].mxu1 }
 0x40f   :  { %v4621_v52 = vpop.f32.mrb[65].mxu1 }
 0x410   :  { %v4622_v35 = vadd.f32 %v4621_v52, %v4620_v41  ;;  %v3550_v41 = vld [vmem:[%s9944_s7 + $0x58] sm:$0xff] }
 0x412   :  { %v4623_v40 = vpop.f32.mrb[66].mxu1 }
 0x413   :  { %v4624_v26 = vpop.f32.mrb[67].mxu1 }
 0x414   :  { %v4625_v31 = vadd.f32 %v4624_v26, %v4623_v40  ;;  %v3567_v40 = vld [vmem:[%s9944_s7 + $0xe0] sm:$0xff]  ;;  %v3568_v26 = vld [vmem:[%s9944_s7 + $0xe8] sm:$0xff] }
 0x419   :  { %v4626_v43 = vpop.f32.mrb[68].mxu1 }
 0x41a   :  { %v4627_v38 = vpop.f32.mrb[69].mxu1 }
 0x41b   :  { %v9384_v36 = vadd.f32 %v4627_v38, %v4626_v43  ;;  %v5331_v38 = vpack.c.bf16 %v3550_v41, %v3549_v7 }
 0x41d   :  { %5332 = vmatpush3.bf16.msra.mxu1 %v5331_v38 }
 0x41e   :  { %v4629_v60 = vpop.f32.mrb[70].mxu1 }
 0x41f   :  { %v4630_v8 = vpop.f32.mrb[71].mxu1 }
 0x420   :  { %v9386_v14 = vadd.f32 %v4630_v8, %v4629_v60  ;;  %v5333_v8 = vpack.c.bf16 %v3568_v26, %v3567_v40 }
 0x422   :  { %v4632_v55 = vpop.f32.mrb[72].mxu1  ;;  %5334 = vmatprep.subr.bf16.mxu1 %v5333_v8 }
 0x423   :  { %v4633_v39 = vpop.f32.mrb[73].mxu1 }
 0x424   :  { %v9388_v27 = vadd.f32 %v4633_v39, %v4632_v55 }
 0x426   :  { %v4635_v15 = vpop.f32.mrb[74].mxu1 }
 0x427   :  { %v4636_v3 = vpop.f32.mrb[75].mxu1 }
 0x428   :  { %v9390_v18 = vadd.f32 %v4636_v3, %v4635_v15 }
 0x42a   :  { %v4638_v1 = vpop.f32.mrb[76].mxu1 }
 0x42b   :  { %v4639_v30 = vpop.f32.mrb[77].mxu1 }
 0x42c   :  { %v9422_v51 = vadd.f32 %v4639_v30, %v4638_v1 }
 0x432   :  { %v3315_v58 = vpop.f32.mrb[78].mxu1 }
 0x433   :  { %v9448_v34 = vadd.f32 %v4622_v35, %v3315_v58  ;;  %v3317_v59 = vpop.f32.mrb[79].mxu1 }
 0x435   :  { %v3351_v32 = vsel %vm2736_vm1, %v9448_v34, 0.0 }
 0x436   :  { %v3320_v61 = vpop.f32.mrb[80].mxu1 }
 0x437   :  { %v3321_v42 = vadd.f32 %v4625_v31, %v3320_v61  ;;  %v3322_v53 = vpop.f32.mrb[81].mxu1 }
 0x439   :  { %v3352_v44 = vsel %vm2736_vm1, %v3321_v42, 0.0 }
 0x43a   :  { %v3353_v52 = vadd.f32 %v3352_v44, %v3351_v32  ;;  %v3325_v35 = vpop.f32.mrb[82].mxu1 }
 0x43b   :  { %v3326_v31 = vadd.f32 %v9384_v36, %v3325_v35  ;;  %v3327_v43 = vpop.f32.mrb[83].mxu1 }
 0x43d   :  { %v3354_v60 = vsel %vm2736_vm1, %v3326_v31, 0.0 }
 0x43e   :  { %v3355_v55 = vadd.f32 %v3354_v60, %v3353_v52  ;;  %v3330_v39 = vpop.f32.mrb[84].mxu1 }
 0x43f   :  { %v3331_v15 = vadd.f32 %v9386_v14, %v3330_v39  ;;  %v3332_v3 = vpop.f32.mrb[85].mxu1 }
 0x440   :  { %v10524_v3 = vld [vmem:[#allocation118_spill] sm:$0xff] }
 0x441   :  { %v3356_v16 = vsel %vm2736_vm1, %v3331_v15, 0.0 }
 0x442   :  { %v3357_v22 = vadd.f32 %v3356_v16, %v3355_v55  ;;  %v3335_v23 = vpop.f32.mrb[86].mxu1  ;;  %v3349_v55 = vld [vmem:[%s9942_s5] sm:$0x1] }
 0x443   :  { %v3336_v36 = vadd.f32 %v9388_v27, %v3335_v23  ;;  %v3337_v21 = vpop.f32.mrb[87].mxu1  ;;  %v3551_v23 = vld [vmem:[%s9944_s7 + $0x60] sm:$0xff] }
 0x445   :  { %v3358_v20 = vsel %vm2736_vm1, %v3336_v36, 0.0 }
 0x446   :  { %v3359_v17 = vadd.f32 %v3358_v20, %v3357_v22  ;;  %v3340_v9 = vpop.f32.mrb[88].mxu1  ;;  %v4337_v22 = vld [vmem:[%s9943_s6] ss:$0 sm:$0xff] }
 0x447   :  { %v3341_v1 = vadd.f32 %v9390_v18, %v3340_v9  ;;  %v3342_v33 = vpop.f32.mrb[89].mxu1 }
 0x448   :  { %v3570_v33 = vld [vmem:[%s9944_s7 + $0xf8] sm:$0xff] }
 0x449   :  { %v3360_v48 = vsel %vm2736_vm1, %v3341_v1, 0.0 }
 0x44a   :  { %v3361_v14 = vadd.f32 %v3360_v48, %v3359_v17  ;;  %v3345_v28 = vpop.f32.mrb[90].mxu1 }
 0x44b   :  { %v3346_v50 = vadd.f32 %v9422_v51, %v3345_v28  ;;  %v3347_v2 = vpop.f32.mrb[91].mxu1 }
 0x44d   :  { %v3363_v30 = vsel %vm3362_vm7, %v3346_v50, 0.0 }
 0x44e   :  { %v3364_v54 = vadd.f32 %v3363_v30, %v3361_v14 }
 0x450   :  { %v3365_v27 = vrot.slane %v3364_v54, 4 }
 0x452   :  { %v3366_v10 = vadd.f32 %v3365_v27, %v3364_v54 }
 0x454   :  { %v3367_v46 = vrot.slane %v3366_v10, 2 }
 0x456   :  { %v3368_v57 = vadd.f32 %v3367_v46, %v3366_v10 }
 0x458   :  { %v3369_v45 = vrot.slane %v3368_v57, 1 }
 0x45a   :  { %v3370_v25 = vadd.f32 %v3369_v45, %v3368_v57  ;;  %v3553_v57 = vld [vmem:[%s9944_s7 + $0x70] sm:$0xff]  ;;  %v3554_v45 = vld [vmem:[%s9944_s7 + $0x78] sm:$0xff] }
 0x45c   :  { %v3372_v12 = vmul.f32 0.02, %v3370_v25 }
 0x45e   :  { %v3373_v18 = vsub.f32 %v9448_v34, %v3372_v12  ;;  %v3374_v29 = vsub.f32 %v3321_v42, %v3372_v12  ;;  %v3375_v4 = vsub.f32 %v3326_v31, %v3372_v12  ;;  %v3376_v49 = vsub.f32 %v3331_v15, %v3372_v12 }
 0x45f   :  { %v3377_v37 = vsub.f32 %v3336_v36, %v3372_v12  ;;  %v3378_v58 = vsub.f32 %v3341_v1, %v3372_v12  ;;  %v3379_v63 = vsub.f32 %v3346_v50, %v3372_v12  ;;  %v3552_v36 = vld [vmem:[%s9944_s7 + $0x68] sm:$0xff]  ;;  %v3569_v1 = vld [vmem:[%s9944_s7 + $0xf0] sm:$0xff] }
 0x460   :  { %v3380_v51 = vmul.f32 %v3373_v18, %v3373_v18  ;;  %v3381_v13 = vmul.f32 %v3374_v29, %v3374_v29  ;;  %v3382_v59 = vmul.f32 %v3375_v4, %v3375_v4  ;;  %v3383_v24 = vmul.f32 %v3376_v49, %v3376_v49 }
 0x461   :  { %v3384_v61 = vmul.f32 %v3377_v37, %v3377_v37  ;;  %v3385_v34 = vmul.f32 %v3378_v58, %v3378_v58  ;;  %v3386_v62 = vmul.f32 %v3379_v63, %v3379_v63  ;;  %v5335_v50 = vpack.c.bf16 %v3552_v36, %v3551_v23 }
 0x462   :  { %v3387_v6 = vsel %vm2736_vm1, %v3380_v51, 0.0  ;;  %v3388_v19 = vsel %vm2736_vm1, %v3381_v13, 0.0  ;;  %v3390_v11 = vsel %vm2736_vm1, %v3382_v59, 0.0  ;;  %v3392_v42 = vsel %vm2736_vm1, %v3383_v24, 0.0 }
 0x463   :  { %v3389_v56 = vadd.f32 %v3388_v19, %v3387_v6  ;;  %v3394_v32 = vsel %vm2736_vm1, %v3384_v61, 0.0  ;;  %v3396_v5 = vsel %vm2736_vm1, %v3385_v34, 0.0  ;;  %v3398_v41 = vsel %vm3362_vm7, %v3386_v62, 0.0  ;;  %5336 = vmatpush3.bf16.msra.mxu1 %v5335_v50 }
 0x464   :  { %v5337_v46 = vpack.c.bf16 %v3570_v33, %v3569_v1  ;;  %v3572_v1 = vld [vmem:[%s9944_s7 + $0x108] sm:$0xff] }
 0x465   :  { %v3391_v0 = vadd.f32 %v3390_v11, %v3389_v56  ;;  %v3587_v11 = vld [vmem:[%s9944_s7 + $0x180] sm:$0xff] }
 0x466   :  { %5338 = vmatprep.subr.bf16.mxu1 %v5337_v46 }
 0x467   :  { %v3393_v53 = vadd.f32 %v3392_v42, %v3391_v0  ;;  %v3588_v0 = vld [vmem:[%s9944_s7 + $0x188] sm:$0xff] }
 0x469   :  { %v3395_v44 = vadd.f32 %v3394_v32, %v3393_v53 }
 0x46b   :  { %v3397_v7 = vadd.f32 %v3396_v5, %v3395_v44 }
 0x46d   :  { %v3399_v52 = vadd.f32 %v3398_v41, %v3397_v7  ;;  %v5341_v41 = vpack.c.bf16 %v3588_v0, %v3587_v11  ;;  %v3593_v0 = vld [vmem:[%s9944_s7 + $0x1b0] sm:$0xff] }
 0x46f   :  { %v3400_v35 = vrot.slane %v3399_v52, 4 }
 0x471   :  { %v3401_v40 = vadd.f32 %v3400_v35, %v3399_v52 }
 0x473   :  { %v3402_v26 = vrot.slane %v3401_v40, 2 }
 0x475   :  { %v3403_v31 = vadd.f32 %v3402_v26, %v3401_v40 }
 0x477   :  { %v3404_v43 = vrot.slane %v3403_v31, 1 }
 0x479   :  { %v3405_v38 = vadd.f32 %v3404_v43, %v3403_v31 }
 0x47b   :  { %v3406_v60 = vmul.f32 0.02, %v3405_v38 }
 0x47d   :  { %v3407_v8 = vadd.f32 1e-05, %v3406_v60 }
 0x47f   :  { %5871 = vrsqrt.f32 %v3407_v8 }
 0x489   :  { %v5872_v39 = vpop.eup %5871 }
 0x48a   :  { %v3409_v15 = vmul.f32 %v5872_v39, %v3349_v55 }
 0x48c   :  { %v3414_v16 = vrot.slane %v3409_v15, %v10524_v3 }
 0x48e   :  { %v3422_v21 = vmul.f32 %v3414_v16, %v3379_v63  ;;  %v3416_v20 = vmul.f32 %v3414_v16, %v3373_v18  ;;  %v3417_v17 = vmul.f32 %v3414_v16, %v3374_v29  ;;  %v3418_v9 = vmul.f32 %v3414_v16, %v3375_v4 }
 0x48f   :  { %v3419_v48 = vmul.f32 %v3414_v16, %v3376_v49  ;;  %v3420_v14 = vmul.f32 %v3414_v16, %v3377_v37  ;;  %v3421_v28 = vmul.f32 %v3414_v16, %v3378_v58  ;;  %v5339_v49 = vpack.c.bf16 %v3554_v45, %v3553_v57 }
 0x490   :  { %v9514_v2 = vadd.f32 %v4337_v22, %v3422_v21  ;;  %v3429_v30 = vadd.f32 %v4337_v22, %v3416_v20  ;;  %v3430_v54 = vadd.f32 %v4337_v22, %v3417_v17  ;;  %v3431_v27 = vadd.f32 %v4337_v22, %v3418_v9  ;;  %v3571_v9 = vld [vmem:[%s9944_s7 + $0x100] sm:$0xff] }
 0x491   :  { %v3432_v10 = vadd.f32 %v4337_v22, %v3419_v48  ;;  %v3433_v4 = vadd.f32 %v4337_v22, %v3420_v14  ;;  %v3434_v24 = vadd.f32 %v4337_v22, %v3421_v28  ;;  %5340 = vmatpush3.bf16.msra.mxu1 %v5339_v49  ;;  %v3589_v14 = vld [vmem:[%s9944_s7 + $0x190] sm:$0xff]  ;;  %v3590_v28 = vld [vmem:[%s9944_s7 + $0x198] sm:$0xff]  ;;  %v5343_v46 = vpack.c.bf16 %v3572_v1, %v3571_v9 }
 0x492   :  { %v3436_v25 = vmax.f32 %v3429_v30, 0.0  ;;  %v3437_v12 = vmax.f32 %v3430_v54, 0.0  ;;  %v9522_v18 = vmax.f32 %v3431_v27, 0.0  ;;  %5342 = vmatprep.subr.bf16.mxu1 %v5341_v41  ;;  %v3585_v1 = vld [vmem:[%s9944_s7 + $0x170] sm:$0xff] }
 0x493   :  { %v9524_v29 = vmax.f32 %v3432_v10, 0.0  ;;  %v9536_v34 = vmax.f32 %v3433_v4, 0.0  ;;  %v9540_v32 = vmax.f32 %v3434_v24, 0.0  ;;  %v3574_v4 = vld [vmem:[%s9944_s7 + $0x118] sm:$0xff] }
 0x494   :  { %v3448_v37 = vrot.slane %v3436_v25, 4  ;;  %v3461_v58 = vrot.slane %v3437_v12, 4  ;;  %v3444_v63 = vrot.slane %v3436_v25, 2  ;;  %v3457_v51 = vrot.slane %v3437_v12, 2 }
 0x495   :  { %v3470_v13 = vrot.slane %v9522_v18, 2  ;;  %v3483_v59 = vrot.slane %v9524_v29, 2  ;;  %v3452_v56 = vrot.slane %v3436_v25, 6  ;;  %v3465_v61 = vrot.slane %v3437_v12, 6 }
 0x496   :  { %v5829_v6 = vpack.i.bf16 %v3448_v37, %v3461_v58  ;;  %v5824_v19 = vpack.i.bf16 %v3444_v63, %v3457_v51  ;;  %v3478_v53 = vrot.slane %v9522_v18, 6  ;;  %v3491_v62 = vrot.slane %v9524_v29, 6  ;;  %v3591_v58 = vld [vmem:[%s9944_s7 + $0x1a0] sm:$0xff]  ;;  %v3592_v63 = vld [vmem:[%s9944_s7 + $0x1a8] sm:$0xff] }
 0x497   :  { %v5839_v42 = vpack.i.bf16 %v3470_v13, %v3483_v59  ;;  %v5834_v44 = vpack.i.bf16 %v3452_v56, %v3465_v61  ;;  %v3474_v5 = vrot.slane %v9522_v18, 4  ;;  %v3487_v7 = vrot.slane %v9524_v29, 4  ;;  %v3575_v56 = vld [vmem:[%s9944_s7 + $0x120] sm:$0xff]  ;;  %v3576_v61 = vld [vmem:[%s9944_s7 + $0x128] sm:$0xff] }
 0x498   :  { %5830 = vrot.lane.b32.xlu0 %v5829_v6, %s5905_s29  ;;  %5825 = vrot.lane.b32.xlu1 %v5824_v19, %s5902_s23  ;;  %v5849_v52 = vpack.i.bf16 %v3478_v53, %v3491_v62  ;;  %v3512_v35 = vrot.slane %v9536_v34, 4  ;;  %v3525_v26 = vrot.slane %v9540_v32, 4  ;;  %v3508_v31 = vrot.slane %v9536_v34, 2  ;;  %v3577_v62 = vld [vmem:[%s9944_s7 + $0x130] sm:$0xff] }
 0x499   :  { %v5844_v40 = vpack.i.bf16 %v3474_v5, %v3487_v7  ;;  %v3521_v43 = vrot.slane %v9540_v32, 2  ;;  %v3516_v8 = vrot.slane %v9536_v34, 6  ;;  %v3529_v55 = vrot.slane %v9540_v32, 6  ;;  %v3595_v5 = vld [vmem:[%s9944_s7 + $0x1c0] sm:$0xff]  ;;  %v3596_v7 = vld [vmem:[%s9944_s7 + $0x1c8] sm:$0xff] }
 0x49a   :  { %v5859_v38 = vpack.i.bf16 %v3512_v35, %v3525_v26  ;;  %v5349_v19 = vpack.c.bf16 %v3592_v63, %v3591_v58  ;;  %v3579_v35 = vld [vmem:[%s9944_s7 + $0x140] sm:$0xff]  ;;  %v3597_v26 = vld [vmem:[%s9944_s7 + $0x1d0] sm:$0xff]  ;;  %v3622_v58 = vld [vmem:[%s9944_s7 + $0x298] sm:$0xff] }
 0x49b   :  { %v5854_v60 = vpack.i.bf16 %v3508_v31, %v3521_v43  ;;  %v5864_v39 = vpack.i.bf16 %v3516_v8, %v3529_v55  ;;  %v3598_v31 = vld [vmem:[%s9944_s7 + $0x1d8] sm:$0xff]  ;;  %v3599_v55 = vld [vmem:[%s9944_s7 + $0x1e0] sm:$0xff] }
 0x49c   :  { %5840 = vrot.lane.b32.xlu0 %v5839_v42, %s5902_s23  ;;  %5835 = vrot.lane.b32.xlu1 %v5834_v44, %s5907_s27  ;;  %v5351_v42 = vpack.c.bf16 %v3576_v61, %v3575_v56  ;;  %v3578_v44 = vld [vmem:[%s9944_s7 + $0x138] sm:$0xff]  ;;  %v3624_v56 = vld [vmem:[%s9944_s7 + $0x2a8] sm:$0xff] }
 0x49d   :  { %v5355_v41 = vpack.c.bf16 %v3578_v44, %v3577_v62  ;;  %v3582_v8 = vld [vmem:[%s9944_s7 + $0x158] sm:$0xff] }
 0x49e   :  { %v3626_v62 = vld [vmem:[%s9944_s7 + $0x2b8] sm:$0xff] }
 0x4a0   :  { %5850 = vrot.lane.b32.xlu0 %v5849_v52, %s5907_s27  ;;  %5845 = vrot.lane.b32.xlu1 %v5844_v40, %s5905_s29  ;;  %v5357_v52 = vpack.c.bf16 %v3596_v7, %v3595_v5  ;;  %v3580_v40 = vld [vmem:[%s9944_s7 + $0x148] sm:$0xff]  ;;  %v3609_v7 = vld [vmem:[%s9944_s7 + $0x230] sm:$0xff] }
 0x4a1   :  { %v5359_v43 = vpack.c.bf16 %v3580_v40, %v3579_v35  ;;  %v3628_v35 = vld [vmem:[%s9944_s7 + $0x2c8] sm:$0xff] }
 0x4a4   :  { %5860 = vrot.lane.b32.xlu0 %v5859_v38, %s5905_s29  ;;  %5855 = vrot.lane.b32.xlu1 %v5854_v60, %s5902_s23  ;;  %v5361_v38 = vpack.c.bf16 %v3598_v31, %v3597_v26  ;;  %v3581_v60 = vld [vmem:[%s9944_s7 + $0x150] sm:$0xff]  ;;  %v3611_v31 = vld [vmem:[%s9944_s7 + $0x240] sm:$0xff] }
 0x4a8   :  { %5865 = vrot.lane.b32.xlu1 %v5864_v39, %s5907_s27  ;;  %v3600_v39 = vld [vmem:[%s9944_s7 + $0x1e8] sm:$0xff] }
 0x50a   :  { %v5831_v15 = vpop.permute.xlu0 %5830  ;;  %v5826_v16 = vpop.permute.xlu1 %5825 }
 0x50b   :  { %v5828_v22 = vunpack.i.h.bf16 %v5826_v16  ;;  %v5827_v23 = vunpack.i.l.bf16 %v5826_v16  ;;  %v5833_v36 = vunpack.i.h.bf16 %v5831_v15  ;;  %v5832_v21 = vunpack.i.l.bf16 %v5831_v15 }
 0x50c   :  { %v5363_v15 = vpack.c.bf16 %v3582_v8, %v3581_v60  ;;  %v5365_v16 = vpack.c.bf16 %v3600_v39, %v3599_v55  ;;  %v3630_v60 = vld [vmem:[%s9944_s7 + $0x2d8] sm:$0xff]  ;;  %v3613_v39 = vld [vmem:[%s9944_s7 + $0x250] sm:$0xff] }
 0x50d   :  { %v3495_v20 = vsel %vm2736_vm1, %v3436_v25, %v5828_v22  ;;  %v3498_v17 = vsel %vm2736_vm1, %v3437_v12, %v5827_v23  ;;  %v5345_v25 = vpack.c.bf16 %v3590_v28, %v3589_v14  ;;  %v3573_v12 = vld [vmem:[%s9944_s7 + $0x110] sm:$0xff]  ;;  %v3583_v22 = vld [vmem:[%s9944_s7 + $0x160] sm:$0xff]  ;;  %v3584_v23 = vld [vmem:[%s9944_s7 + $0x168] sm:$0xff] }
 0x50e   :  { %v9565_v33 = vpop.permute.xlu0 %5840  ;;  %v5836_v48 = vpop.permute.xlu1 %5835  ;;  %v3499_v27 = vsel %vm2752_vm3, %v3498_v17, %v5832_v21  ;;  %v3496_v10 = vsel %vm2752_vm3, %v3495_v20, %v5833_v36  ;;  %v5347_v59 = vpack.c.bf16 %v3574_v4, %v3573_v12  ;;  %v3601_v21 = vld [vmem:[%s9944_s7 + $0x1f0] sm:$0xff]  ;;  %v3602_v20 = vld [vmem:[%s9944_s7 + $0x1f8] sm:$0xff]  ;;  %v5367_v17 = vpack.c.bf16 %v3584_v23, %v3583_v22  ;;  %v3619_v28 = vld [vmem:[%s9944_s7 + $0x280] sm:$0xff] }
 0x50f   :  { %v5838_v50 = vunpack.i.h.bf16 %v5836_v48  ;;  %v5837_v30 = vunpack.i.l.bf16 %v5836_v48  ;;  %v5842_v54 = vunpack.i.l.bf16 %v9565_v33  ;;  %v5369_v9 = vpack.c.bf16 %v3602_v20, %v3601_v21  ;;  %v3586_v48 = vld [vmem:[%s9944_s7 + $0x178] sm:$0xff]  ;;  %v3632_v22 = vld [vmem:[%s9944_s7 + $0x2e8] sm:$0xff]  ;;  %v3615_v20 = vld [vmem:[%s9944_s7 + $0x260] sm:$0xff] }
 0x510   :  { %v5843_v14 = vunpack.i.h.bf16 %v9565_v33 }
 0x511   :  { %v3500_v57 = vsel %vm2768_vm5, %v3499_v27, %v5837_v30  ;;  %v3497_v45 = vsel %vm2768_vm5, %v3496_v10, %v5838_v50  ;;  %v3504_v24 = vsel %vm2736_vm1, %v9524_v29, %v5842_v54  ;;  %v3594_v29 = vld [vmem:[%s9944_s7 + $0x1b8] sm:$0xff]  ;;  %v3620_v50 = vld [vmem:[%s9944_s7 + $0x288] sm:$0xff] }
 0x512   :  { %v9584_v49 = vpop.permute.xlu0 %5850  ;;  %v9586_v37 = vpop.permute.xlu1 %5845  ;;  %3706 = vmatprep.mubr.f32.mxu1 %v3500_v57  ;;  %v5353_v53 = vpack.c.bf16 %v3594_v29, %v3593_v0  ;;  %v5373_v33 = vpack.c.bf16 %v3620_v50, %v3619_v28  ;;  %v3603_v57 = vld [vmem:[%s9944_s7 + $0x200] sm:$0xff]  ;;  %v3617_v28 = vld [vmem:[%s9944_s7 + $0x270] sm:$0xff]  ;;  %v3618_v50 = vld [vmem:[%s9944_s7 + $0x278] sm:$0xff] }
 0x513   :  { %v5852_v51 = vunpack.i.l.bf16 %v9584_v49  ;;  %v5847_v13 = vunpack.i.l.bf16 %v9586_v37  ;;  %3707 = vmatmul.mubr.f32.vlgmr.msra.gmra.mrb[92].mxu1 %v3497_v45  ;;  %v5848_v30 = vunpack.i.h.bf16 %v9586_v37  ;;  %v3604_v45 = vld [vmem:[%s9944_s7 + $0x208] sm:$0xff]  ;;  %v5853_v12 = vunpack.i.h.bf16 %v9584_v49  ;;  %v3621_v37 = vld [vmem:[%s9944_s7 + $0x290] sm:$0xff]  ;;  %v3607_v29 = vld [vmem:[%s9944_s7 + $0x220] sm:$0xff] }
 0x514   :  { %5344 = vmatpush3.bf16.msra.mxu1 %v5343_v46  ;;  %v5371_v46 = vpack.c.bf16 %v3586_v48, %v3585_v1  ;;  %v5377_v49 = vpack.c.bf16 %v3622_v58, %v3621_v37  ;;  %v3634_v1 = vld [vmem:[%s9944_s7 + $0x2f8] sm:$0xff]  ;;  %v3442_v58 = vmax.f32 %v9514_v2, 0.0  ;;  %v3963_v2 = vld [vmem:[%s9947_s10 + $0x10] sm:$0xff] }
 0x515   :  { %5346 = vmatprep.subr.bf16.mxu1 %v5345_v25  ;;  %v3505_v6 = vsel %vm2752_vm3, %v3504_v24, %v5847_v13  ;;  %v3501_v25 = vsel %vm2736_vm1, %v9522_v18, %v5843_v14  ;;  %v5375_v18 = vpack.c.bf16 %v3604_v45, %v3603_v57  ;;  %v3606_v24 = vld [vmem:[%s9944_s7 + $0x218] sm:$0xff]  ;;  %v3636_v57 = vld [vmem:[%s9944_s7 + $0x308] sm:$0xff] }
 0x516   :  { %v3506_v11 = vsel %vm2768_vm5, %v3505_v6, %v5852_v51  ;;  %v9654_v36 = vpop.permute.xlu1 %5855  ;;  %v9676_v54 = vpop.permute.xlu0 %5860  ;;  %v3502_v51 = vsel %vm2752_vm3, %v3501_v25, %v5848_v30 }
 0x517   :  { %3776 = vmatprep.mubr.f32.mxu1 %v3506_v11  ;;  %v5857_v27 = vunpack.i.l.bf16 %v9654_v36  ;;  %v5862_v4 = vunpack.i.l.bf16 %v9676_v54  ;;  %v3503_v6 = vsel %vm2768_vm5, %v3502_v51, %v5853_v12  ;;  %v5858_v30 = vunpack.i.h.bf16 %v9654_v36 }
 0x518   :  { %5348 = vmatpush3.bf16.msra.mxu1 %v5347_v59  ;;  %v3605_v59 = vld [vmem:[%s9944_s7 + $0x210] sm:$0xff] }
 0x519   :  { %5350 = vmatprep.subr.bf16.mxu1 %v5349_v19  ;;  %v3536_v13 = vsel %vm2736_vm1, %v9540_v32, %v5857_v27  ;;  %v3623_v32 = vld [vmem:[%s9944_s7 + $0x2a0] sm:$0xff]  ;;  %v5379_v11 = vpack.c.bf16 %v3606_v24, %v3605_v59  ;;  %v5403_v27 = vpack.c.bf16 %v3618_v50, %v3617_v28  ;;  %v3533_v45 = vsel %vm2736_vm1, %v9536_v34, %v5858_v30  ;;  %v3964_v24 = vld [vmem:[%s9947_s10 + $0x18] sm:$0xff] }
 0x51a   :  { %v9679_v10 = vpop.permute.xlu1 %5865  ;;  %v3537_v19 = vsel %vm2752_vm3, %v3536_v13, %v5862_v4  ;;  %v5381_v0 = vpack.c.bf16 %v3624_v56, %v3623_v32  ;;  %v3638_v4 = vld [vmem:[%s9944_s7 + $0x318] sm:$0xff]  ;;  %v4340_v30 = vld [vmem:[%s9948_s11] ss:$0 sm:$0xff] }
 0x51b   :  { %v5867_v63 = vunpack.i.l.bf16 %v9679_v10  ;;  %v5868_v25 = vunpack.i.h.bf16 %v9679_v10  ;;  %v5910_v10 = vmov 0.0  }
 0x51c   :  { %5352 = vmatpush3.bf16.msra.mxu1 %v5351_v42  ;;  %v3608_v42 = vld [vmem:[%s9944_s7 + $0x228] sm:$0xff] }
 0x51d   :  { %5354 = vmatprep.subr.bf16.mxu1 %v5353_v53  ;;  %v3538_v61 = vsel %vm2768_vm5, %v3537_v19, %v5867_v63  ;;  %v3625_v53 = vld [vmem:[%s9944_s7 + $0x2b0] sm:$0xff]  ;;  %v5383_v44 = vpack.c.bf16 %v3608_v42, %v3607_v29 }
 0x51e   :  { %v5385_v5 = vpack.c.bf16 %v3626_v62, %v3625_v53 }
 0x520   :  { %5356 = vmatpush3.bf16.msra.mxu1 %v5355_v41  ;;  %v3610_v41 = vld [vmem:[%s9944_s7 + $0x238] sm:$0xff] }
 0x521   :  { %5358 = vmatprep.subr.bf16.mxu1 %v5357_v52  ;;  %v3627_v52 = vld [vmem:[%s9944_s7 + $0x2c0] sm:$0xff]  ;;  %v5387_v40 = vpack.c.bf16 %v3610_v41, %v3609_v7 }
 0x522   :  { %v5389_v26 = vpack.c.bf16 %v3628_v35, %v3627_v52 }
 0x524   :  { %5360 = vmatpush3.bf16.msra.mxu1 %v5359_v43  ;;  %v3612_v43 = vld [vmem:[%s9944_s7 + $0x248] sm:$0xff] }
 0x525   :  { %5362 = vmatprep.subr.bf16.mxu1 %v5361_v38  ;;  %v3629_v38 = vld [vmem:[%s9944_s7 + $0x2d0] sm:$0xff]  ;;  %v5391_v8 = vpack.c.bf16 %v3612_v43, %v3611_v31 }
 0x526   :  { %v5393_v55 = vpack.c.bf16 %v3630_v60, %v3629_v38 }
 0x528   :  { %5364 = vmatpush3.bf16.msra.mxu1 %v5363_v15  ;;  %v3614_v15 = vld [vmem:[%s9944_s7 + $0x258] sm:$0xff] }
 0x529   :  { %5366 = vmatprep.subr.bf16.mxu1 %v5365_v16  ;;  %v3631_v16 = vld [vmem:[%s9944_s7 + $0x2e0] sm:$0xff]  ;;  %v5395_v23 = vpack.c.bf16 %v3614_v15, %v3613_v39 }
 0x52a   :  { %v5397_v21 = vpack.c.bf16 %v3632_v22, %v3631_v16 }
 0x52c   :  { %5368 = vmatpush3.bf16.msra.mxu1 %v5367_v17  ;;  %v3616_v17 = vld [vmem:[%s9944_s7 + $0x268] sm:$0xff] }
 0x52d   :  { %5370 = vmatprep.subr.bf16.mxu1 %v5369_v9  ;;  %v3633_v9 = vld [vmem:[%s9944_s7 + $0x2f0] sm:$0xff]  ;;  %v5399_v48 = vpack.c.bf16 %v3616_v17, %v3615_v20  ;;  %v3922_v20 = vld [vmem:[%s9945_s8] sm:$0x1] }
 0x52e   :  { %v5401_v14 = vpack.c.bf16 %v3634_v1, %v3633_v9 }
 0x530   :  { %5372 = vmatpush3.bf16.msra.mxu1 %v5371_v46  ;;  %v5863_v46 = vunpack.i.h.bf16 %v9676_v54  ;;  %v3637_v54 = vld [vmem:[%s9944_s7 + $0x310] sm:$0xff] }
 0x531   :  { %5374 = vmatprep.subr.bf16.mxu1 %v5373_v33  ;;  %v3635_v33 = vld [vmem:[%s9944_s7 + $0x300] sm:$0xff]  ;;  %v5409_v34 = vpack.c.bf16 %v3638_v4, %v3637_v54  ;;  %v4055_v54 = vld [vmem:[%s9949_s12 + $0x18] sm:$0xff] }
 0x532   :  { %v5406_v36 = vpack.c.bf16 %v3636_v57, %v3635_v33  ;;  %v3534_v12 = vsel %vm2752_vm3, %v3533_v45, %v5863_v46  ;;  %v4052_v45 = vld [vmem:[%s9949_s12] sm:$0xff] }
 0x533   :  { %3777 = vmatmul.mubr.f32.vlgmr.msra.gmra.mrb[94].mxu1 %v3503_v6  ;;  %v3535_v37 = vsel %vm2768_vm5, %v3534_v12, %v5868_v25  ;;  %v5415_v6 = vpack.c.bf16 %v3964_v24, %v3963_v2  ;;  %v4053_v25 = vld [vmem:[%s9949_s12 + $0x8] sm:$0xff]  ;;  %v4140_v2 = vld [vmem:[%s9951_s14 + $0x18] sm:$0xff]  ;;  %v4141_v24 = vld [vmem:[%s9951_s14 + $0x20] sm:$0xff] }
 0x534   :  { %5376 = vmatpush3.bf16.msra.mxu1 %v5375_v18  ;;  %3846 = vmatprep.mubr.f32.mxu1 %v3538_v61  ;;  %v3961_v18 = vld [vmem:[%s9947_s10] sm:$0xff]  ;;  %v5418_v12 = vpack.c.bf16 %v4053_v25, %v4052_v45 }
 0x535   :  { %5378 = vmatprep.subr.bf16.mxu1 %v5377_v49  ;;  %v3962_v49 = vld [vmem:[%s9947_s10 + $0x8] sm:$0xff]  ;;  %s5911_s10 = smov [#allocation2]  }
 0x536   :  { %v5412_v59 = vpack.c.bf16 %v3962_v49, %v3961_v18  ;;  %v4139_v49 = vld [vmem:[%s9951_s14 + $0x10] sm:$0xff]  ;;  %s4322_s1 = sshll.u32 %s5911_s10, 4  ;;  %s4323_s1 = int_to_ptr.vmem [resolvable:$true] %s4322_s1 }
 0x537   :  { %p5882_p1 = scmp.lt.s32.totalorder %s4323_s1, %s4323_s1 }
 0x538   :  { %5380 = vmatpush3.bf16.msra.mxu1 %v5379_v11 }
 0x539   :  { %5382 = vmatprep.subr.bf16.mxu1 %v5381_v0 }
 0x53c   :  { %5384 = vmatpush3.bf16.msra.mxu1 %v5383_v44 }
 0x53d   :  { %5386 = vmatprep.subr.bf16.mxu1 %v5385_v5 }
 0x540   :  { %5388 = vmatpush3.bf16.msra.mxu1 %v5387_v40 }
 0x541   :  { %5390 = vmatprep.subr.bf16.mxu1 %v5389_v26 }
 0x544   :  { %5392 = vmatpush3.bf16.msra.mxu1 %v5391_v8 }
 0x545   :  { %5394 = vmatprep.subr.bf16.mxu1 %v5393_v55 }
 0x548   :  { %5396 = vmatpush3.bf16.msra.mxu1 %v5395_v23 }
 0x549   :  { %5398 = vmatprep.subr.bf16.mxu1 %v5397_v21 }
 0x54c   :  { %5400 = vmatpush3.bf16.msra.mxu1 %v5399_v48  ;;  %v4339_v48 = vld [vmem:[%s9946_s9] ss:$0 sm:$0xff] }
 0x54d   :  { %5402 = vmatprep.subr.bf16.mxu1 %v5401_v14 }
 0x550   :  { %5404 = vmatpush3.bf16.msra.mxu1 %v5403_v27 }
 0x551   :  { %5405 = vmatprep.subr.bf16.mxu1 %v10512_v47 }
 0x553   :  { %3847 = vmatmul.mubr.f32.vlgmr.msra.gmra.mrb[96].mxu1 %v3535_v37 }
 0x554   :  { %5407 = vmatpush3.bf16.msra.mxu1 %v5406_v36  ;;  %5155 = vmatprep.mubr.msk.f32.mxu1 %vm5909_vm8, %v5910_v10  ;;  %v4054_v36 = vld [vmem:[%s9949_s12 + $0x10] sm:$0xff] }
 0x555   :  { %5408 = vmatprep.subr.bf16.mxu1 %v10512_v47  ;;  %v5421_v4 = vpack.c.bf16 %v4055_v54, %v4054_v36 }
 0x558   :  { %5410 = vmatpush3.bf16.msra.mxu1 %v5409_v34 }
 0x559   :  { %5411 = vmatprep.subr.bf16.mxu1 %v10512_v47 }
 0x55b   :  { %5156 = vmatmul.mubr.msk.f32.vlgmr.msra.gmra.mrb[98].mxu1 %vm2736_vm1, %v3442_v58  ;;  %v4137_v58 = vld [vmem:[%s9951_s14] sm:$0xff] }
 0x55c   :  { %5166 = vmatprep.mubr.msk.f32.mxu1 %vm5909_vm8, %v5910_v10  ;;  %5413 = vmatpush3.bf16.msra.mxu1 %v5412_v59  ;;  %v5427_v59 = vpack.c.bf16 %v4140_v2, %v4139_v49 }
 0x55d   :  { %5414 = vmatprep.subr.bf16.mxu1 %v10512_v47 }
 0x560   :  { %5416 = vmatpush3.bf16.msra.mxu1 %v5415_v6  ;;  %v4142_v6 = vld [vmem:[%s9951_s14 + $0x28] sm:$0xff] }
 0x561   :  { %5417 = vmatprep.subr.bf16.mxu1 %v10512_v47 }
 0x5e6   :  { %v4673_v63 = vpop.f32.mrb[92].mxu1 }
 0x5e7   :  { %v4674_v51 = vpop.f32.mrb[93].mxu1 }
 0x5e8   :  { %v4675_v13 = vadd.f32 %v4674_v51, %v4673_v63  ;;  %v4138_v63 = vld [vmem:[%s9951_s14 + $0x8] sm:$0xff] }
 0x606   :  { %v4708_v19 = vpop.f32.mrb[94].mxu1 }
 0x607   :  { %v4709_v32 = vpop.f32.mrb[95].mxu1 }
 0x608   :  { %v4710_v56 = vadd.f32 %v4709_v32, %v4708_v19  ;;  %v5430_v19 = vpack.c.bf16 %v4142_v6, %v4141_v24  ;;  %v4143_v32 = vld [vmem:[%s9951_s14 + $0x30] sm:$0xff] }
 0x60a   :  { %v3779_v61 = vadd.f32 %v4710_v56, %v4675_v13  ;;  %v5424_v13 = vpack.c.bf16 %v4138_v63, %v4137_v58  ;;  %v4144_v56 = vld [vmem:[%s9951_s14 + $0x38] sm:$0xff] }
 0x626   :  { %v4743_v11 = vpop.f32.mrb[96].mxu1 }
 0x627   :  { %v4744_v0 = vpop.f32.mrb[97].mxu1 }
 0x628   :  { %v4745_v29 = vadd.f32 %v4744_v0, %v4743_v11  ;;  %v4342_v11 = vld [vmem:[%s9950_s13] ss:$0 sm:$0xff] }
 0x629   :  { %v4226_v0 = vld [vmem:[%s9953_s16] sm:$0xff] }
 0x62a   :  { %v3849_v42 = vadd.f32 %v4745_v29, %v3779_v61  ;;  %v5433_v61 = vpack.c.bf16 %v4144_v56, %v4143_v32  ;;  %v4227_v29 = vld [vmem:[%s9953_s16 + $0x8] sm:$0xff] }
 0x62e   :  { %v3918_v53 = vpop.f32.mrb[98].mxu1 }
 0x62f   :  { %v3919_v62 = vadd.f32 %v3918_v53, %v3849_v42  ;;  %v5157_v44 = vpop.f32.mrb[99].mxu1 }
 0x630   :  { %v5436_v44 = vpack.c.bf16 %v4227_v29, %v4226_v0 }
 0x631   :  { %v3924_v5 = vsel %vm3362_vm7, %v3919_v62, 0.0 }
 0x632   :  { %v3925_v7 = vrot.slane %v3924_v5, 4 }
 0x634   :  { %v3926_v41 = vadd.f32 %v3925_v7, %v3924_v5  ;;  %v4228_v7 = vld [vmem:[%s9953_s16 + $0x10] sm:$0xff] }
 0x636   :  { %v3927_v52 = vrot.slane %v3926_v41, 2 }
 0x638   :  { %v3928_v35 = vadd.f32 %v3927_v52, %v3926_v41  ;;  %v4229_v41 = vld [vmem:[%s9953_s16 + $0x18] sm:$0xff] }
 0x639   :  { %v5439_v52 = vpack.c.bf16 %v4229_v41, %v4228_v7 }
 0x63a   :  { %v3929_v40 = vrot.slane %v3928_v35, 1 }
 0x63c   :  { %v3930_v26 = vadd.f32 %v3929_v40, %v3928_v35  ;;  %v4230_v35 = vld [vmem:[%s9953_s16 + $0x20] sm:$0xff]  ;;  %v4231_v40 = vld [vmem:[%s9953_s16 + $0x28] sm:$0xff] }
 0x63e   :  { %v3932_v31 = vmul.f32 0.5, %v3930_v26  ;;  %v5442_v26 = vpack.c.bf16 %v4231_v40, %v4230_v35 }
 0x640   :  { %v3933_v43 = vsub.f32 %v3919_v62, %v3932_v31  ;;  %v4233_v31 = vld [vmem:[%s9953_s16 + $0x38] sm:$0xff] }
 0x642   :  { %v3934_v38 = vmul.f32 %v3933_v43, %v3933_v43 }
 0x644   :  { %v3935_v60 = vsel %vm3362_vm7, %v3934_v38, 0.0  ;;  %v4344_v38 = vld [vmem:[%s9952_s15] ss:$0 sm:$0xff] }
 0x645   :  { %v3936_v8 = vrot.slane %v3935_v60, 4 }
 0x647   :  { %v3937_v55 = vadd.f32 %v3936_v8, %v3935_v60 }
 0x649   :  { %v3938_v39 = vrot.slane %v3937_v55, 2 }
 0x64b   :  { %v3939_v15 = vadd.f32 %v3938_v39, %v3937_v55 }
 0x64d   :  { %v3940_v16 = vrot.slane %v3939_v15, 1 }
 0x64f   :  { %v3941_v22 = vadd.f32 %v3940_v16, %v3939_v15 }
 0x651   :  { %v3942_v23 = vmul.f32 0.5, %v3941_v22 }
 0x653   :  { %v3943_v21 = vadd.f32 1e-05, %v3942_v23 }
 0x655   :  { %5873 = vrsqrt.f32 %v3943_v21 }
 0x65f   :  { %v5874_v17 = vpop.eup %5873 }
 0x660   :  { %v3945_v9 = vmul.f32 %v5874_v17, %v3922_v20 }
 0x662   :  { %v3950_v1 = vrot.slane %v3945_v9, %v10524_v3 }
 0x664   :  { %v3952_v14 = vmul.f32 %v3950_v1, %v3933_v43 }
 0x666   :  { %v3959_v28 = vadd.f32 %v4339_v48, %v3952_v14 }
 0x668   :  { %v3960_v50 = vmax.f32 %v3959_v28, 0.0 }
 0x66a   :  { %5167 = vmatmul.mubr.msk.f32.vlgmr.msra.gmra.mrb[100].mxu1 %vm2736_vm1, %v3960_v50 }
 0x66b   :  { %5177 = vmatprep.mubr.msk.f32.mxu1 %vm5909_vm8, %v5910_v10  ;;  %5419 = vmatpush3.bf16.msra.mxu1 %v5418_v12 }
 0x66c   :  { %5420 = vmatprep.subr.bf16.mxu1 %v10512_v47 }
 0x66f   :  { %5422 = vmatpush3.bf16.msra.mxu1 %v5421_v4 }
 0x670   :  { %5423 = vmatprep.subr.bf16.mxu1 %v10512_v47 }
 0x73d   :  { %v4041_v27 = vpop.f32.mrb[100].mxu1 }
 0x73e   :  { %v4042_v46 = vadd.f32 %v4340_v30, %v4041_v27  ;;  %v5168_v33 = vpop.f32.mrb[101].mxu1 }
 0x740   :  { %v4045_v3 = vmul.f32 %v4042_v46, %v4042_v46 }
 0x742   :  { %v4046_v57 = vsel %vm3362_vm7, %v4045_v3, 0.0 }
 0x743   :  { %4047 = vadd.xlane.f32.xlu0 %v4046_v57 }
 0x7d0   :  { %v4048_v37 = vpop.xlane.xlu0 %4047 }
 0x7d1   :  { %v4049_v34 = vadd.f32 1e-12, %v4048_v37 }
 0x7d3   :  { %5875 = vrsqrt.f32 %v4049_v34 }
 0x7dd   :  { %v5876_v51 = vpop.eup %5875 }
 0x7de   :  { %v4051_v18 = vmul.f32 %v5876_v51, %v4042_v46 }
 0x7e0   :  { %5178 = vmatmul.mubr.msk.f32.vlgmr.msra.gmra.mrb[102].mxu1 %vm2736_vm1, %v4051_v18 }
 0x7e1   :  { %5425 = vmatpush3.bf16.msra.mxu1 %v5424_v13  ;;  %5196 = vmatprep.mubr.msk.f32.mxu1 %vm5909_vm8, %v5910_v10 }
 0x7e2   :  { %5426 = vmatprep.subr.bf16.mxu1 %v10512_v47 }
 0x7e5   :  { %5428 = vmatpush3.bf16.msra.mxu1 %v5427_v59 }
 0x7e6   :  { %5429 = vmatprep.subr.bf16.mxu1 %v10512_v47 }
 0x7e9   :  { %5431 = vmatpush3.bf16.msra.mxu1 %v5430_v19 }
 0x7ea   :  { %5432 = vmatprep.subr.bf16.mxu1 %v10512_v47 }
 0x7ed   :  { %5434 = vmatpush3.bf16.msra.mxu1 %v5433_v61 }
 0x7ee   :  { %5435 = vmatprep.subr.bf16.mxu1 %v10512_v47 }
 0x8b3   :  { %v4132_v42 = vpop.f32.mrb[102].mxu1 }
 0x8b4   :  { %v4133_v53 = vadd.f32 %v4342_v11, %v4132_v42  ;;  %v5179_v62 = vpop.f32.mrb[103].mxu1 }
 0x8b6   :  { %v4136_v5 = vmax.f32 %v4133_v53, 0.0 }
 0x8b8   :  { %5197 = vmatmul.mubr.msk.f32.vlgmr.msra.gmra.mrb[104].mxu1 %vm2752_vm3, %v4136_v5 }
 0x8b9   :  { %5437 = vmatpush3.bf16.msra.mxu1 %v5436_v44  ;;  %5215 = vmatprep.mubr.msk.f32.mxu1 %vm5909_vm8, %v5910_v10  ;;  %v4232_v10 = vld [vmem:[%s9953_s16 + $0x30] sm:$0xff]  ;;  %s5877_s16 = scalar_lea.vmem %s4323_s1, 32 }
 0x8ba   :  { %5438 = vmatprep.subr.bf16.mxu1 %v10512_v47  ;;  %v5445_v43 = vpack.c.bf16 %v4233_v31, %v4232_v10  ;;  %p5878_p0 = scmp.ne.s32.totalorder %s4323_s1, %s5877_s16  ;;  %p5883_p2 = scmp.lt.s32.totalorder %s5877_s16, %s5877_s16 }
 0x8bc   :  { %p5884_p3 = por %p5883_p2, %p5882_p1 }
 0x8bd   :  { %5440 = vmatpush3.bf16.msra.mxu1 %v5439_v52 }
 0x8be   :  { %5441 = vmatprep.subr.bf16.mxu1 %v10512_v47  ;;  %p5885_p4 = pnand %p5884_p3, %p5878_p0 }
 0x8c1   :  { %5443 = vmatpush3.bf16.msra.mxu1 %v5442_v26 }
 0x8c2   :  { %5444 = vmatprep.subr.bf16.mxu1 %v10512_v47  ;;  %v4346_v47 = vld [vmem:[%s9954_s17] ss:$0 sm:$0xff] }
 0x8c5   :  { %5446 = vmatpush3.bf16.msra.mxu1 %v5445_v43 }
 0x98b   :  { %v4221_v60 = vpop.f32.mrb[104].mxu1 }
 0x98c   :  { %v4222_v8 = vadd.f32 %v4344_v38, %v4221_v60  ;;  %v5198_v55 = vpop.f32.mrb[105].mxu1 }
 0x98e   :  { %v4225_v39 = vmax.f32 %v4222_v8, 0.0 }
 0x990   :  { %5216 = vmatmul.mubr.msk.f32.vlgmr.msra.gmra.mrb[106].mxu1 %vm2752_vm3, %v4225_v39 }
 0xa63   :  { %v4310_v15 = vpop.f32.mrb[106].mxu1 }
 0xa64   :  { %v4311_v16 = vadd.f32 %v4346_v47, %v4310_v15  ;;  %v5217_v22 = vpop.f32.mrb[107].mxu1 }
 0xa66   :  { %4315 = vst.msk [vmem:[#allocation2] sm:$0x3] %vm4314_vm9, %v4311_v16 }
 0xa67   :  { %5888 = shalt.err (!%p5885_p4)
}
 0xa68   :  { %s5889_s3 = scalar_lea.hbm %s9955_s18, 32 }
 0xa69   :  { %p5890_p5 = scmp.ne.s32.totalorder %s9955_s18, %s5889_s3  ;;  %p5893_p6 = scmp.lt.u32.totalorder %s5889_s3, %s9955_s18 }
 0xa6b   :  { %p5895_p7 = pnand %p5893_p6, %p5890_p5 }
 0xa6d   :  { %5898 = shalt.err (!%p5895_p7)
}
 0xa6e   :  { %4325 = dma.vmem_to_hbm [thread:$0]  %s4323_s1, 32, %s9955_s18, [#allocation3]  }
 0xa6f   :  { %5899 = dma.done.wait [#allocation3], 32  }
 0xa70   :  { %5900 = vsyncadd [#allocation3], 4294967264 }
 0xa71   :  { %4329 = vsyncpa [#allocation3], 1 }

</bundles_post_ra>
